<compile_context>
chip_gen: v7x
topology: tpu7x:2x2x1
jax: 0.10.0
libtpu: 0.0.40
codegen_flags: <defaults>
</compile_context>

<pallas_src>
import jax
import jax.numpy as jnp
from jax.experimental import pallas as pl
from jax.experimental.pallas import tpu as pltpu

T = 4          # message-passing rounds (matches the PyTorch module)
LANE = 128     # TPU lane width; channel / feature dims padded to a multiple of this
SUBLANE = 8


# --------------------------------------------------------------------------------------
# Kernel: one grid step == G graphs, flattened to a (G*N, CP) node slab.
# --------------------------------------------------------------------------------------
def _siamese_kernel(x_ref, a_ref, u_ref, r_ref,
                    w1_ref, b1_ref,
                    ws1_ref, bs1_ref,
                    ws2_ref, bs2_ref,
                    ws3_ref, bs3_ref,
                    w2_ref, b2_ref,
                    g_ref):
    bf16 = jnp.bfloat16

    x = x_ref[...]     # [GN, INP]  bf16 (G graphs flattened; lane-padded features)
    A = a_ref[...]     # [GN, GN]   bf16 block-diagonal adjacency (integer edge counts)
    u = u_ref[...]     # [GN, CP]   bf16 (lane-padded channels)
    R = r_ref[...]     # [G, GN]    bf16 per-graph readout (ones over each graph's rows)

    # Hoist all read-only weight/bias loads out of the T-round loop.
    w1, b1 = w1_ref[...], b1_ref[...]
    ws1, bs1 = ws1_ref[...], bs1_ref[...]
    ws2, bs2 = ws2_ref[...], bs2_ref[...]
    ws3, bs3 = ws3_ref[...], bs3_ref[...]
    w2, b2 = w2_ref[...], b2_ref[...]

    def mm(a, b):  # bf16 x bf16 -> f32 accumulation on the MXU
        return jnp.dot(a, b, preferred_element_type=jnp.float32)

    # w1(x) is invariant across the T rounds -> hoist it.
    xw = mm(x, w1) + b1                                        # [GN, CP] f32

    # T rounds of ACFGConv: u <- relu( w1(x) + sigmod( A @ u ) )
    for _ in range(T):
        agg = mm(A, u)                                         # sum-aggregate u[src] at dst
        h = jnp.maximum(mm(agg.astype(bf16), ws1) + bs1, 0.0)  # Linear + ReLU
        h = jnp.maximum(mm(h.astype(bf16), ws2) + bs2, 0.0)    # Linear + ReLU
        h = jnp.tanh(mm(h.astype(bf16), ws3) + bs3)            # Linear + Tanh
        u = jnp.maximum(xw + h, 0.0).astype(bf16)              # update + ReLU

    # Per-graph readout: g_g = ones([1, N]) @ u_g for all G graphs as one matmul,
    # then g = w2(g).  Output is a sublane-dense (G, CP) slab.
    g = mm(R, u)                                               # [G, CP] f32 column sums
    g_ref[...] = mm(g.astype(bf16), w2) + b2


# --------------------------------------------------------------------------------------
# Parameter init (PyTorch-Linear style), stored [in, out] so the kernel uses y = x@W + b.
# --------------------------------------------------------------------------------------
def init_params(key, in_channels, out_channels):
    def linear(k, fan_in, fan_out):
        kw, kb = jax.random.split(k)
        bound = 1.0 / jnp.sqrt(jnp.float32(fan_in))
        W = jax.random.uniform(kw, (fan_in, fan_out), jnp.float32, -bound, bound)
        b = jax.random.uniform(kb, (1, fan_out), jnp.float32, -bound, bound)
        return W, b

    ks = jax.random.split(key, 5)
    W1, b1 = linear(ks[0], in_channels, out_channels)        # conv.w1
    Ws1, bs1 = linear(ks[1], out_channels, out_channels)     # conv.sigmod[0]
    Ws2, bs2 = linear(ks[2], out_channels, out_channels)     # conv.sigmod[2]
    Ws3, bs3 = linear(ks[3], out_channels, out_channels)     # conv.sigmod[4]
    W2, b2 = linear(ks[4], out_channels, out_channels)       # self.w2
    return dict(W1=W1, b1=b1, Ws1=Ws1, bs1=bs1, Ws2=Ws2, bs2=bs2,
                Ws3=Ws3, bs3=bs3, W2=W2, b2=b2)


def _pad_to(w, rows, cols):
    return jnp.pad(w, ((0, rows - w.shape[0]), (0, cols - w.shape[1])))


def _choose_graphs_per_step(num_graphs, nodes_per_graph, rows_target=LANE):
    """Pick G so G*N ~= rows_target MXU rows, keeping multi-step blocks (8,128)-aligned."""
    G = max(1, rows_target // max(nodes_per_graph, 1))
    if G >= num_graphs:
        return num_graphs          # single grid step: block shapes == full array dims
    if G % SUBLANE:                # multi-step: keep G (and hence G*N) sublane-aligned
        G += SUBLANE - (G % SUBLANE)
    return min(G, num_graphs)


# --------------------------------------------------------------------------------------
# Batched forward: B graphs of identical size, G graphs per grid step.
# --------------------------------------------------------------------------------------
def siamese_forward_batched(x, u, edge_index, params, rows_target=LANE):
    """x: [B,N,IN] f32, u: [B,N,C] f32, edge_index: [B,2,E] int32 -> g: [B,1,C] f32."""
    B, N, IN = x.shape
    C = u.shape[2]
    CP = pl.cdiv(C, LANE) * LANE    # lane-dense channel width
    INP = pl.cdiv(IN, LANE) * LANE  # lane-dense input-feature width

    G = _choose_graphs_per_step(B, N, rows_target)   # graphs packed per grid step
    S = pl.cdiv(B, G)                                # grid steps
    Bp = S * G                                       # padded batch (extras are discarded)
    GN = G * N                                       # MXU rows per step

    f32, bf16 = jnp.float32, jnp.bfloat16
    pad_b = Bp - B

    # ---- pad batch with empty graphs, pad lane dims, flatten to per-step node slabs ----
    xp = jnp.pad(x, ((0, pad_b), (0, 0), (0, INP - IN)))
    up = jnp.pad(u, ((0, pad_b), (0, 0), (0, CP - C)))
    xb = xp.reshape(Bp * N, INP).astype(bf16)        # [S*GN, INP]
    ub = up.reshape(Bp * N, CP).astype(bf16)         # [S*GN, CP]
    eip = jnp.pad(edge_index, ((0, pad_b), (0, 0), (0, 0)))

    # ---- block-diagonal adjacency per step, flattened to (S*GN, GN) ----
    # A[step*GN + g*N + dst, g*N + src] += 1   (aggr='add'; edges stay inside graph g).
    graph = jnp.arange(Bp)
    step = graph // G
    off_in_step = (graph % G) * N
    row_base = step * GN + off_in_step
    rows = eip[:, 1, :] + row_base[:, None]          # dst rows (global)
    cols = eip[:, 0, :] + off_in_step[:, None]       # src cols (within the step block)
    A = jnp.zeros((S * GN, GN), f32).at[rows, cols].add(1.0).astype(bf16)

    # ---- per-graph readout matrix: row g has ones over that graph's N node rows ----
    R = (jnp.arange(GN)[None, :] // N == jnp.arange(G)[:, None]).astype(bf16)   # [G, GN]

    # ---- zero-pad weights / biases; padded lanes stay exactly zero end-to-end ----
    W1 = _pad_to(params["W1"], INP, CP).astype(bf16)
    b1 = _pad_to(params["b1"], 1, CP)
    Ws1 = _pad_to(params["Ws1"], CP, CP).astype(bf16)
    bs1 = _pad_to(params["bs1"], 1, CP)
    Ws2 = _pad_to(params["Ws2"], CP, CP).astype(bf16)
    bs2 = _pad_to(params["bs2"], 1, CP)
    Ws3 = _pad_to(params["Ws3"], CP, CP).astype(bf16)
    bs3 = _pad_to(params["bs3"], 1, CP)
    W2 = _pad_to(params["W2"], CP, CP).astype(bf16)
    b2 = _pad_to(params["b2"], 1, CP)

    def per_step(shape):
        return pl.BlockSpec(shape, lambda s: (s, 0))

    def shared(shape):
        # Constant block index across the grid -> stays resident in VMEM.
        return pl.BlockSpec(shape, lambda s: (0,) * len(shape))

    in_specs = [
        per_step((GN, INP)),                 # x slab
        per_step((GN, GN)),                  # block-diagonal A for this step
        per_step((GN, CP)),                  # u slab
        shared((G, GN)),                     # readout matrix R
        shared((INP, CP)), shared((1, CP)),  # W1, b1
        shared((CP, CP)), shared((1, CP)),   # Ws1, bs1
        shared((CP, CP)), shared((1, CP)),   # Ws2, bs2
        shared((CP, CP)), shared((1, CP)),   # Ws3, bs3
        shared((CP, CP)), shared((1, CP)),   # W2, b2
    ]
    out_specs = pl.BlockSpec((G, CP), lambda s: (s, 0))

    flops_step = (2 * GN * INP * CP                                  # x @ W1
                  + T * (2 * GN * GN * CP + 3 * 2 * GN * CP * CP)    # rounds
                  + 2 * G * GN * CP + 2 * G * CP * CP)               # readout + w2
    bytes_accessed = (S * (GN * INP + GN * GN + GN * CP) * 2         # bf16 per-step inputs
                      + (G * GN + INP * CP + 4 * CP * CP) * 2        # bf16 R + weights
                      + 5 * CP * 4                                   # f32 biases
                      + S * G * CP * 4)                              # f32 output
    cost = pl.CostEstimate(flops=S * flops_step,
                           transcendentals=S * T * GN * CP,
                           bytes_accessed=bytes_accessed)

    g = pl.pallas_call(
        _siamese_kernel,
        out_shape=jax.ShapeDtypeStruct((S * G, CP), jnp.float32),
        grid=(S,),
        in_specs=in_specs,
        out_specs=out_specs,
        compiler_params=pltpu.CompilerParams(
            dimension_semantics=("parallel",)),   # steps shard across TCs on v7x
        cost_estimate=cost,
    )(xb, A, ub, R, W1, b1, Ws1, bs1, Ws2, bs2, Ws3, bs3, W2, b2)

    return g[:B, :C].reshape(B, 1, C)


def siamese_forward(x, u, edge_index, params):
    """Single-graph forward (matches the PyTorch module's interface)."""
    return siamese_forward_batched(x[None], u[None], edge_index[None], params)[0]


# --------------------------------------------------------------------------------------
# References for validation
# --------------------------------------------------------------------------------------
def siamese_forward_ref_mixed(x, u, edge_index, params):
    """Pure-JAX reference with the same bf16-input / f32-accumulate precision as the kernel."""
    bf16 = jnp.bfloat16
    N = x.shape[0]
    src, dst = edge_index[0], edge_index[1]
    A = jnp.zeros((N, N), jnp.float32).at[dst, src].add(1.0).astype(bf16)

    def mm(a, b):
        return jnp.dot(a, b, preferred_element_type=jnp.float32)

    W1, Ws1 = params["W1"].astype(bf16), params["Ws1"].astype(bf16)
    Ws2, Ws3 = params["Ws2"].astype(bf16), params["Ws3"].astype(bf16)
    W2 = params["W2"].astype(bf16)
    xw = mm(x.astype(bf16), W1) + params["b1"]
    u = u.astype(bf16)
    for _ in range(T):
        agg = mm(A, u)
        h = jnp.maximum(mm(agg.astype(bf16), Ws1) + params["bs1"], 0.0)
        h = jnp.maximum(mm(h.astype(bf16), Ws2) + params["bs2"], 0.0)
        h = jnp.tanh(mm(h.astype(bf16), Ws3) + params["bs3"])
        u = jnp.maximum(xw + h, 0.0).astype(bf16)
    g = jnp.sum(u.astype(jnp.float32), axis=0, keepdims=True)
    return mm(g.astype(bf16), W2) + params["b2"]


def siamese_forward_ref_f32(x, u, edge_index, params):
    """Pure-f32 reference mirroring the PyTorch forward exactly."""
    N = x.shape[0]
    src, dst = edge_index[0], edge_index[1]
    A = jnp.zeros((N, N), jnp.float32).at[dst, src].add(1.0)
    xw = x @ params["W1"] + params["b1"]
    for _ in range(T):
        agg = A @ u
        h = jax.nn.relu(agg @ params["Ws1"] + params["bs1"])
        h = jax.nn.relu(h @ params["Ws2"] + params["bs2"])
        h = jnp.tanh(h @ params["Ws3"] + params["bs3"])
        u = jax.nn.relu(xw + h)
    g = jnp.ones((1, N), jnp.float32) @ u
    return g @ params["W2"] + params["b2"]


if __name__ == "__main__":
    key = jax.random.PRNGKey(0)
    k_x, k_u, k_e, k_p = jax.random.split(key, 4)

    B = 20             # graphs (exercises multi-step grid AND batch padding: G=16, S=2)
    N = 8              # nodes per graph
    E = 16             # edges per graph
    in_channels = 4
    out_channels = 32

    x = jax.random.normal(k_x, (B, N, in_channels), jnp.float32)
    u = jax.random.normal(k_u, (B, N, out_channels), jnp.float32)
    edge_index = jax.random.randint(k_e, (B, 2, E), 0, N, jnp.int32)

    params = init_params(k_p, in_channels, out_channels)

    # Batched kernel call: G=16 graphs per grid step -> (128, 128) MXU tiles, 2 grid steps.
    g = jax.block_until_ready(siamese_forward_batched(x, u, edge_index, params))
    assert g.shape == (B, 1, out_channels)

    # Module-equivalent single-graph interface.
    g0 = jax.block_until_ready(siamese_forward(x[0], u[0], edge_index[0], params))
    assert g0.shape == (1, out_channels)
    assert jnp.allclose(g0, g[0], atol=1e-4, rtol=1e-4), \
        "single-graph path mismatch vs batched path"

    # Validate every graph: tight vs mixed-precision reference, loose vs pure-f32
    # reference (the only deviation from f32 is the bf16 input quantization).
    for b in range(B):
        ref_m = siamese_forward_ref_mixed(x[b], u[b], edge_index[b], params)
        ref_f = siamese_forward_ref_f32(x[b], u[b], edge_index[b], params)
        assert jnp.allclose(g[b], ref_m, atol=1e-3, rtol=1e-3), \
            "Pallas kernel mismatch vs mixed-precision reference"
        assert jnp.allclose(g[b], ref_f, atol=1e-1, rtol=1e-1), \
            "Pallas kernel mismatch vs f32 reference"

    print("KERNEL_OK")
</pallas_src>

<mosaic_0001>
module attributes {stable_mosaic.version = 11 : i64} {
  func.func @_siamese_kernel(%arg0: i32, %arg1: memref<128x128xbf16, #tpu.memory_space<vmem>>, %arg2: memref<128x128xbf16, #tpu.memory_space<vmem>>, %arg3: memref<128x128xbf16, #tpu.memory_space<vmem>>, %arg4: memref<16x128xbf16, #tpu.memory_space<vmem>>, %arg5: memref<128x128xbf16, #tpu.memory_space<vmem>>, %arg6: memref<1x128xf32, #tpu.memory_space<vmem>>, %arg7: memref<128x128xbf16, #tpu.memory_space<vmem>>, %arg8: memref<1x128xf32, #tpu.memory_space<vmem>>, %arg9: memref<128x128xbf16, #tpu.memory_space<vmem>>, %arg10: memref<1x128xf32, #tpu.memory_space<vmem>>, %arg11: memref<128x128xbf16, #tpu.memory_space<vmem>>, %arg12: memref<1x128xf32, #tpu.memory_space<vmem>>, %arg13: memref<128x128xbf16, #tpu.memory_space<vmem>>, %arg14: memref<1x128xf32, #tpu.memory_space<vmem>>, %arg15: memref<16x128xf32, #tpu.memory_space<vmem>>) attributes {dimension_semantics = [#tpu.dimension_semantics<parallel>], iteration_bounds = array<i64: 2>, scalar_prefetch = 0 : i64, scratch_operands = 0 : i64, tpu.core_type = #tpu.core_type<tc>, window_params = [{transform_indices = @transform_0, window_bounds = array<i64: 128, 128>}, {transform_indices = @transform_1, window_bounds = array<i64: 128, 128>}, {transform_indices = @transform_2, window_bounds = array<i64: 128, 128>}, {pipeline_mode = #tpu.pipeline_mode<synchronous>, transform_indices = @transform_3, window_bounds = array<i64: 16, 128>}, {pipeline_mode = #tpu.pipeline_mode<synchronous>, transform_indices = @transform_4, window_bounds = array<i64: 128, 128>}, {pipeline_mode = #tpu.pipeline_mode<synchronous>, transform_indices = @transform_5, window_bounds = array<i64: 1, 128>}, {pipeline_mode = #tpu.pipeline_mode<synchronous>, transform_indices = @transform_6, window_bounds = array<i64: 128, 128>}, {pipeline_mode = #tpu.pipeline_mode<synchronous>, transform_indices = @transform_7, window_bounds = array<i64: 1, 128>}, {pipeline_mode = #tpu.pipeline_mode<synchronous>, transform_indices = @transform_8, window_bounds = array<i64: 128, 128>}, {pipeline_mode = #tpu.pipeline_mode<synchronous>, transform_indices = @transform_9, window_bounds = array<i64: 1, 128>}, {pipeline_mode = #tpu.pipeline_mode<synchronous>, transform_indices = @transform_10, window_bounds = array<i64: 128, 128>}, {pipeline_mode = #tpu.pipeline_mode<synchronous>, transform_indices = @transform_11, window_bounds = array<i64: 1, 128>}, {pipeline_mode = #tpu.pipeline_mode<synchronous>, transform_indices = @transform_12, window_bounds = array<i64: 128, 128>}, {pipeline_mode = #tpu.pipeline_mode<synchronous>, transform_indices = @transform_13, window_bounds = array<i64: 1, 128>}, {transform_indices = @transform_14, window_bounds = array<i64: 16, 128>}]} {
    %c0 = arith.constant 0 : index
    %c0_0 = arith.constant 0 : index
    %0 = vector.load %arg1[%c0, %c0_0] : memref<128x128xbf16, #tpu.memory_space<vmem>>, vector<128x128xbf16>
    %c0_1 = arith.constant 0 : index
    %c0_2 = arith.constant 0 : index
    %1 = vector.load %arg2[%c0_1, %c0_2] : memref<128x128xbf16, #tpu.memory_space<vmem>>, vector<128x128xbf16>
    %c0_3 = arith.constant 0 : index
    %c0_4 = arith.constant 0 : index
    %2 = vector.load %arg3[%c0_3, %c0_4] : memref<128x128xbf16, #tpu.memory_space<vmem>>, vector<128x128xbf16>
    %c0_5 = arith.constant 0 : index
    %c0_6 = arith.constant 0 : index
    %3 = vector.load %arg4[%c0_5, %c0_6] : memref<16x128xbf16, #tpu.memory_space<vmem>>, vector<16x128xbf16>
    %c0_7 = arith.constant 0 : index
    %c0_8 = arith.constant 0 : index
    %4 = vector.load %arg5[%c0_7, %c0_8] : memref<128x128xbf16, #tpu.memory_space<vmem>>, vector<128x128xbf16>
    %c0_9 = arith.constant 0 : index
    %c0_10 = arith.constant 0 : index
    %5 = vector.load %arg6[%c0_9, %c0_10] : memref<1x128xf32, #tpu.memory_space<vmem>>, vector<1x128xf32>
    %c0_11 = arith.constant 0 : index
    %c0_12 = arith.constant 0 : index
    %6 = vector.load %arg7[%c0_11, %c0_12] : memref<128x128xbf16, #tpu.memory_space<vmem>>, vector<128x128xbf16>
    %c0_13 = arith.constant 0 : index
    %c0_14 = arith.constant 0 : index
    %7 = vector.load %arg8[%c0_13, %c0_14] : memref<1x128xf32, #tpu.memory_space<vmem>>, vector<1x128xf32>
    %c0_15 = arith.constant 0 : index
    %c0_16 = arith.constant 0 : index
    %8 = vector.load %arg9[%c0_15, %c0_16] : memref<128x128xbf16, #tpu.memory_space<vmem>>, vector<128x128xbf16>
    %c0_17 = arith.constant 0 : index
    %c0_18 = arith.constant 0 : index
    %9 = vector.load %arg10[%c0_17, %c0_18] : memref<1x128xf32, #tpu.memory_space<vmem>>, vector<1x128xf32>
    %c0_19 = arith.constant 0 : index
    %c0_20 = arith.constant 0 : index
    %10 = vector.load %arg11[%c0_19, %c0_20] : memref<128x128xbf16, #tpu.memory_space<vmem>>, vector<128x128xbf16>
    %c0_21 = arith.constant 0 : index
    %c0_22 = arith.constant 0 : index
    %11 = vector.load %arg12[%c0_21, %c0_22] : memref<1x128xf32, #tpu.memory_space<vmem>>, vector<1x128xf32>
    %c0_23 = arith.constant 0 : index
    %c0_24 = arith.constant 0 : index
    %12 = vector.load %arg13[%c0_23, %c0_24] : memref<128x128xbf16, #tpu.memory_space<vmem>>, vector<128x128xbf16>
    %c0_25 = arith.constant 0 : index
    %c0_26 = arith.constant 0 : index
    %13 = vector.load %arg14[%c0_25, %c0_26] : memref<1x128xf32, #tpu.memory_space<vmem>>, vector<1x128xf32>
    %cst = arith.constant dense<0.000000e+00> : vector<128x128xf32>
    %14 = tpu.matmul %0, %4, %cst {dimension_numbers = #tpu.dot_dimension_numbers<[1], [0], [0], [1], [0, 0, 1, 1], [], []>} : vector<128x128xbf16>, vector<128x128xbf16>, vector<128x128xf32> -> vector<128x128xf32>
    %15 = vector.broadcast %5 : vector<1x128xf32> to vector<128x128xf32>
    %16 = arith.addf %14, %15 : vector<128x128xf32>
    %cst_27 = arith.constant dense<0.000000e+00> : vector<128x128xf32>
    %17 = tpu.matmul %1, %2, %cst_27 {dimension_numbers = #tpu.dot_dimension_numbers<[1], [0], [0], [1], [0, 0, 1, 1], [], []>} : vector<128x128xbf16>, vector<128x128xbf16>, vector<128x128xf32> -> vector<128x128xf32>
    %18 = arith.truncf %17 : vector<128x128xf32> to vector<128x128xbf16>
    %cst_28 = arith.constant dense<0.000000e+00> : vector<128x128xf32>
    %19 = tpu.matmul %18, %6, %cst_28 {dimension_numbers = #tpu.dot_dimension_numbers<[1], [0], [0], [1], [0, 0, 1, 1], [], []>} : vector<128x128xbf16>, vector<128x128xbf16>, vector<128x128xf32> -> vector<128x128xf32>
    %20 = vector.broadcast %7 : vector<1x128xf32> to vector<128x128xf32>
    %21 = arith.addf %19, %20 : vector<128x128xf32>
    %cst_29 = arith.constant 0.000000e+00 : f32
    %22 = vector.broadcast %cst_29 : f32 to vector<128x128xf32>
    %23 = arith.maximumf %21, %22 : vector<128x128xf32>
    %24 = arith.truncf %23 : vector<128x128xf32> to vector<128x128xbf16>
    %cst_30 = arith.constant dense<0.000000e+00> : vector<128x128xf32>
    %25 = tpu.matmul %24, %8, %cst_30 {dimension_numbers = #tpu.dot_dimension_numbers<[1], [0], [0], [1], [0, 0, 1, 1], [], []>} : vector<128x128xbf16>, vector<128x128xbf16>, vector<128x128xf32> -> vector<128x128xf32>
    %26 = vector.broadcast %9 : vector<1x128xf32> to vector<128x128xf32>
    %27 = arith.addf %25, %26 : vector<128x128xf32>
    %cst_31 = arith.constant 0.000000e+00 : f32
    %28 = vector.broadcast %cst_31 : f32 to vector<128x128xf32>
    %29 = arith.maximumf %27, %28 : vector<128x128xf32>
    %30 = arith.truncf %29 : vector<128x128xf32> to vector<128x128xbf16>
    %cst_32 = arith.constant dense<0.000000e+00> : vector<128x128xf32>
    %31 = tpu.matmul %30, %10, %cst_32 {dimension_numbers = #tpu.dot_dimension_numbers<[1], [0], [0], [1], [0, 0, 1, 1], [], []>} : vector<128x128xbf16>, vector<128x128xbf16>, vector<128x128xf32> -> vector<128x128xf32>
    %32 = vector.broadcast %11 : vector<1x128xf32> to vector<128x128xf32>
    %33 = arith.addf %31, %32 : vector<128x128xf32>
    %34 = math.tanh %33 : vector<128x128xf32>
    %35 = arith.addf %16, %34 : vector<128x128xf32>
    %cst_33 = arith.constant 0.000000e+00 : f32
    %36 = vector.broadcast %cst_33 : f32 to vector<128x128xf32>
    %37 = arith.maximumf %35, %36 : vector<128x128xf32>
    %38 = arith.truncf %37 : vector<128x128xf32> to vector<128x128xbf16>
    %cst_34 = arith.constant dense<0.000000e+00> : vector<128x128xf32>
    %39 = tpu.matmul %1, %38, %cst_34 {dimension_numbers = #tpu.dot_dimension_numbers<[1], [0], [0], [1], [0, 0, 1, 1], [], []>} : vector<128x128xbf16>, vector<128x128xbf16>, vector<128x128xf32> -> vector<128x128xf32>
    %40 = arith.truncf %39 : vector<128x128xf32> to vector<128x128xbf16>
    %cst_35 = arith.constant dense<0.000000e+00> : vector<128x128xf32>
    %41 = tpu.matmul %40, %6, %cst_35 {dimension_numbers = #tpu.dot_dimension_numbers<[1], [0], [0], [1], [0, 0, 1, 1], [], []>} : vector<128x128xbf16>, vector<128x128xbf16>, vector<128x128xf32> -> vector<128x128xf32>
    %42 = vector.broadcast %7 : vector<1x128xf32> to vector<128x128xf32>
    %43 = arith.addf %41, %42 : vector<128x128xf32>
    %cst_36 = arith.constant 0.000000e+00 : f32
    %44 = vector.broadcast %cst_36 : f32 to vector<128x128xf32>
    %45 = arith.maximumf %43, %44 : vector<128x128xf32>
    %46 = arith.truncf %45 : vector<128x128xf32> to vector<128x128xbf16>
    %cst_37 = arith.constant dense<0.000000e+00> : vector<128x128xf32>
    %47 = tpu.matmul %46, %8, %cst_37 {dimension_numbers = #tpu.dot_dimension_numbers<[1], [0], [0], [1], [0, 0, 1, 1], [], []>} : vector<128x128xbf16>, vector<128x128xbf16>, vector<128x128xf32> -> vector<128x128xf32>
    %48 = vector.broadcast %9 : vector<1x128xf32> to vector<128x128xf32>
    %49 = arith.addf %47, %48 : vector<128x128xf32>
    %cst_38 = arith.constant 0.000000e+00 : f32
    %50 = vector.broadcast %cst_38 : f32 to vector<128x128xf32>
    %51 = arith.maximumf %49, %50 : vector<128x128xf32>
    %52 = arith.truncf %51 : vector<128x128xf32> to vector<128x128xbf16>
    %cst_39 = arith.constant dense<0.000000e+00> : vector<128x128xf32>
    %53 = tpu.matmul %52, %10, %cst_39 {dimension_numbers = #tpu.dot_dimension_numbers<[1], [0], [0], [1], [0, 0, 1, 1], [], []>} : vector<128x128xbf16>, vector<128x128xbf16>, vector<128x128xf32> -> vector<128x128xf32>
    %54 = vector.broadcast %11 : vector<1x128xf32> to vector<128x128xf32>
    %55 = arith.addf %53, %54 : vector<128x128xf32>
    %56 = math.tanh %55 : vector<128x128xf32>
    %57 = arith.addf %16, %56 : vector<128x128xf32>
    %cst_40 = arith.constant 0.000000e+00 : f32
    %58 = vector.broadcast %cst_40 : f32 to vector<128x128xf32>
    %59 = arith.maximumf %57, %58 : vector<128x128xf32>
    %60 = arith.truncf %59 : vector<128x128xf32> to vector<128x128xbf16>
    %cst_41 = arith.constant dense<0.000000e+00> : vector<128x128xf32>
    %61 = tpu.matmul %1, %60, %cst_41 {dimension_numbers = #tpu.dot_dimension_numbers<[1], [0], [0], [1], [0, 0, 1, 1], [], []>} : vector<128x128xbf16>, vector<128x128xbf16>, vector<128x128xf32> -> vector<128x128xf32>
    %62 = arith.truncf %61 : vector<128x128xf32> to vector<128x128xbf16>
    %cst_42 = arith.constant dense<0.000000e+00> : vector<128x128xf32>
    %63 = tpu.matmul %62, %6, %cst_42 {dimension_numbers = #tpu.dot_dimension_numbers<[1], [0], [0], [1], [0, 0, 1, 1], [], []>} : vector<128x128xbf16>, vector<128x128xbf16>, vector<128x128xf32> -> vector<128x128xf32>
    %64 = vector.broadcast %7 : vector<1x128xf32> to vector<128x128xf32>
    %65 = arith.addf %63, %64 : vector<128x128xf32>
    %cst_43 = arith.constant 0.000000e+00 : f32
    %66 = vector.broadcast %cst_43 : f32 to vector<128x128xf32>
    %67 = arith.maximumf %65, %66 : vector<128x128xf32>
    %68 = arith.truncf %67 : vector<128x128xf32> to vector<128x128xbf16>
    %cst_44 = arith.constant dense<0.000000e+00> : vector<128x128xf32>
    %69 = tpu.matmul %68, %8, %cst_44 {dimension_numbers = #tpu.dot_dimension_numbers<[1], [0], [0], [1], [0, 0, 1, 1], [], []>} : vector<128x128xbf16>, vector<128x128xbf16>, vector<128x128xf32> -> vector<128x128xf32>
    %70 = vector.broadcast %9 : vector<1x128xf32> to vector<128x128xf32>
    %71 = arith.addf %69, %70 : vector<128x128xf32>
    %cst_45 = arith.constant 0.000000e+00 : f32
    %72 = vector.broadcast %cst_45 : f32 to vector<128x128xf32>
    %73 = arith.maximumf %71, %72 : vector<128x128xf32>
    %74 = arith.truncf %73 : vector<128x128xf32> to vector<128x128xbf16>
    %cst_46 = arith.constant dense<0.000000e+00> : vector<128x128xf32>
    %75 = tpu.matmul %74, %10, %cst_46 {dimension_numbers = #tpu.dot_dimension_numbers<[1], [0], [0], [1], [0, 0, 1, 1], [], []>} : vector<128x128xbf16>, vector<128x128xbf16>, vector<128x128xf32> -> vector<128x128xf32>
    %76 = vector.broadcast %11 : vector<1x128xf32> to vector<128x128xf32>
    %77 = arith.addf %75, %76 : vector<128x128xf32>
    %78 = math.tanh %77 : vector<128x128xf32>
    %79 = arith.addf %16, %78 : vector<128x128xf32>
    %cst_47 = arith.constant 0.000000e+00 : f32
    %80 = vector.broadcast %cst_47 : f32 to vector<128x128xf32>
    %81 = arith.maximumf %79, %80 : vector<128x128xf32>
    %82 = arith.truncf %81 : vector<128x128xf32> to vector<128x128xbf16>
    %cst_48 = arith.constant dense<0.000000e+00> : vector<128x128xf32>
    %83 = tpu.matmul %1, %82, %cst_48 {dimension_numbers = #tpu.dot_dimension_numbers<[1], [0], [0], [1], [0, 0, 1, 1], [], []>} : vector<128x128xbf16>, vector<128x128xbf16>, vector<128x128xf32> -> vector<128x128xf32>
    %84 = arith.truncf %83 : vector<128x128xf32> to vector<128x128xbf16>
    %cst_49 = arith.constant dense<0.000000e+00> : vector<128x128xf32>
    %85 = tpu.matmul %84, %6, %cst_49 {dimension_numbers = #tpu.dot_dimension_numbers<[1], [0], [0], [1], [0, 0, 1, 1], [], []>} : vector<128x128xbf16>, vector<128x128xbf16>, vector<128x128xf32> -> vector<128x128xf32>
    %86 = vector.broadcast %7 : vector<1x128xf32> to vector<128x128xf32>
    %87 = arith.addf %85, %86 : vector<128x128xf32>
    %cst_50 = arith.constant 0.000000e+00 : f32
    %88 = vector.broadcast %cst_50 : f32 to vector<128x128xf32>
    %89 = arith.maximumf %87, %88 : vector<128x128xf32>
    %90 = arith.truncf %89 : vector<128x128xf32> to vector<128x128xbf16>
    %cst_51 = arith.constant dense<0.000000e+00> : vector<128x128xf32>
    %91 = tpu.matmul %90, %8, %cst_51 {dimension_numbers = #tpu.dot_dimension_numbers<[1], [0], [0], [1], [0, 0, 1, 1], [], []>} : vector<128x128xbf16>, vector<128x128xbf16>, vector<128x128xf32> -> vector<128x128xf32>
    %92 = vector.broadcast %9 : vector<1x128xf32> to vector<128x128xf32>
    %93 = arith.addf %91, %92 : vector<128x128xf32>
    %cst_52 = arith.constant 0.000000e+00 : f32
    %94 = vector.broadcast %cst_52 : f32 to vector<128x128xf32>
    %95 = arith.maximumf %93, %94 : vector<128x128xf32>
    %96 = arith.truncf %95 : vector<128x128xf32> to vector<128x128xbf16>
    %cst_53 = arith.constant dense<0.000000e+00> : vector<128x128xf32>
    %97 = tpu.matmul %96, %10, %cst_53 {dimension_numbers = #tpu.dot_dimension_numbers<[1], [0], [0], [1], [0, 0, 1, 1], [], []>} : vector<128x128xbf16>, vector<128x128xbf16>, vector<128x128xf32> -> vector<128x128xf32>
    %98 = vector.broadcast %11 : vector<1x128xf32> to vector<128x128xf32>
    %99 = arith.addf %97, %98 : vector<128x128xf32>
    %100 = math.tanh %99 : vector<128x128xf32>
    %101 = arith.addf %16, %100 : vector<128x128xf32>
    %cst_54 = arith.constant 0.000000e+00 : f32
    %102 = vector.broadcast %cst_54 : f32 to vector<128x128xf32>
    %103 = arith.maximumf %101, %102 : vector<128x128xf32>
    %104 = arith.truncf %103 : vector<128x128xf32> to vector<128x128xbf16>
    %cst_55 = arith.constant dense<0.000000e+00> : vector<16x128xf32>
    %105 = tpu.matmul %3, %104, %cst_55 {dimension_numbers = #tpu.dot_dimension_numbers<[1], [0], [0], [1], [0, 0, 1, 1], [], []>} : vector<16x128xbf16>, vector<128x128xbf16>, vector<16x128xf32> -> vector<16x128xf32>
    %106 = arith.truncf %105 : vector<16x128xf32> to vector<16x128xbf16>
    %cst_56 = arith.constant dense<0.000000e+00> : vector<16x128xf32>
    %107 = tpu.matmul %106, %12, %cst_56 {dimension_numbers = #tpu.dot_dimension_numbers<[1], [0], [0], [1], [0, 0, 1, 1], [], []>} : vector<16x128xbf16>, vector<128x128xbf16>, vector<16x128xf32> -> vector<16x128xf32>
    %108 = vector.broadcast %13 : vector<1x128xf32> to vector<16x128xf32>
    %109 = arith.addf %107, %108 : vector<16x128xf32>
    %c0_57 = arith.constant 0 : index
    %c0_58 = arith.constant 0 : index
    %110 = vector.load %arg15[%c0_57, %c0_58] : memref<16x128xf32, #tpu.memory_space<vmem>>, vector<16x128xf32>
    tpu.vector_store %arg15[%c0_57, %c0_58], %109 {strides = array<i32>} : memref<16x128xf32, #tpu.memory_space<vmem>>, vector<16x128xf32>,
    return
  }
  func.func @transform_0(%arg0: i32) -> (i32, i32) {
    %c0_i32 = arith.constant 0 : i32
    %c0_i32_0 = arith.constant 0 : i32
    return %arg0, %c0_i32 : i32, i32
  }
  func.func @transform_1(%arg0: i32) -> (i32, i32) {
    %c0_i32 = arith.constant 0 : i32
    %c0_i32_0 = arith.constant 0 : i32
    return %arg0, %c0_i32 : i32, i32
  }
  func.func @transform_2(%arg0: i32) -> (i32, i32) {
    %c0_i32 = arith.constant 0 : i32
    %c0_i32_0 = arith.constant 0 : i32
    return %arg0, %c0_i32 : i32, i32
  }
  func.func @transform_3(%arg0: i32) -> (i32, i32) {
    %c0_i32 = arith.constant 0 : i32
    %c0_i32_0 = arith.constant 0 : i32
    %c0_i32_1 = arith.constant 0 : i32
    return %c0_i32, %c0_i32_0 : i32, i32
  }
  func.func @transform_4(%arg0: i32) -> (i32, i32) {
    %c0_i32 = arith.constant 0 : i32
    %c0_i32_0 = arith.constant 0 : i32
    %c0_i32_1 = arith.constant 0 : i32
    return %c0_i32, %c0_i32_0 : i32, i32
  }
  func.func @transform_5(%arg0: i32) -> (i32, i32) {
    %c0_i32 = arith.constant 0 : i32
    %c0_i32_0 = arith.constant 0 : i32
    %c0_i32_1 = arith.constant 0 : i32
    return %c0_i32, %c0_i32_0 : i32, i32
  }
  func.func @transform_6(%arg0: i32) -> (i32, i32) {
    %c0_i32 = arith.constant 0 : i32
    %c0_i32_0 = arith.constant 0 : i32
    %c0_i32_1 = arith.constant 0 : i32
    return %c0_i32, %c0_i32_0 : i32, i32
  }
  func.func @transform_7(%arg0: i32) -> (i32, i32) {
    %c0_i32 = arith.constant 0 : i32
    %c0_i32_0 = arith.constant 0 : i32
    %c0_i32_1 = arith.constant 0 : i32
    return %c0_i32, %c0_i32_0 : i32, i32
  }
  func.func @transform_8(%arg0: i32) -> (i32, i32) {
    %c0_i32 = arith.constant 0 : i32
    %c0_i32_0 = arith.constant 0 : i32
    %c0_i32_1 = arith.constant 0 : i32
    return %c0_i32, %c0_i32_0 : i32, i32
  }
  func.func @transform_9(%arg0: i32) -> (i32, i32) {
    %c0_i32 = arith.constant 0 : i32
    %c0_i32_0 = arith.constant 0 : i32
    %c0_i32_1 = arith.constant 0 : i32
    return %c0_i32, %c0_i32_0 : i32, i32
  }
  func.func @transform_10(%arg0: i32) -> (i32, i32) {
    %c0_i32 = arith.constant 0 : i32
    %c0_i32_0 = arith.constant 0 : i32
    %c0_i32_1 = arith.constant 0 : i32
    return %c0_i32, %c0_i32_0 : i32, i32
  }
  func.func @transform_11(%arg0: i32) -> (i32, i32) {
    %c0_i32 = arith.constant 0 : i32
    %c0_i32_0 = arith.constant 0 : i32
    %c0_i32_1 = arith.constant 0 : i32
    return %c0_i32, %c0_i32_0 : i32, i32
  }
  func.func @transform_12(%arg0: i32) -> (i32, i32) {
    %c0_i32 = arith.constant 0 : i32
    %c0_i32_0 = arith.constant 0 : i32
    %c0_i32_1 = arith.constant 0 : i32
    return %c0_i32, %c0_i32_0 : i32, i32
  }
  func.func @transform_13(%arg0: i32) -> (i32, i32) {
    %c0_i32 = arith.constant 0 : i32
    %c0_i32_0 = arith.constant 0 : i32
    %c0_i32_1 = arith.constant 0 : i32
    return %c0_i32, %c0_i32_0 : i32, i32
  }
  func.func @transform_14(%arg0: i32) -> (i32, i32) {
    %c0_i32 = arith.constant 0 : i32
    %c0_i32_0 = arith.constant 0 : i32
    return %arg0, %c0_i32 : i32, i32
  }
}

</mosaic_0001>

<bundles_post_ra>
// kernel: tpu_custom_call.1
= control target key start
LH: loop header
LB: loop body
LE: loop exit
PB: predicated region body
PF: predicated region fallthrough
CT: control target
= control target key end

     0   :  { %s6484_s0 = inlined_call_operand.hbm [shape: bf16[256,128], index: 0, kind: input, shape index: {}]   ;;  %s6485_s1 = inlined_call_operand.hbm [shape: bf16[256,128], index: 1, kind: input, shape index: {}]   ;;  %s6486_s2 = inlined_call_operand.hbm [shape: bf16[256,128], index: 2, kind: input, shape index: {}]   ;;  %s6487_s3 = inlined_call_operand.vmem [shape: bf16[16,128], index: 3, kind: input, shape index: {}]   ;;  %s6488_s4 = inlined_call_operand.hbm [shape: bf16[128,128], index: 4, kind: input, shape index: {}]   ;;  %s6489_s5 = inlined_call_operand.vmem [shape: f32[1,128], index: 5, kind: input, shape index: {}]   ;;  %s6490_s6 = inlined_call_operand.hbm [shape: bf16[128,128], index: 6, kind: input, shape index: {}]   ;;  %s6491_s7 = inlined_call_operand.vmem [shape: f32[1,128], index: 7, kind: input, shape index: {}]   ;;  %s6492_s8 = inlined_call_operand.hbm [shape: bf16[128,128], index: 8, kind: input, shape index: {}]   ;;  %s6493_s9 = inlined_call_operand.vmem [shape: f32[1,128], index: 9, kind: input, shape index: {}]   ;;  %s6494_s10 = inlined_call_operand.hbm [shape: bf16[128,128], index: 10, kind: input, shape index: {}]   ;;  %s6495_s11 = inlined_call_operand.vmem [shape: f32[1,128], index: 11, kind: input, shape index: {}]   ;;  %s6496_s12 = inlined_call_operand.hbm [shape: bf16[128,128], index: 12, kind: input, shape index: {}]   ;;  %s6497_s13 = inlined_call_operand.vmem [shape: f32[1,128], index: 13, kind: input, shape index: {}]   ;;  %s6498_s14 = inlined_call_operand.hbm [shape: f32[32,128], index: 14, kind: output, shape index: {}]  }
   0x1   :  { %6535 = sst [smem:[#allocation32_spill]] %s6485_s1 }
   0x2   :  { %6536 = sst [smem:[#allocation33_spill]] %s6487_s3 }
   0x3   :  { %6537 = sst [smem:[#allocation34_spill]] %s6488_s4 }
   0x4   :  { %6538 = sst [smem:[#allocation35_spill]] %s6489_s5 }
   0x5   :  { %6539 = sst [smem:[#allocation36_spill]] %s6491_s7 }
   0x6   :  { %6540 = sst [smem:[#allocation37_spill]] %s6492_s8 }
   0x7   :  { %6541 = sst [smem:[#allocation38_spill]] %s6493_s9 }
   0x8   :  { %6542 = sst [smem:[#allocation39_spill]] %s6495_s11 }
   0x9   :  { %6543 = sst [smem:[#allocation40_spill]] %s6497_s13 }
   0xa   :  { %6544 = sst [smem:[#allocation41_spill]] %s6498_s14 }
   0xb   :  { %19 = vsyncpa [#allocation3], 0 }
   0xc   :  { %21 = vsyncpa [#allocation3 + $0x1], 0 }
   0xd   :  { %22 = vsyncpa [#allocation6], 0 }
   0xe   :  { %24 = vsyncpa [#allocation6 + $0x1], 0 }
   0xf   :  { %25 = vsyncpa [#allocation9], 0 }
  0x10   :  { %26 = vsyncpa [#allocation12], 0 }
  0x11   :  { %27 = vsyncpa [#allocation15], 0 }
  0x12   :  { %28 = vsyncpa [#allocation4], 0 }
  0x13   :  { %30 = vsyncpa [#allocation4 + $0x1], 0  ;;  %s5283_s29 = smov 0   ;;  %s5285_s30 = smov 0  }
  0x14   :  { %s5287_s15 = smov 0   ;;  %s5289_s16 = smov 0  }
  0x15 LB: > { %6545 = sst [smem:[#allocation23_spill]] %s5179_s29  ;;  %s5193_s17 = smov [#allocation8]   ;;  %s5191_s16 = sphi %s5289_s16, %s6600_s16   ;;  %s5187_s15 = sphi %s5287_s15, %s6604_s15   ;;  %s5183_s30 = sphi %s5285_s30, %s6603_s30   ;;  %s5179_s29 = sphi %s5283_s29, %s6602_s29  }
  0x16   : > { %6546 = sst [smem:[#allocation24_spill]] %s5191_s16  ;;  %s391_s18 = sshll.u32 %s5193_s17, 4  ;;  %s5310_s18 = int_to_ptr.vmem [resolvable:$true] %s391_s18 }
  0x17   : > { %s5304_s19 = sadd.s32 4294967295, %s5191_s16   ;;  %p3557_p0 = scmp.ge.s32.totalorder %s5191_s16, 1 }
  0x18   : > { %6547 = sst [smem:[#allocation25_spill]] %s5304_s19  ;;  %p6500_p1 = scmp.eq.s32.totalorder %s5304_s19, 0 }
  0x19   : > { %p363_p2 = scmp.eq.s32.totalorder %s5304_s19, 1  ;;  %p376_p3 = scmp.lt.s32.totalorder %s5191_s16, 3 }
  0x1a   : > { %s5194_s21 = smov [#allocation11]   ;;  %s6550_s4 = sld [smem:[#allocation34_spill]] }
  0x1b   : > { %p5312_p4 = pnand %p3557_p0, %p376_p3  ;;  %s423_s22 = sshll.u32 %s5194_s21, 4  ;;  %s5319_s22 = int_to_ptr.vmem [resolvable:$true] %s423_s22 }
  0x1d   : > { %s6548_s20 = scalar_select %p5312_p4, 1, 0 }
  0x1e   : > { %p4564_p6 = pneg %p5312_p4 }
  0x20   : > { %p5323_p7 = pnand %p4564_p6, %p6500_p1  ;;  %s4879_s26 = scalar_lea.hbm %s6550_s4, 1024 }
  0x21   : > { %p4880_p8 = scmp.ne.s32.totalorder %s6550_s4, %s4879_s26  ;;  %p4886_p12 = scmp.lt.u32.totalorder %s4879_s26, %s6550_s4 }
  0x22   : > { %s6549_s23 = scalar_select %p5323_p7, 1, 0 }
  0x23   : > { %p5335_p9 = pneg %p5323_p7 }
  0x25   : > { %s6551_s17 = scalar_select %p5335_p9, 1, 0 }
  0x26   : > { %p4882_p10 = pnand %p5335_p9, %p4880_p8 }
  0x28   : > { %p4883_p11 = pneg %p4882_p10 }
  0x2a   : > { %p4888_p13 = pnand %p4886_p12, %p4883_p11 }
  0x2c   : > { %4891 = shalt.err (!%p4888_p13)
}
  0x2d   : > { %s4892_s24 = scalar_lea.vmem %s5310_s18, 1024  ;;  %p4900_p5 = scmp.lt.s32.totalorder %s5310_s18, %s5310_s18 }
  0x2e   : > { %p4893_p0 = scmp.ne.s32.totalorder %s5310_s18, %s4892_s24  ;;  %p4901_p1 = scmp.lt.s32.totalorder %s4892_s24, %s4892_s24 }
  0x30   : > { %p4895_p3 = pnand %p4893_p0, %p5335_p9  ;;  %p4902_p8 = por %p4901_p1, %p4900_p5 }
  0x32   : > { %p4896_p6 = pneg %p4895_p3 }
  0x34   : > { %p4903_p10 = pnand %p4902_p8, %p4896_p6 }
  0x36   : > { %4906 = shalt.err (!%p4903_p10)
}
  0x37   : > { %s6503_s25 = smov 64   ;;  %s6505_s14 = smov 4  }
  0x38   : > { %4567 = dma.hbm_to_vmem [thread:$0]  (!%p5323_p7), %s6550_s4, 1024, %s5310_s18, [#allocation9], %s6503_s25, %s6503_s25, %s6505_s14  }
  0x39   : > { %s6552_s8 = sld [smem:[#allocation37_spill]] }
  0x3f   : > { %s4907_s24 = scalar_lea.hbm %s6552_s8, 1024 }
  0x40   : > { %p4908_p1 = scmp.ne.s32.totalorder %s6552_s8, %s4907_s24  ;;  %p4914_p12 = scmp.lt.u32.totalorder %s4907_s24, %s6552_s8 }
  0x42   : > { %p4910_p5 = pnand %p4908_p1, %p5335_p9 }
  0x44   : > { %p4911_p11 = pneg %p4910_p5 }
  0x46   : > { %p4916_p13 = pnand %p4914_p12, %p4911_p11 }
  0x48   : > { %4919 = shalt.err (!%p4916_p13)
}
  0x49   : > { %s4920_s18 = scalar_lea.vmem %s5319_s22, 1024  ;;  %p4928_p8 = scmp.lt.s32.totalorder %s5319_s22, %s5319_s22 }
  0x4a   : > { %p4921_p0 = scmp.ne.s32.totalorder %s5319_s22, %s4920_s18  ;;  %p4929_p10 = scmp.lt.s32.totalorder %s4920_s18, %s4920_s18 }
  0x4c   : > { %p4923_p3 = pnand %p4921_p0, %p5335_p9  ;;  %p4930_p1 = por %p4929_p10, %p4928_p8 }
  0x4e   : > { %p4924_p6 = pneg %p4923_p3 }
  0x50   : > { %p4931_p5 = pnand %p4930_p1, %p4924_p6 }
  0x52   : > { %4934 = shalt.err (!%p4931_p5)
}
  0x53   : > { %4573 = dma.hbm_to_vmem [thread:$0]  (!%p5323_p7), %s6552_s8, 1024, %s5319_s22, [#allocation12], %s6503_s25, %s6503_s25, %s6505_s14  }
  0x54   : > { %s3556_s11 = sadd.s32 4294967294, %s5191_s16   ;;  %s5387_s13 = sadd.s32 1, %s5191_s16  }
  0x55   : > { %6553 = sst [smem:[#allocation26_spill]] %s5387_s13  ;;  %s43_s26 = sadd.s32 1, %s5187_s15 }
  0x56   : > { %s40_s27 = ssub.s32 %s5191_s16, %s5387_s13  ;;  %p50_p11 = scmp.ne.s32.totalorder %s5187_s15, %s5183_s30 }
  0x57   : > { %p41_p12 = scmp.eq.s32.totalorder %s40_s27, 0  ;;  %p51_p13 = scmp.eq.s32.totalorder %s5191_s16, 0 }
  0x58   : > { %p56_p0 = scmp.ne.s32.totalorder %s5183_s30, %s5179_s29  ;;  %p5399_p3 = por %p363_p2, %p50_p11 }
  0x59   : > { %s5404_s21 = scalar_select %p41_p12, %s5187_s15, %s43_s26  }
  0x5a   : > { %s6554_s28 = scalar_select %p5399_p3, 1, 0 }
  0x5b   : > { %6556 = sst [smem:[#allocation28_spill]] %s5404_s21  ;;  %p52_p6 = por %p51_p13, %p50_p11 }
  0x5c   : > { %6555 = sst [smem:[#allocation27_spill]] %s6554_s28  ;;  %p6557_p8 = scmp.eq.s32.totalorder %s5304_s19, 0 }
  0x5d   : > { %p369_p1 = scmp.eq.s32.totalorder %s3556_s11, 1  ;;  %p4599_p5 = scmp.lt.s32.totalorder %s5191_s16, 2 }
  0x5e   : > { %p5408_p10 = por %p6557_p8, %p56_p0  ;;  %s6507_s24 = sand.u32 1, %s5187_s15  }
  0x5f   : > { %s5415_s18 = sshll.u32 %s5191_s16, 10  ;;  %p5417_p4 = por %p369_p1, %p56_p0 }
  0x60   : > { %s6558_s22 = scalar_select %p5408_p10, 1, 0 }
  0x61   : > { %s6559_s3 = scalar_select %p5417_p4, 1, 0 }
  0x62   : > { %s5423_s5 = sshll.u32 %s6507_s24, 6  ;;  %p5425_p2 = pnand %p4599_p5, %p52_p6 }
  0x63   : > { %6560 = sst [smem:[#allocation29_spill]] %s6559_s3  ;;  %s493_s27 = sand.u32 1, %s5191_s16  }
  0x64   : > { %s6561_s26 = scalar_select %p5425_p2, 1, 0 }
  0x65   : > { %s6562_s1 = sld [smem:[#allocation32_spill]]  ;;  %s497_s4 = scalar_lea.vmem [#allocation5], %s5423_s5 }
  0x66   : > { %s504_s8 = sshll.u32 %s497_s4, 4  ;;  %s5197_s24 = smov [#allocation10]   ;;  %s5437_s8 = int_to_ptr.vmem [resolvable:$true] %s504_s8 }
  0x67   : > { %s5439_s21 = sshll.u32 %s5197_s24, 4  ;;  %s5441_s13 = scalar_lea.sflag [#allocation6], %s493_s27  ;;  %s408_s21 = int_to_ptr.vmem [resolvable:$true] %s5439_s21 }
  0x68   : > { %p5447_p12 = pneg %p5425_p2 }
  0x6a   : > { %s6563_s25 = scalar_select %p5447_p12, 1, 0 }
  0x6b   : > { %s5434_s14 = scalar_lea.hbm %s6562_s1, %s5415_s18  ;;  %s4940_s16 = scalar_lea.hbm %s6562_s1, 2048 }
  0x6c   : > { %s4935_s3 = scalar_lea.hbm %s5434_s14, 1024  ;;  %p4941_p6 = scmp.lt.u32.totalorder %s5434_s14, %s6562_s1 }
  0x6d   : > { %p4936_p11 = scmp.ne.s32.totalorder %s5434_s14, %s4935_s3  ;;  %p4942_p8 = scmp.lt.u32.totalorder %s4940_s16, %s4935_s3 }
  0x6e   : > { %p4944_p5 = scmp.lt.u32.totalorder %s4935_s3, %s5434_s14 }
  0x6f   : > { %p4938_p13 = pnand %p5447_p12, %p4936_p11  ;;  %p4943_p1 = por %p4942_p8, %p4941_p6 }
  0x71   : > { %p4939_p0 = pneg %p4938_p13  ;;  %p4945_p4 = por %p4944_p5, %p4943_p1 }
  0x73   : > { %p4946_p3 = pnand %p4945_p4, %p4939_p0 }
  0x75   : > { %4949 = shalt.err (!%p4946_p3)
}
  0x76   : > { %s4950_s27 = scalar_lea.vmem %s5437_s8, 1024  ;;  %s5198_s11 = smov [#allocation5]  }
  0x77   : > { %p4951_p11 = scmp.ne.s32.totalorder %s5437_s8, %s4950_s27  ;;  %s4955_s4 = sshll.u32 %s5198_s11, 4  ;;  %s4956_s4 = int_to_ptr.vmem [resolvable:$false] %s4955_s4 }
  0x78   : > { %s4957_s29 = scalar_lea.vmem %s4956_s4, 2048  ;;  %p4958_p7 = scmp.lt.s32.totalorder %s5437_s8, %s4956_s4 }
  0x79   : > { %p4953_p13 = pnand %p4951_p11, %p5447_p12  ;;  %p4959_p9 = scmp.lt.s32.totalorder %s4957_s29, %s4950_s27 }
  0x7b   : > { %p4954_p10 = pneg %p4953_p13  ;;  %p4960_p6 = por %p4959_p9, %p4958_p7 }
  0x7d   : > { %p4961_p8 = pnand %p4960_p6, %p4954_p10 }
  0x7f   : > { %4964 = shalt.err (!%p4961_p8)
}
  0x80   : > { %s6564_s16 = smov 4   ;;  %s6565_s3 = smov 64  }
  0x81   : > { %4586 = dma.hbm_to_vmem [thread:$0]  (!%p5425_p2), %s5434_s14, 1024, %s5437_s8, %s5441_s13, %s6565_s3, %s6565_s3, %s6564_s16  }
  0x82   : > { %s4965_s4 = scalar_lea.hbm %s6490_s6, 1024  ;;  %p6566_p7 = scmp.ne.s32.totalorder %s6551_s17, 0 }
  0x83   : > { %p4966_p4 = scmp.ne.s32.totalorder %s6490_s6, %s4965_s4  ;;  %p4972_p10 = scmp.lt.u32.totalorder %s4965_s4, %s6490_s6 }
  0x85   : > { %p4968_p9 = pnand %p4966_p4, %p6566_p7 }
  0x87   : > { %p4969_p3 = pneg %p4968_p9 }
  0x89   : > { %p4974_p0 = pnand %p4972_p10, %p4969_p3 }
  0x8b   : > { %4977 = shalt.err (!%p4974_p0)
}
  0x8c   : > { %s4978_s9 = scalar_lea.vmem %s408_s21, 1024  ;;  %p4986_p13 = scmp.lt.s32.totalorder %s408_s21, %s408_s21 }
  0x8d   : > { %p4979_p1 = scmp.ne.s32.totalorder %s408_s21, %s4978_s9  ;;  %p4987_p6 = scmp.lt.s32.totalorder %s4978_s9, %s4978_s9 }
  0x8f   : > { %p4981_p5 = pnand %p4979_p1, %p6566_p7  ;;  %p4988_p8 = por %p4987_p6, %p4986_p13 }
  0x91   : > { %p4982_p11 = pneg %p4981_p5 }
  0x93   : > { %p4989_p2 = pnand %p4988_p8, %p4982_p11 }
  0x95   : > { %4992 = shalt.err (!%p4989_p2)
}
  0x96   : > { %p6567_p4 = scmp.ne.s32.totalorder %s6549_s23, 0  ;;  %s5199_s14 = smov [#allocation13]  }
  0x97   : > { %s439_s28 = sshll.u32 %s5199_s14, 4  ;;  %s5200_s24 = smov [#allocation14]   ;;  %s440_s28 = int_to_ptr.vmem [resolvable:$true] %s439_s28 }
  0x98   : > { %4570 = dma.hbm_to_vmem [thread:$0]  (!%p6567_p4), %s6490_s6, 1024, %s408_s21, [#allocation9], %s6565_s3, %s6565_s3, %s6564_s16  }
  0x99   : > { %s455_s11 = sshll.u32 %s5200_s24, 4  ;;  %s4993_s27 = scalar_lea.hbm %s6494_s10, 1024  ;;  %s456_s11 = int_to_ptr.vmem [resolvable:$true] %s455_s11 }
  0x9a   : > { %p4994_p2 = scmp.ne.s32.totalorder %s6494_s10, %s4993_s27  ;;  %p5000_p10 = scmp.lt.u32.totalorder %s4993_s27, %s6494_s10 }
  0x9c   : > { %p4996_p9 = pnand %p4994_p2, %p6566_p7 }
  0x9e   : > { %p4997_p3 = pneg %p4996_p9 }
  0xa0   : > { %p5002_p0 = pnand %p5000_p10, %p4997_p3 }
  0xa2   : > { %5005 = shalt.err (!%p5002_p0)
}
  0xa3   : > { %s5006_s21 = scalar_lea.vmem %s440_s28, 1024  ;;  %p5014_p13 = scmp.lt.s32.totalorder %s440_s28, %s440_s28 }
  0xa4   : > { %p5007_p1 = scmp.ne.s32.totalorder %s440_s28, %s5006_s21  ;;  %p5015_p6 = scmp.lt.s32.totalorder %s5006_s21, %s5006_s21 }
  0xa6   : > { %p5009_p5 = pnand %p5007_p1, %p6566_p7  ;;  %p5016_p8 = por %p5015_p6, %p5014_p13 }
  0xa8   : > { %p5010_p11 = pneg %p5009_p5 }
  0xaa   : > { %p5017_p12 = pnand %p5016_p8, %p5010_p11 }
  0xac   : > { %5020 = shalt.err (!%p5017_p12)
}
  0xad   : > { %4576 = dma.hbm_to_vmem [thread:$0]  (!%p6567_p4), %s6494_s10, 1024, %s440_s28, [#allocation12], %s6565_s3, %s6565_s3, %s6564_s16  }
  0xae   : > { %s5021_s24 = scalar_lea.hbm %s6496_s12, 1024 }
  0xaf   : > { %p5022_p2 = scmp.ne.s32.totalorder %s6496_s12, %s5021_s24  ;;  %p5028_p3 = scmp.lt.u32.totalorder %s5021_s24, %s6496_s12 }
  0xb1   : > { %p5024_p12 = pnand %p5022_p2, %p6566_p7 }
  0xb3   : > { %p5025_p9 = pneg %p5024_p12 }
  0xb5   : > { %p5030_p10 = pnand %p5028_p3, %p5025_p9 }
  0xb7   : > { %5033 = shalt.err (!%p5030_p10)
}
  0xb8   : > { %s5034_s1 = scalar_lea.vmem %s456_s11, 1024  ;;  %p5042_p11 = scmp.lt.s32.totalorder %s456_s11, %s456_s11 }
  0xb9   : > { %p5035_p0 = scmp.ne.s32.totalorder %s456_s11, %s5034_s1  ;;  %p5043_p13 = scmp.lt.s32.totalorder %s5034_s1, %s5034_s1 }
  0xbb   : > { %p5037_p1 = pnand %p5035_p0, %p6566_p7  ;;  %p5044_p6 = por %p5043_p13, %p5042_p11 }
  0xbd   : > { %p5038_p5 = pneg %p5037_p1 }
  0xbf   : > { %p5045_p8 = pnand %p5044_p6, %p5038_p5 }
  0xc1   : > { %5048 = shalt.err (!%p5045_p8)
}
  0xc2   : > { %4579 = dma.hbm_to_vmem [thread:$0]  (!%p6567_p4), %s6496_s12, 1024, %s456_s11, [#allocation15], %s6565_s3, %s6565_s3, %s6564_s16  }
  0xc3   : > { %s5542_s19 = scalar_lea.hbm %s6484_s0, %s5415_s18  ;;  %s476_s23 = scalar_lea.vmem [#allocation2], %s5423_s5 }
  0xc4   : > { %s483_s8 = sshll.u32 %s476_s23, 4  ;;  %s5551_s4 = scalar_lea.hbm %s6486_s2, %s5415_s18  ;;  %s5545_s8 = int_to_ptr.vmem [resolvable:$true] %s483_s8 }
  0xc5   : > { %s6568_s9 = sand.u32 1, %s5187_s15   ;;  %s5049_s27 = scalar_lea.hbm %s5542_s19, 1024 }
  0xc6   : > { %s5555_s11 = scalar_lea.sflag [#allocation3], %s6568_s9  ;;  %p5050_p7 = scmp.ne.s32.totalorder %s5542_s19, %s5049_s27 }
  0xc7   : > { %p6569_p4 = scmp.ne.s32.totalorder %s6563_s25, 0  ;;  %s5054_s28 = scalar_lea.hbm %s6484_s0, 2048 }
  0xc8   : > { %p5055_p9 = scmp.lt.u32.totalorder %s5542_s19, %s6484_s0  ;;  %p5056_p3 = scmp.lt.u32.totalorder %s5054_s28, %s5049_s27 }
  0xc9   : > { %p5052_p2 = pnand %p5050_p7, %p6569_p4  ;;  %p5058_p0 = scmp.lt.u32.totalorder %s5049_s27, %s5542_s19 }
  0xca   : > { %p5057_p10 = por %p5056_p3, %p5055_p9 }
  0xcb   : > { %p5053_p12 = pneg %p5052_p2 }
  0xcc   : > { %p5059_p1 = por %p5058_p0, %p5057_p10 }
  0xce   : > { %p5060_p5 = pnand %p5059_p1, %p5053_p12 }
  0xd0   : > { %5063 = shalt.err (!%p5060_p5)
}
  0xd1   : > { %s5064_s18 = scalar_lea.vmem %s5545_s8, 1024  ;;  %s5201_s7 = smov [#allocation2]  }
  0xd2   : > { %p5065_p11 = scmp.ne.s32.totalorder %s5545_s8, %s5064_s18  ;;  %s5069_s23 = sshll.u32 %s5201_s7, 4  ;;  %s5070_s23 = int_to_ptr.vmem [resolvable:$false] %s5069_s23 }
  0xd3   : > { %s5071_s14 = scalar_lea.vmem %s5070_s23, 2048  ;;  %p5072_p8 = scmp.lt.s32.totalorder %s5545_s8, %s5070_s23 }
  0xd4   : > { %p5067_p13 = pnand %p5065_p11, %p6569_p4  ;;  %p5073_p7 = scmp.lt.s32.totalorder %s5071_s14, %s5064_s18 }
  0xd6   : > { %p5068_p6 = pneg %p5067_p13  ;;  %p5074_p2 = por %p5073_p7, %p5072_p8 }
  0xd8   : > { %p5075_p9 = pnand %p5074_p2, %p5068_p6 }
  0xda   : > { %5078 = shalt.err (!%p5075_p9)
}
  0xdb   : > { %p6570_p12 = scmp.ne.s32.totalorder %s6561_s26, 0  ;;  %s518_s24 = scalar_lea.vmem [#allocation7], %s5423_s5 }
  0xdc   : > { %s525_s9 = sshll.u32 %s518_s24, 4  ;;  %s5079_s27 = scalar_lea.hbm %s5551_s4, 1024  ;;  %s5583_s9 = int_to_ptr.vmem [resolvable:$true] %s525_s9 }
  0xdd   : > { %4583 = dma.hbm_to_vmem [thread:$0]  (!%p6570_p12), %s5542_s19, 1024, %s5545_s8, %s5555_s11, %s6565_s3, %s6565_s3, %s6564_s16  }
  0xde   : > { %p5080_p3 = scmp.ne.s32.totalorder %s5551_s4, %s5079_s27  ;;  %s5084_s28 = scalar_lea.hbm %s6486_s2, 2048 }
  0xdf   : > { %p5085_p1 = scmp.lt.u32.totalorder %s5551_s4, %s6486_s2  ;;  %p5086_p5 = scmp.lt.u32.totalorder %s5084_s28, %s5079_s27 }
  0xe0   : > { %p5082_p10 = pnand %p5080_p3, %p6569_p4  ;;  %p5088_p13 = scmp.lt.u32.totalorder %s5079_s27, %s5551_s4 }
  0xe1   : > { %p5087_p11 = por %p5086_p5, %p5085_p1 }
  0xe2   : > { %p5083_p0 = pneg %p5082_p10 }
  0xe3   : > { %p5089_p6 = por %p5088_p13, %p5087_p11 }
  0xe5   : > { %p5090_p8 = pnand %p5089_p6, %p5083_p0 }
  0xe7   : > { %5093 = shalt.err (!%p5090_p8)
}
  0xe8   : > { %s5094_s5 = scalar_lea.vmem %s5583_s9, 1024  ;;  %s5202_s19 = smov [#allocation7]  }
  0xe9   : > { %p5095_p7 = scmp.ne.s32.totalorder %s5583_s9, %s5094_s5  ;;  %s5099_s8 = sshll.u32 %s5202_s19, 4  ;;  %s5100_s8 = int_to_ptr.vmem [resolvable:$false] %s5099_s8 }
  0xea   : > { %s5101_s11 = scalar_lea.vmem %s5100_s8, 2048  ;;  %p5102_p3 = scmp.lt.s32.totalorder %s5583_s9, %s5100_s8 }
  0xeb   : > { %p5097_p2 = pnand %p5095_p7, %p6569_p4  ;;  %p5103_p10 = scmp.lt.s32.totalorder %s5101_s11, %s5094_s5 }
  0xed   : > { %p5098_p9 = pneg %p5097_p2  ;;  %p5104_p1 = por %p5103_p10, %p5102_p3 }
  0xef   : > { %p5105_p5 = pnand %p5104_p1, %p5098_p9 }
  0xf1   : > { %5108 = shalt.err (!%p5105_p5)
}
  0xf2   : > { %4589 = dma.hbm_to_vmem [thread:$0]  (!%p6570_p12), %s5551_s4, 1024, %s5583_s9, %s5441_s13, %s6565_s3, %s6565_s3, %s6564_s16  }
  0xf3   : > { %p6571_p4 = scmp.ne.s32.totalorder %s6548_s20, 0 }
  0xf5   : > { %537 = sbr.rel (%p6571_p4) target bundleno = 4466 (0x1172), region = 76 }
  0xfc   : > { %s5613_s25 = sand.u32 1, %s5183_s30   ;;  %p6572_p0 = scmp.ne.s32.totalorder %s6558_s22, 0 }
  0xfd   : > { %s3574_s18 = sshll.u32 %s5613_s25, 6  ;;  %s540_s7 = scalar_lea.sflag [#allocation3], %s5613_s25 }
  0xfe   : > { %s5617_s23 = scalar_lea.vmem [#allocation2], %s3574_s18 }
  0xff   : > { %5154 = dma.done.wait (%p6572_p0), %s540_s7, 1024  }
 0x100   : > { %5156 = vsyncadd (%p6572_p0), %s540_s7, 4294966272  ;;  %s6573_s26 = sld [smem:[#allocation25_spill]]  ;;  %s5624_s16 = scalar_lea.vmem [#allocation5], %s3574_s18 }
 0x106   : > { %s548_s13 = sand.u32 1, %s6573_s26  }
 0x107   : > { %s549_s20 = scalar_lea.sflag [#allocation6], %s548_s13 }
 0x108   : > { %5158 = dma.done.wait (%p6572_p0), %s549_s20, 2048  }
 0x109   : > { %5160 = vsyncadd (%p6572_p0), %s549_s20, 4294965248  ;;  %s5630_s3 = scalar_lea.vmem [#allocation7], %s3574_s18  ;;  %p6574_p12 = scmp.eq.s32.totalorder %s6573_s26, 0 }
 0x10b   : > { %5162 = dma.done.wait (%p6574_p12), [#allocation9], 2048   ;;  %p6575_p11 = pmov %p6574_p12 }
 0x10d   : > { %5164 = vsyncadd (%p6575_p11), [#allocation9], 4294965248  ;;  %p6576_p13 = pmov %p6575_p11 }
 0x10e   : > { %p6577_p6 = pmov %p6575_p11 }
 0x10f   : > { %5166 = dma.done.wait (%p6576_p13), [#allocation12], 2048  }
 0x110   : > { %5168 = vsyncadd (%p6577_p6), [#allocation12], 4294965248  ;;  %p6578_p8 = pmov %p6577_p6 }
 0x111   : > { %p6579_p7 = pmov %p6577_p6 }
 0x112   : > { %5170 = dma.done.wait (%p6578_p8), [#allocation15], 1024  }
 0x113   : > { %5172 = vsyncadd (%p6579_p7), [#allocation15], 4294966272  ;;  %v4649_v0 = vld [vmem:[%s5630_s3] sm:$0xff]   ;;  %v4650_v1 = vld [vmem:[%s5630_s3 + $0x8] sm:$0xff]   ;;  %s6580_s14 = sld [smem:[#allocation36_spill]]  ;;  %s6582_s27 = sld [smem:[#allocation38_spill]] }
 0x114   : > { %3984 = vmatprep.subr.bf16.mxu1 %v4649_v0  ;;  %v4651_v2 = vld [vmem:[%s5630_s3 + $0x10] sm:$0xff]   ;;  %v4652_v3 = vld [vmem:[%s5630_s3 + $0x18] sm:$0xff]   ;;  %v5649_v4 = vld [vmem:[%s5624_s16] sm:$0xff]   ;;  %s6583_s28 = sld [smem:[#allocation39_spill]]  ;;  %s6584_s5 = sld [smem:[#allocation35_spill]]  ;;  %vm5204_vm0 = vmmov 0  }
 0x115   : > { %3985 = vmatpush3.bf16.msra.mxu1 %v4649_v0  ;;  %4000 = vmatprep.mubr.bf16.mxu1 %v5649_v4  ;;  %v4653_v5 = vld [vmem:[%s5630_s3 + $0x20] sm:$0xff]   ;;  %v4654_v6 = vld [vmem:[%s5630_s3 + $0x28] sm:$0xff]   ;;  %v4655_v9 = vld [vmem:[%s5630_s3 + $0x30] sm:$0xff]   ;;  %s6591_s24 = sld [smem:[#allocation40_spill]]  ;;  %s6592_s29 = sld [smem:[#allocation27_spill]] }
 0x116   : > { %3986 = vmatprep.subr.bf16.mxu1 %v4650_v1  ;;  %v4665_v7 = vld [vmem:[#allocation8] sm:$0xff]   ;;  %v4666_v8 = vld [vmem:[#allocation8 + $0x8] sm:$0xff]   ;;  %v4667_v10 = vld [vmem:[#allocation8 + $0x10] sm:$0xff]   ;;  %s3661_s21 = sshll.u32 %s6573_s26, 8  ;;  %s6593_s19 = sld [smem:[#allocation41_spill]] }
 0x117   : > { %3952 = vmatprep.subr.bf16.mxu0 %v4665_v7  ;;  %v4656_v11 = vld [vmem:[%s5630_s3 + $0x38] sm:$0xff]   ;;  %v4673_v13 = vld [vmem:[%s5617_s23] sm:$0xff]   ;;  %v4658_v15 = vld [vmem:[%s5624_s16 + $0x8] sm:$0xff]   ;;  %s3582_s3 = sshll.u32 %s5613_s25, 4  ;;  %s3379_s11 = scalar_lea.sflag [#allocation4], %s5613_s25 }
 0x118   : > { %3953 = vmatpush3.bf16.msra.mxu0 %v4665_v7  ;;  %v4668_v12 = vld [vmem:[#allocation8 + $0x18] sm:$0xff]   ;;  %3968 = vmatprep.mubr.bf16.mxu0 %v4673_v13  ;;  %v4669_v14 = vld [vmem:[#allocation8 + $0x20] sm:$0xff]   ;;  %v4659_v16 = vld [vmem:[%s5624_s16 + $0x10] sm:$0xff]   ;;  %s635_s9 = scalar_lea.vmem [#allocation16], %s3582_s3  ;;  %s5205_s18 = smov [#allocation16]  }
 0x119   : > { %3987 = vmatpush3.bf16.msra.mxu1 %v4650_v1  ;;  %3954 = vmatprep.subr.bf16.mxu0 %v4666_v8  ;;  %v4670_v17 = vld [vmem:[#allocation8 + $0x28] sm:$0xff]   ;;  %v5660_v18 = vld [vmem:[%s5624_s16 + $0x18] sm:$0xff]   ;;  %v4671_v19 = vld [vmem:[#allocation8 + $0x30] sm:$0xff]   ;;  %s3392_s1 = sshll.u32 %s635_s9, 4  ;;  %s5113_s7 = sshll.u32 %s5205_s18, 4  ;;  %s6435_s1 = int_to_ptr.vmem [resolvable:$true] %s3392_s1  ;;  %s5114_s7 = int_to_ptr.vmem [resolvable:$false] %s5113_s7 }
 0x11a   : > { %3988 = vmatprep.subr.bf16.mxu1 %v4651_v2  ;;  %v5663_v20 = vld [vmem:[%s5624_s16 + $0x20] sm:$0xff]   ;;  %v4672_v21 = vld [vmem:[#allocation8 + $0x38] sm:$0xff]   ;;  %v5670_v23 = vld [vmem:[%s5624_s16 + $0x28] sm:$0xff]   ;;  %s5109_s26 = scalar_lea.vmem %s6435_s1, 256  ;;  %p5116_p1 = scmp.lt.s32.totalorder %s6435_s1, %s5114_s7 }
 0x11b   : > { %v5666_v22 = vld [vmem:[#allocation10] sm:$0xff]   ;;  %v4674_v24 = vld [vmem:[%s5617_s23 + $0x8] sm:$0xff]   ;;  %v5674_v25 = vld [vmem:[%s5624_s16 + $0x30] sm:$0xff]   ;;  %p5110_p2 = scmp.ne.s32.totalorder %s6435_s1, %s5109_s26  ;;  %p6594_p9 = scmp.ne.s32.totalorder %s6592_s29, 0 }
 0x11c   : > { %3955 = vmatpush3.bf16.msra.mxu0 %v4666_v8  ;;  %v4676_v26 = vld [vmem:[%s5617_s23 + $0x10] sm:$0xff]   ;;  %v5677_v27 = vld [vmem:[#allocation10 + $0x8] sm:$0xff]   ;;  %v5686_v29 = vld [vmem:[%s5624_s16 + $0x38] sm:$0xff]   ;;  %s6440_s8 = scalar_lea.hbm %s6593_s19, %s3661_s21 }
 0x11d   : > { %3989 = vmatpush3.bf16.msra.mxu1 %v4651_v2  ;;  %3956 = vmatprep.subr.bf16.mxu0 %v4667_v10  ;;  %v5681_v28 = vld [vmem:[#allocation10 + $0x10] sm:$0xff]   ;;  %v4678_v30 = vld [vmem:[%s5617_s23 + $0x18] sm:$0xff]   ;;  %v4680_v31 = vld [vmem:[%s5617_s23 + $0x20] sm:$0xff]   ;;  %p5111_p3 = pnand %p5110_p2, %p6594_p9 }
 0x11e   : > { %3990 = vmatprep.subr.bf16.mxu1 %v4652_v3  ;;  %v5693_v32 = vld [vmem:[#allocation10 + $0x18] sm:$0xff]   ;;  %v5698_v33 = vld [vmem:[#allocation10 + $0x20] sm:$0xff]   ;;  %v4682_v34 = vld [vmem:[%s5617_s23 + $0x28] sm:$0xff]  }
 0x11f   : > { %v4684_v35 = vld [vmem:[%s5617_s23 + $0x30] sm:$0xff]   ;;  %v5704_v36 = vld [vmem:[#allocation10 + $0x28] sm:$0xff]   ;;  %v4686_v38 = vld [vmem:[%s5617_s23 + $0x38] sm:$0xff]   ;;  %p5112_p10 = pneg %p5111_p3  ;;  %s5115_s23 = scalar_lea.vmem %s5114_s7, 512 }
 0x120   : > { %3957 = vmatpush3.bf16.msra.mxu0 %v4667_v10  ;;  %v5708_v37 = vld [vmem:[#allocation10 + $0x30] sm:$0xff]   ;;  %v5714_v39 = vld [vmem:[#allocation10 + $0x38] sm:$0xff]   ;;  %v5718_v40 = vld [vmem:[#allocation11] sm:$0xff]   ;;  %p5117_p5 = scmp.lt.s32.totalorder %s5115_s23, %s5109_s26 }
 0x121   : > { %3991 = vmatpush3.bf16.msra.mxu1 %v4652_v3  ;;  %3958 = vmatprep.subr.bf16.mxu0 %v4668_v12  ;;  %v5722_v41 = vld [vmem:[#allocation11 + $0x8] sm:$0xff]   ;;  %v5724_v42 = vld [vmem:[#allocation11 + $0x10] sm:$0xff]   ;;  %v5730_v43 = vld [vmem:[#allocation11 + $0x18] sm:$0xff]  }
 0x122   : > { %3992 = vmatprep.subr.bf16.mxu1 %v4653_v5  ;;  %v5732_v44 = vld [vmem:[#allocation11 + $0x20] sm:$0xff]   ;;  %v5737_v45 = vld [vmem:[#allocation11 + $0x28] sm:$0xff]   ;;  %p5118_p4 = por %p5117_p5, %p5116_p1 }
 0x124   : > { %3959 = vmatpush3.bf16.msra.mxu0 %v4668_v12  ;;  %p5119_p0 = pnand %p5118_p4, %p5112_p10 }
 0x125   : > { %3993 = vmatpush3.bf16.msra.mxu1 %v4653_v5  ;;  %3960 = vmatprep.subr.bf16.mxu0 %v4669_v14 }
 0x126   : > { %3994 = vmatprep.subr.bf16.mxu1 %v4654_v6 }
 0x128   : > { %3961 = vmatpush3.bf16.msra.mxu0 %v4669_v14 }
 0x129   : > { %3995 = vmatpush3.bf16.msra.mxu1 %v4654_v6  ;;  %3962 = vmatprep.subr.bf16.mxu0 %v4670_v17 }
 0x12a   : > { %3996 = vmatprep.subr.bf16.mxu1 %v4655_v9 }
 0x12c   : > { %3963 = vmatpush3.bf16.msra.mxu0 %v4670_v17 }
 0x12d   : > { %3997 = vmatpush3.bf16.msra.mxu1 %v4655_v9  ;;  %3964 = vmatprep.subr.bf16.mxu0 %v4671_v19 }
 0x12e   : > { %3998 = vmatprep.subr.bf16.mxu1 %v4656_v11 }
 0x130   : > { %3965 = vmatpush3.bf16.msra.mxu0 %v4671_v19 }
 0x131   : > { %3999 = vmatpush3.bf16.msra.mxu1 %v4656_v11  ;;  %3966 = vmatprep.subr.bf16.mxu0 %v4672_v21 }
 0x132   : > { %4048 = vmatprep.subr.bf16.mxu1 %v5718_v40 }
 0x134   : > { %4001 = vmatmul.mubr.bf16.vlgmr.msra.gmra.mrb[0].mxu1 %v4658_v15  ;;  %3967 = vmatpush3.bf16.msra.mxu0 %v4672_v21 }
 0x135   : > { %4004 = vmatprep.mubr.bf16.mxu1 %v4659_v16  ;;  %4016 = vmatprep.subr.bf16.mxu0 %v5666_v22 }
 0x136   : > { %4049 = vmatpush3.bf16.msra.mxu1 %v5718_v40 }
 0x137   : > { %3969 = vmatmul.mubr.bf16.vlgmr.msra.gmra.mrb[0].mxu0 %v4674_v24  ;;  %4050 = vmatprep.subr.bf16.mxu1 %v5722_v41 }
 0x138   : > { %4017 = vmatpush3.bf16.msra.mxu0 %v5666_v22  ;;  %3972 = vmatprep.mubr.bf16.mxu0 %v4676_v26 }
 0x139   : > { %4018 = vmatprep.subr.bf16.mxu0 %v5677_v27 }
 0x13a   : > { %4051 = vmatpush3.bf16.msra.mxu1 %v5722_v41 }
 0x13b   : > { %4052 = vmatprep.subr.bf16.mxu1 %v5724_v42 }
 0x13c   : > { %4005 = vmatmul.mubr.bf16.gmra.mrb[4].mxu1 %v5660_v18  ;;  %4019 = vmatpush3.bf16.msra.mxu0 %v5677_v27 }
 0x13d   : > { %4008 = vmatprep.mubr.bf16.mxu1 %v5663_v20  ;;  %4020 = vmatprep.subr.bf16.mxu0 %v5681_v28 }
 0x13e   : > { %4053 = vmatpush3.bf16.msra.mxu1 %v5724_v42 }
 0x13f   : > { %3973 = vmatmul.mubr.bf16.gmra.mrb[4].mxu0 %v4678_v30  ;;  %4054 = vmatprep.subr.bf16.mxu1 %v5730_v43 }
 0x140   : > { %4021 = vmatpush3.bf16.msra.mxu0 %v5681_v28  ;;  %3976 = vmatprep.mubr.bf16.mxu0 %v4680_v31  ;;  %v5774_v31 = vld [vmem:[#allocation11 + $0x30] sm:$0xff]  }
 0x141   : > { %4022 = vmatprep.subr.bf16.mxu0 %v5693_v32 }
 0x142   : > { %4055 = vmatpush3.bf16.msra.mxu1 %v5730_v43 }
 0x143   : > { %4056 = vmatprep.subr.bf16.mxu1 %v5732_v44 }
 0x144   : > { %4009 = vmatmul.mubr.bf16.gmra.mrb[8].mxu1 %v5670_v23  ;;  %4023 = vmatpush3.bf16.msra.mxu0 %v5693_v32 }
 0x145   : > { %4012 = vmatprep.mubr.bf16.mxu1 %v5674_v25  ;;  %4024 = vmatprep.subr.bf16.mxu0 %v5698_v33 }
 0x146   : > { %4057 = vmatpush3.bf16.msra.mxu1 %v5732_v44 }
 0x147   : > { %3977 = vmatmul.mubr.bf16.gmra.mrb[8].mxu0 %v4682_v34  ;;  %4058 = vmatprep.subr.bf16.mxu1 %v5737_v45  ;;  %v5778_v34 = vld [vmem:[#allocation11 + $0x38] sm:$0xff]  }
 0x148   : > { %4025 = vmatpush3.bf16.msra.mxu0 %v5698_v33  ;;  %3980 = vmatprep.mubr.bf16.mxu0 %v4684_v35  ;;  %v5782_v35 = vld [vmem:[#allocation13] sm:$0xff]  }
 0x149   : > { %4026 = vmatprep.subr.bf16.mxu0 %v5704_v36 }
 0x14a   : > { %4059 = vmatpush3.bf16.msra.mxu1 %v5737_v45 }
 0x14b   : > { %4060 = vmatprep.subr.bf16.mxu1 %v5774_v31 }
 0x14c   : > { %4013 = vmatmul.mubr.bf16.gmra.mrb[12].mxu1 %v5686_v29  ;;  %4027 = vmatpush3.bf16.msra.mxu0 %v5704_v36 }
 0x14d   : > { %4028 = vmatprep.subr.bf16.mxu0 %v5708_v37 }
 0x14e   : > { %4061 = vmatpush3.bf16.msra.mxu1 %v5774_v31 }
 0x14f   : > { %3981 = vmatmul.mubr.bf16.gmra.mrb[12].mxu0 %v4686_v38  ;;  %4062 = vmatprep.subr.bf16.mxu1 %v5778_v34  ;;  %v5784_v38 = vld [vmem:[#allocation13 + $0x8] sm:$0xff]  }
 0x150   : > { %4029 = vmatpush3.bf16.msra.mxu0 %v5708_v37 }
 0x151   : > { %4030 = vmatprep.subr.bf16.mxu0 %v5714_v39 }
 0x152   : > { %4063 = vmatpush3.bf16.msra.mxu1 %v5778_v34 }
 0x154   : > { %4031 = vmatpush3.bf16.msra.mxu0 %v5714_v39 }
 0x155   : > { %4080 = vmatprep.subr.bf16.mxu0 %v5782_v35 }
 0x207   : > { %v4002_v46 = vpop.f32.mrb[0].mxu1 }
 0x208   : > { %v1105_v47 = vpop.f32.mrb[1].mxu1 }
 0x209   : > { %v4003_v48 = vpop.f32.mrb[2].mxu1 }
 0x20a   : > { %v1169_v49 = vpack.c.bf16 %v4003_v48, %v4002_v46  ;;  %v1108_v50 = vpop.f32.mrb[3].mxu1  ;;  %v5742_v59 = vpop.f32.mrb[0].mxu0  ;;  %v5789_v46 = vld [vmem:[#allocation13 + $0x10] sm:$0xff]   ;;  %v5797_v48 = vld [vmem:[#allocation13 + $0x20] sm:$0xff]  }
 0x20b   : > { %v1168_v51 = vpack.c.bf16 %v1108_v50, %v1105_v47  ;;  %v5744_v61 = vpop.f32.mrb[1].mxu0  ;;  %v5793_v47 = vld [vmem:[#allocation13 + $0x18] sm:$0xff]   ;;  %v5809_v50 = vld [vmem:[%s6580_s14] ss:$0 sm:$0xff] }
 0x20c   : > { %v5746_v63 = vpop.f32.mrb[2].mxu0  ;;  %6581 = vst [vmem:[#allocation30_spill] sm:$0xff] %v5809_v50 }
 0x20d   : > { %4032 = vmatprep.mubr.bf16.mxu0 %v1168_v51  ;;  %v5748_v2 = vpop.f32.mrb[3].mxu0 }
 0x20e   : > { %4033 = vmatmul.mubr.bf16.vlgmr.msra.gmra.mrb[16].mxu0 %v1169_v49  ;;  %v5801_v49 = vld [vmem:[#allocation13 + $0x28] sm:$0xff]  }
 0x20f   : > { %v4006_v52 = vpop.f32.mrb[4].mxu1  ;;  %4081 = vmatpush3.bf16.msra.mxu0 %v5782_v35 }
 0x210   : > { %v1121_v53 = vpop.f32.mrb[5].mxu1  ;;  %4082 = vmatprep.subr.bf16.mxu0 %v5784_v38 }
 0x211   : > { %v4007_v54 = vpop.f32.mrb[6].mxu1 }
 0x212   : > { %v1171_v55 = vpack.c.bf16 %v4007_v54, %v4006_v52  ;;  %v1124_v56 = vpop.f32.mrb[7].mxu1  ;;  %v5750_v6 = vpop.f32.mrb[4].mxu0 }
 0x213   : > { %v1170_v57 = vpack.c.bf16 %v1124_v56, %v1121_v53  ;;  %v5752_v8 = vpop.f32.mrb[5].mxu0  ;;  %4083 = vmatpush3.bf16.msra.mxu0 %v5784_v38 }
 0x214   : > { %v5754_v10 = vpop.f32.mrb[6].mxu0  ;;  %4084 = vmatprep.subr.bf16.mxu0 %v5789_v46 }
 0x215   : > { %4036 = vmatprep.mubr.bf16.mxu0 %v1170_v57  ;;  %v5756_v13 = vpop.f32.mrb[7].mxu0 }
 0x216   : > { %4037 = vmatmul.mubr.bf16.gmra.mrb[20].mxu0 %v1171_v55 }
 0x217   : > { %v4010_v58 = vpop.f32.mrb[8].mxu1  ;;  %4085 = vmatpush3.bf16.msra.mxu0 %v5789_v46 }
 0x218   : > { %v1137_v60 = vpop.f32.mrb[9].mxu1  ;;  %4086 = vmatprep.subr.bf16.mxu0 %v5793_v47 }
 0x219   : > { %v4011_v62 = vpop.f32.mrb[10].mxu1 }
 0x21a   : > { %v1173_v0 = vpack.c.bf16 %v4011_v62, %v4010_v58  ;;  %v1140_v1 = vpop.f32.mrb[11].mxu1  ;;  %v5758_v15 = vpop.f32.mrb[8].mxu0 }
 0x21b   : > { %v1172_v3 = vpack.c.bf16 %v1140_v1, %v1137_v60  ;;  %v5760_v16 = vpop.f32.mrb[9].mxu0  ;;  %4087 = vmatpush3.bf16.msra.mxu0 %v5793_v47 }
 0x21c   : > { %v5762_v17 = vpop.f32.mrb[10].mxu0  ;;  %4088 = vmatprep.subr.bf16.mxu0 %v5797_v48 }
 0x21d   : > { %4040 = vmatprep.mubr.bf16.mxu0 %v1172_v3  ;;  %v5764_v19 = vpop.f32.mrb[11].mxu0 }
 0x21e   : > { %4041 = vmatmul.mubr.bf16.gmra.mrb[24].mxu0 %v1173_v0 }
 0x21f   : > { %v4014_v5 = vpop.f32.mrb[12].mxu1  ;;  %4089 = vmatpush3.bf16.msra.mxu0 %v5797_v48 }
 0x220   : > { %v1153_v7 = vpop.f32.mrb[13].mxu1  ;;  %4090 = vmatprep.subr.bf16.mxu0 %v5801_v49 }
 0x221   : > { %v4015_v9 = vpop.f32.mrb[14].mxu1 }
 0x222   : > { %v1175_v11 = vpack.c.bf16 %v4015_v9, %v4014_v5  ;;  %v1156_v12 = vpop.f32.mrb[15].mxu1  ;;  %v5766_v21 = vpop.f32.mrb[12].mxu0 }
 0x223   : > { %v1174_v14 = vpack.c.bf16 %v1156_v12, %v1153_v7  ;;  %v5768_v24 = vpop.f32.mrb[13].mxu0  ;;  %4091 = vmatpush3.bf16.msra.mxu0 %v5801_v49 }
 0x224   : > { %v5770_v26 = vpop.f32.mrb[14].mxu0 }
 0x225   : > { %4044 = vmatprep.mubr.bf16.mxu0 %v1174_v14  ;;  %v5772_v30 = vpop.f32.mrb[15].mxu0 }
 0x226   : > { %4045 = vmatmul.mubr.bf16.gmra.mrb[28].mxu0 %v1175_v11 }
 0x2e1   : > { %v4034_v51 = vpop.f32.mrb[16].mxu0 }
 0x2e2   : > { %v1273_v52 = vadd.f32 %v4034_v51, %v5809_v50  ;;  %v1264_v53 = vpop.f32.mrb[17].mxu0 }
 0x2e3   : > { %v1265_v54 = vadd.f32 %v5809_v50, %v1264_v53  ;;  %v4035_v55 = vpop.f32.mrb[18].mxu0 }
 0x2e4   : > { %v1276_v56 = vadd.f32 %v4035_v55, %v5809_v50  ;;  %v1267_v57 = vpop.f32.mrb[19].mxu0  ;;  %v1329_v60 = vmax.f32 %v1273_v52, 0.0 }
 0x2e5   : > { %v1268_v58 = vadd.f32 %v5809_v50, %v1267_v57  ;;  %v1327_v0 = vmax.f32 %v1265_v54, 0.0 }
 0x2e6   : > { %v1330_v62 = vmax.f32 %v1276_v56, 0.0 }
 0x2e7   : > { %v1328_v1 = vmax.f32 %v1268_v58, 0.0 }
 0x2e8   : > { %v1344_v3 = vpack.c.bf16 %v1330_v62, %v1329_v60 }
 0x2e9   : > { %v1343_v5 = vpack.c.bf16 %v1328_v1, %v1327_v0  ;;  %v4038_v7 = vpop.f32.mrb[20].mxu0 }
 0x2ea   : > { %v1289_v9 = vadd.f32 %v4038_v7, %v5809_v50  ;;  %v1280_v11 = vpop.f32.mrb[21].mxu0 }
 0x2eb   : > { %v1281_v12 = vadd.f32 %v5809_v50, %v1280_v11  ;;  %v4039_v14 = vpop.f32.mrb[22].mxu0  ;;  %4064 = vmatprep.mubr.bf16.mxu1 %v1343_v5 }
 0x2ec   : > { %v1292_v51 = vadd.f32 %v4039_v14, %v5809_v50  ;;  %v1283_v53 = vpop.f32.mrb[23].mxu0  ;;  %4065 = vmatmul.mubr.bf16.vlgmr.msra.gmra.mrb[16].mxu1 %v1344_v3  ;;  %v1333_v52 = vmax.f32 %v1289_v9, 0.0 }
 0x2ed   : > { %v1284_v55 = vadd.f32 %v5809_v50, %v1283_v53  ;;  %v1331_v54 = vmax.f32 %v1281_v12, 0.0 }
 0x2ee   : > { %v1334_v56 = vmax.f32 %v1292_v51, 0.0 }
 0x2ef   : > { %v1332_v57 = vmax.f32 %v1284_v55, 0.0 }
 0x2f0   : > { %v1346_v58 = vpack.c.bf16 %v1334_v56, %v1333_v52 }
 0x2f1   : > { %v1345_v60 = vpack.c.bf16 %v1332_v57, %v1331_v54  ;;  %v4042_v62 = vpop.f32.mrb[24].mxu0 }
 0x2f2   : > { %v1305_v0 = vadd.f32 %v4042_v62, %v5809_v50  ;;  %v1296_v1 = vpop.f32.mrb[25].mxu0 }
 0x2f3   : > { %v1297_v7 = vadd.f32 %v5809_v50, %v1296_v1  ;;  %v4043_v11 = vpop.f32.mrb[26].mxu0  ;;  %4068 = vmatprep.mubr.bf16.mxu1 %v1345_v60 }
 0x2f4   : > { %v1308_v5 = vadd.f32 %v4043_v11, %v5809_v50  ;;  %v1299_v14 = vpop.f32.mrb[27].mxu0  ;;  %4069 = vmatmul.mubr.bf16.gmra.mrb[20].mxu1 %v1346_v58  ;;  %v1337_v9 = vmax.f32 %v1305_v0, 0.0 }
 0x2f5   : > { %v1300_v3 = vadd.f32 %v5809_v50, %v1299_v14  ;;  %v1335_v12 = vmax.f32 %v1297_v7, 0.0 }
 0x2f6   : > { %v1338_v51 = vmax.f32 %v1308_v5, 0.0 }
 0x2f7   : > { %v1336_v53 = vmax.f32 %v1300_v3, 0.0 }
 0x2f8   : > { %v1348_v55 = vpack.c.bf16 %v1338_v51, %v1337_v9  ;;  %v5828_v51 = vld [vmem:[#allocation13 + $0x30] sm:$0xff]  }
 0x2f9   : > { %v1347_v52 = vpack.c.bf16 %v1336_v53, %v1335_v12  ;;  %v4046_v56 = vpop.f32.mrb[28].mxu0  ;;  %4092 = vmatprep.subr.bf16.mxu0 %v5828_v51  ;;  %v5832_v12 = vld [vmem:[#allocation13 + $0x38] sm:$0xff]   ;;  %v5840_v53 = vld [vmem:[%s6582_s27] ss:$0 sm:$0xff] }
 0x2fa   : > { %v1321_v54 = vadd.f32 %v4046_v56, %v5809_v50  ;;  %v1312_v57 = vpop.f32.mrb[29].mxu0  ;;  %4093 = vmatpush3.bf16.msra.mxu0 %v5828_v51 }
 0x2fb   : > { %v1313_v62 = vadd.f32 %v5809_v50, %v1312_v57  ;;  %v4047_v1 = vpop.f32.mrb[30].mxu0  ;;  %4072 = vmatprep.mubr.bf16.mxu1 %v1347_v52  ;;  %4094 = vmatprep.subr.bf16.mxu0 %v5832_v12 }
 0x2fc   : > { %v1324_v60 = vadd.f32 %v4047_v1, %v5809_v50  ;;  %v1315_v11 = vpop.f32.mrb[31].mxu0  ;;  %4073 = vmatmul.mubr.bf16.gmra.mrb[24].mxu1 %v1348_v55  ;;  %v1341_v0 = vmax.f32 %v1321_v54, 0.0 }
 0x2fd   : > { %v1316_v58 = vadd.f32 %v5809_v50, %v1315_v11  ;;  %v1339_v7 = vmax.f32 %v1313_v62, 0.0 }
 0x2fe   : > { %v1342_v5 = vmax.f32 %v1324_v60, 0.0  ;;  %4095 = vmatpush3.bf16.msra.mxu0 %v5832_v12 }
 0x2ff   : > { %v1340_v14 = vmax.f32 %v1316_v58, 0.0  ;;  %4144 = vmatprep.subr.bf16.mxu0 %v5666_v22 }
 0x300   : > { %v1350_v3 = vpack.c.bf16 %v1342_v5, %v1341_v0 }
 0x301   : > { %v1349_v9 = vpack.c.bf16 %v1340_v14, %v1339_v7 }
 0x303   : > { %4076 = vmatprep.mubr.bf16.mxu1 %v1349_v9 }
 0x304   : > { %4077 = vmatmul.mubr.bf16.gmra.mrb[28].mxu1 %v1350_v3 }
 0x305   : > { %4128 = vmatprep.mubr.bf16.mxu1 %v5649_v4 }
 0x3bf   : > { %v4066_v4 = vpop.f32.mrb[16].mxu1 }
 0x3c0   : > { %v1448_v55 = vadd.f32 %v4066_v4, %v5840_v53  ;;  %v1439_v52 = vpop.f32.mrb[17].mxu1 }
 0x3c1   : > { %v1440_v56 = vadd.f32 %v5840_v53, %v1439_v52  ;;  %v4067_v54 = vpop.f32.mrb[18].mxu1 }
 0x3c2   : > { %v1451_v57 = vadd.f32 %v4067_v54, %v5840_v53  ;;  %v1442_v62 = vpop.f32.mrb[19].mxu1  ;;  %v1504_v60 = vmax.f32 %v1448_v55, 0.0 }
 0x3c3   : > { %v1443_v1 = vadd.f32 %v5840_v53, %v1442_v62  ;;  %v1502_v58 = vmax.f32 %v1440_v56, 0.0 }
 0x3c4   : > { %v1505_v11 = vmax.f32 %v1451_v57, 0.0 }
 0x3c5   : > { %v1503_v0 = vmax.f32 %v1443_v1, 0.0 }
 0x3c6   : > { %v1519_v5 = vpack.c.bf16 %v1505_v11, %v1504_v60 }
 0x3c7   : > { %v1518_v7 = vpack.c.bf16 %v1503_v0, %v1502_v58  ;;  %v4070_v14 = vpop.f32.mrb[20].mxu1 }
 0x3c8   : > { %v1464_v3 = vadd.f32 %v4070_v14, %v5840_v53  ;;  %v1455_v9 = vpop.f32.mrb[21].mxu1 }
 0x3c9   : > { %v1456_v4 = vadd.f32 %v5840_v53, %v1455_v9  ;;  %v4071_v50 = vpop.f32.mrb[22].mxu1  ;;  %4096 = vmatprep.mubr.bf16.mxu0 %v1518_v7 }
 0x3ca   : > { %v1467_v52 = vadd.f32 %v4071_v50, %v5840_v53  ;;  %v1458_v54 = vpop.f32.mrb[23].mxu1  ;;  %4097 = vmatmul.mubr.bf16.vlgmr.msra.gmra.mrb[32].mxu0 %v1519_v5  ;;  %v1508_v55 = vmax.f32 %v1464_v3, 0.0 }
 0x3cb   : > { %v1459_v62 = vadd.f32 %v5840_v53, %v1458_v54  ;;  %4145 = vmatpush3.bf16.msra.mxu0 %v5666_v22  ;;  %v1506_v57 = vmax.f32 %v1456_v4, 0.0 }
 0x3cc   : > { %v1509_v56 = vmax.f32 %v1467_v52, 0.0  ;;  %4146 = vmatprep.subr.bf16.mxu0 %v5677_v27 }
 0x3cd   : > { %v1507_v1 = vmax.f32 %v1459_v62, 0.0 }
 0x3ce   : > { %v1521_v60 = vpack.c.bf16 %v1509_v56, %v1508_v55 }
 0x3cf   : > { %v1520_v11 = vpack.c.bf16 %v1507_v1, %v1506_v57  ;;  %v4074_v58 = vpop.f32.mrb[24].mxu1  ;;  %4147 = vmatpush3.bf16.msra.mxu0 %v5677_v27 }
 0x3d0   : > { %v1480_v0 = vadd.f32 %v4074_v58, %v5840_v53  ;;  %v1471_v50 = vpop.f32.mrb[25].mxu1  ;;  %4148 = vmatprep.subr.bf16.mxu0 %v5681_v28 }
 0x3d1   : > { %v1472_v5 = vadd.f32 %v5840_v53, %v1471_v50  ;;  %v4075_v7 = vpop.f32.mrb[26].mxu1  ;;  %4100 = vmatprep.mubr.bf16.mxu0 %v1520_v11 }
 0x3d2   : > { %v1483_v22 = vadd.f32 %v4075_v7, %v5840_v53  ;;  %v1474_v14 = vpop.f32.mrb[27].mxu1  ;;  %4101 = vmatmul.mubr.bf16.gmra.mrb[36].mxu0 %v1521_v60  ;;  %v1512_v9 = vmax.f32 %v1480_v0, 0.0 }
 0x3d3   : > { %v1475_v3 = vadd.f32 %v5840_v53, %v1474_v14  ;;  %4149 = vmatpush3.bf16.msra.mxu0 %v5681_v28  ;;  %v1510_v27 = vmax.f32 %v1472_v5, 0.0 }
 0x3d4   : > { %v1513_v4 = vmax.f32 %v1483_v22, 0.0  ;;  %4150 = vmatprep.subr.bf16.mxu0 %v5693_v32 }
 0x3d5   : > { %v1511_v52 = vmax.f32 %v1475_v3, 0.0 }
 0x3d6   : > { %v1523_v54 = vpack.c.bf16 %v1513_v4, %v1512_v9 }
 0x3d7   : > { %v1522_v62 = vpack.c.bf16 %v1511_v52, %v1510_v27  ;;  %v4078_v55 = vpop.f32.mrb[28].mxu1  ;;  %4151 = vmatpush3.bf16.msra.mxu0 %v5693_v32 }
 0x3d8   : > { %v1496_v56 = vadd.f32 %v4078_v55, %v5840_v53  ;;  %v1487_v57 = vpop.f32.mrb[29].mxu1  ;;  %4152 = vmatprep.subr.bf16.mxu0 %v5698_v33 }
 0x3d9   : > { %v1488_v1 = vadd.f32 %v5840_v53, %v1487_v57  ;;  %v4079_v60 = vpop.f32.mrb[30].mxu1  ;;  %4104 = vmatprep.mubr.bf16.mxu0 %v1522_v62 }
 0x3da   : > { %v1499_v28 = vadd.f32 %v4079_v60, %v5840_v53  ;;  %v1490_v11 = vpop.f32.mrb[31].mxu1  ;;  %4105 = vmatmul.mubr.bf16.gmra.mrb[40].mxu0 %v1523_v54  ;;  %v1516_v0 = vmax.f32 %v1496_v56, 0.0  ;;  %v5886_v54 = vld [vmem:[%s6584_s5] ss:$0 sm:$0xff] }
 0x3db   : > { %v1491_v58 = vadd.f32 %v5840_v53, %v1490_v11  ;;  %4153 = vmatpush3.bf16.msra.mxu0 %v5698_v33  ;;  %v1514_v32 = vmax.f32 %v1488_v1, 0.0  ;;  %v5877_v33 = vld [vmem:[%s6583_s28] ss:$0 sm:$0xff] }
 0x3dc   : > { %v1517_v50 = vmax.f32 %v1499_v28, 0.0  ;;  %4154 = vmatprep.subr.bf16.mxu0 %v5704_v36  ;;  %v5893_v28 = vadd.f32 %v5742_v59, %v5886_v54  ;;  %v5907_v59 = vadd.f32 %v5886_v54, %v5748_v2 }
 0x3dd   : > { %v1515_v5 = vmax.f32 %v1491_v58, 0.0 }
 0x3de   : > { %v1525_v7 = vpack.c.bf16 %v1517_v50, %v1516_v0  ;;  %v5898_v0 = vadd.f32 %v5886_v54, %v5744_v61 }
 0x3df   : > { %v1524_v22 = vpack.c.bf16 %v1515_v5, %v1514_v32  ;;  %4155 = vmatpush3.bf16.msra.mxu0 %v5704_v36  ;;  %v5902_v32 = vadd.f32 %v5746_v63, %v5886_v54 }
 0x3e0   : > { %4156 = vmatprep.subr.bf16.mxu0 %v5708_v37 }
 0x3e1   : > { %4108 = vmatprep.mubr.bf16.mxu0 %v1524_v22 }
 0x3e2   : > { %4109 = vmatmul.mubr.bf16.gmra.mrb[44].mxu0 %v1525_v7 }
 0x3e3   : > { %4157 = vmatpush3.bf16.msra.mxu0 %v5708_v37 }
 0x3e4   : > { %4158 = vmatprep.subr.bf16.mxu0 %v5714_v39 }
 0x3e7   : > { %4159 = vmatpush3.bf16.msra.mxu0 %v5714_v39 }
 0x3e8   : > { %4208 = vmatprep.subr.bf16.mxu0 %v5782_v35 }
 0x49d   : > { %v4098_v14 = vpop.f32.mrb[32].mxu0 }
 0x49e   : > { %v1623_v36 = vadd.f32 %v4098_v14, %v5877_v33  ;;  %v1614_v3 = vpop.f32.mrb[33].mxu0 }
 0x49f   : > { %v1615_v9 = vadd.f32 %v5877_v33, %v1614_v3  ;;  %v4099_v4 = vpop.f32.mrb[34].mxu0 }
 0x4a0   : > { %4714 = vtanh.f32 %v1623_v36  ;;  %v1626_v37 = vadd.f32 %v4099_v4, %v5877_v33  ;;  %v1617_v27 = vpop.f32.mrb[35].mxu0 }
 0x4a1   : > { %4716 = vtanh.f32 %v1615_v9  ;;  %v1618_v39 = vadd.f32 %v5877_v33, %v1617_v27 }
 0x4a2   : > { %4718 = vtanh.f32 %v1626_v37 }
 0x4a3   : > { %4720 = vtanh.f32 %v1618_v39 }
 0x4a5   : > { %v4102_v52 = vpop.f32.mrb[36].mxu0 }
 0x4a6   : > { %v1639_v62 = vadd.f32 %v4102_v52, %v5877_v33  ;;  %v1630_v55 = vpop.f32.mrb[37].mxu0 }
 0x4a7   : > { %v1631_v56 = vadd.f32 %v5877_v33, %v1630_v55  ;;  %v4103_v57 = vpop.f32.mrb[38].mxu0 }
 0x4a8   : > { %4722 = vtanh.f32 %v1639_v62  ;;  %v1642_v1 = vadd.f32 %v4103_v57, %v5877_v33  ;;  %v1633_v60 = vpop.f32.mrb[39].mxu0 }
 0x4a9   : > { %4724 = vtanh.f32 %v1631_v56  ;;  %v1634_v11 = vadd.f32 %v5877_v33, %v1633_v60  ;;  %v5917_v56 = vadd.f32 %v5750_v6, %v5886_v54 }
 0x4aa   : > { %v4715_v58 = vpop.eup %4714  ;;  %4726 = vtanh.f32 %v1642_v1 }
 0x4ab   : > { %v4717_v50 = vpop.eup %4716  ;;  %4728 = vtanh.f32 %v1634_v11  ;;  %v1695_v5 = vadd.f32 %v4715_v58, %v5893_v28  ;;  %v5922_v11 = vadd.f32 %v5886_v54, %v5752_v8 }
 0x4ac   : > { %v4719_v7 = vpop.eup %4718  ;;  %v1693_v22 = vadd.f32 %v4717_v50, %v5898_v0 }
 0x4ad   : > { %v4721_v14 = vpop.eup %4720  ;;  %v4106_v36 = vpop.f32.mrb[40].mxu0  ;;  %v1696_v61 = vadd.f32 %v4719_v7, %v5902_v32  ;;  %v1711_v27 = vmax.f32 %v1695_v5, 0.0  ;;  %v5926_v5 = vadd.f32 %v5754_v10, %v5886_v54 }
 0x4ae   : > { %v1655_v3 = vadd.f32 %v4106_v36, %v5877_v33  ;;  %v1646_v9 = vpop.f32.mrb[41].mxu0  ;;  %v1694_v63 = vadd.f32 %v4721_v14, %v5907_v59  ;;  %v1709_v62 = vmax.f32 %v1693_v22, 0.0  ;;  %v5931_v22 = vadd.f32 %v5886_v54, %v5756_v13 }
 0x4af   : > { %v1647_v4 = vadd.f32 %v5877_v33, %v1646_v9  ;;  %v4107_v37 = vpop.f32.mrb[42].mxu0  ;;  %v1712_v39 = vmax.f32 %v1696_v61, 0.0 }
 0x4b0   : > { %4730 = vtanh.f32 %v1655_v3  ;;  %v1658_v2 = vadd.f32 %v4107_v37, %v5877_v33  ;;  %v1649_v52 = vpop.f32.mrb[43].mxu0  ;;  %v1710_v55 = vmax.f32 %v1694_v63, 0.0 }
 0x4b1   : > { %4732 = vtanh.f32 %v1647_v4  ;;  %v1650_v57 = vadd.f32 %v5877_v33, %v1649_v52  ;;  %v1726_v1 = vpack.c.bf16 %v1712_v39, %v1711_v27 }
 0x4b2   : > { %v4723_v60 = vpop.eup %4722  ;;  %4734 = vtanh.f32 %v1658_v2  ;;  %v1725_v58 = vpack.c.bf16 %v1710_v55, %v1709_v62  ;;  %v5941_v62 = vadd.f32 %v5758_v15, %v5886_v54 }
 0x4b3   : > { %v4725_v50 = vpop.eup %4724  ;;  %4736 = vtanh.f32 %v1650_v57  ;;  %v1699_v6 = vadd.f32 %v4723_v60, %v5917_v56 }
 0x4b4   : > { %v4727_v7 = vpop.eup %4726  ;;  %4112 = vmatprep.subr.bf16.mxu1 %v1725_v58  ;;  %v1697_v14 = vadd.f32 %v4725_v50, %v5922_v11 }
 0x4b5   : > { %v4729_v8 = vpop.eup %4728  ;;  %v4110_v36 = vpop.f32.mrb[44].mxu0  ;;  %4113 = vmatpush3.bf16.msra.mxu1 %v1725_v58  ;;  %v1700_v61 = vadd.f32 %v4727_v7, %v5926_v5  ;;  %v1715_v37 = vmax.f32 %v1699_v6, 0.0  ;;  %v5946_v58 = vadd.f32 %v5886_v54, %v5760_v16  ;;  %v5950_v7 = vadd.f32 %v5762_v17, %v5886_v54 }
 0x4b6   : > { %v1671_v3 = vadd.f32 %v4110_v36, %v5877_v33  ;;  %v1662_v10 = vpop.f32.mrb[45].mxu0  ;;  %4114 = vmatprep.subr.bf16.mxu1 %v1726_v1  ;;  %v1698_v9 = vadd.f32 %v4729_v8, %v5931_v22  ;;  %v1713_v2 = vmax.f32 %v1697_v14, 0.0 }
 0x4b7   : > { %v1663_v63 = vadd.f32 %v5877_v33, %v1662_v10  ;;  %v4111_v4 = vpop.f32.mrb[46].mxu0  ;;  %v1716_v13 = vmax.f32 %v1700_v61, 0.0 }
 0x4b8   : > { %4738 = vtanh.f32 %v1671_v3  ;;  %v1674_v27 = vadd.f32 %v4111_v4, %v5877_v33  ;;  %v1665_v39 = vpop.f32.mrb[47].mxu0  ;;  %v1714_v52 = vmax.f32 %v1698_v9, 0.0 }
 0x4b9   : > { %4740 = vtanh.f32 %v1663_v63  ;;  %v1666_v55 = vadd.f32 %v5877_v33, %v1665_v39  ;;  %4115 = vmatpush3.bf16.msra.mxu1 %v1726_v1  ;;  %v1728_v57 = vpack.c.bf16 %v1716_v13, %v1715_v37  ;;  %v5955_v1 = vadd.f32 %v5886_v54, %v5764_v19 }
 0x4ba   : > { %v4731_v60 = vpop.eup %4730  ;;  %4742 = vtanh.f32 %v1674_v27  ;;  %v1727_v50 = vpack.c.bf16 %v1714_v52, %v1713_v2  ;;  %v5962_v63 = vadd.f32 %v5766_v21, %v5886_v54  ;;  %v5966_v37 = vadd.f32 %v5886_v54, %v5768_v24 }
 0x4bb   : > { %v4733_v6 = vpop.eup %4732  ;;  %4744 = vtanh.f32 %v1666_v55  ;;  %v1703_v15 = vadd.f32 %v4731_v60, %v5941_v62  ;;  %v5970_v39 = vadd.f32 %v5770_v26, %v5886_v54  ;;  %v5975_v21 = vadd.f32 %v5886_v54, %v5772_v30  ;;  %v5982_v54 = vld [vmem:[%s5624_s16 + $0x8] sm:$0xff]  }
 0x4bc   : > { %v4735_v14 = vpop.eup %4734  ;;  %4116 = vmatprep.subr.bf16.mxu1 %v1727_v50  ;;  %v1701_v8 = vadd.f32 %v4733_v6, %v5946_v58 }
 0x4bd   : > { %v4737_v16 = vpop.eup %4736  ;;  %4117 = vmatpush3.bf16.msra.mxu1 %v1727_v50  ;;  %v1704_v36 = vadd.f32 %v4735_v14, %v5950_v7  ;;  %v1719_v17 = vmax.f32 %v1703_v15, 0.0 }
 0x4be   : > { %4118 = vmatprep.subr.bf16.mxu1 %v1728_v57  ;;  %v1702_v61 = vadd.f32 %v4737_v16, %v5955_v1  ;;  %v1717_v10 = vmax.f32 %v1701_v8, 0.0  ;;  %v5986_v8 = vld [vmem:[%s5624_s16 + $0x10] sm:$0xff]  }
 0x4bf   : > { %v1720_v3 = vmax.f32 %v1704_v36, 0.0 }
 0x4c0   : > { %v1718_v9 = vmax.f32 %v1702_v61, 0.0 }
 0x4c1   : > { %4119 = vmatpush3.bf16.msra.mxu1 %v1728_v57  ;;  %v1730_v19 = vpack.c.bf16 %v1720_v3, %v1719_v17 }
 0x4c2   : > { %v4739_v4 = vpop.eup %4738  ;;  %v1729_v13 = vpack.c.bf16 %v1718_v9, %v1717_v10 }
 0x4c3   : > { %v4741_v27 = vpop.eup %4740  ;;  %v1707_v2 = vadd.f32 %v4739_v4, %v5962_v63  ;;  %v6585_v4 = vld [vmem:[#allocation30_spill] sm:$0xff] }
 0x4c4   : > { %v4743_v52 = vpop.eup %4742  ;;  %4120 = vmatprep.subr.bf16.mxu1 %v1729_v13  ;;  %v1705_v55 = vadd.f32 %v4741_v27, %v5966_v37 }
 0x4c5   : > { %v4745_v57 = vpop.eup %4744  ;;  %4121 = vmatpush3.bf16.msra.mxu1 %v1729_v13  ;;  %v1708_v24 = vadd.f32 %v4743_v52, %v5970_v39  ;;  %v1723_v60 = vmax.f32 %v1707_v2, 0.0 }
 0x4c6   : > { %4122 = vmatprep.subr.bf16.mxu1 %v1730_v19  ;;  %v1706_v26 = vadd.f32 %v4745_v57, %v5975_v21  ;;  %v1721_v6 = vmax.f32 %v1705_v55, 0.0 }
 0x4c7   : > { %v1724_v50 = vmax.f32 %v1708_v24, 0.0 }
 0x4c8   : > { %v1722_v15 = vmax.f32 %v1706_v26, 0.0 }
 0x4c9   : > { %4123 = vmatpush3.bf16.msra.mxu1 %v1730_v19  ;;  %v1732_v14 = vpack.c.bf16 %v1724_v50, %v1723_v60 }
 0x4ca   : > { %v1731_v30 = vpack.c.bf16 %v1722_v15, %v1721_v6 }
 0x4cc   : > { %4124 = vmatprep.subr.bf16.mxu1 %v1731_v30 }
 0x4cd   : > { %4125 = vmatpush3.bf16.msra.mxu1 %v1731_v30 }
 0x4ce   : > { %4126 = vmatprep.subr.bf16.mxu1 %v1732_v14 }
 0x4d1   : > { %4127 = vmatpush3.bf16.msra.mxu1 %v1732_v14 }
 0x4d2   : > { %4176 = vmatprep.subr.bf16.mxu1 %v5718_v40 }
 0x4d4   : > { %4129 = vmatmul.mubr.bf16.vlgmr.msra.gmra.mrb[32].mxu1 %v5982_v54 }
 0x4d5   : > { %4132 = vmatprep.mubr.bf16.mxu1 %v5986_v8  ;;  %4177 = vmatpush3.bf16.msra.mxu1 %v5718_v40 }
 0x4d6   : > { %4178 = vmatprep.subr.bf16.mxu1 %v5722_v41 }
 0x4d9   : > { %4179 = vmatpush3.bf16.msra.mxu1 %v5722_v41 }
 0x4da   : > { %4180 = vmatprep.subr.bf16.mxu1 %v5724_v42 }
 0x4dc   : > { %4133 = vmatmul.mubr.bf16.gmra.mrb[36].mxu1 %v5660_v18 }
 0x4dd   : > { %4136 = vmatprep.mubr.bf16.mxu1 %v5663_v20  ;;  %4181 = vmatpush3.bf16.msra.mxu1 %v5724_v42 }
 0x4de   : > { %4182 = vmatprep.subr.bf16.mxu1 %v5730_v43 }
 0x4e1   : > { %4183 = vmatpush3.bf16.msra.mxu1 %v5730_v43 }
 0x4e2   : > { %4184 = vmatprep.subr.bf16.mxu1 %v5732_v44 }
 0x4e4   : > { %4137 = vmatmul.mubr.bf16.gmra.mrb[40].mxu1 %v5670_v23 }
 0x4e5   : > { %4140 = vmatprep.mubr.bf16.mxu1 %v5674_v25  ;;  %4185 = vmatpush3.bf16.msra.mxu1 %v5732_v44 }
 0x4e6   : > { %4186 = vmatprep.subr.bf16.mxu1 %v5737_v45 }
 0x4e9   : > { %4187 = vmatpush3.bf16.msra.mxu1 %v5737_v45 }
 0x4ea   : > { %4188 = vmatprep.subr.bf16.mxu1 %v5774_v31 }
 0x4ec   : > { %4141 = vmatmul.mubr.bf16.gmra.mrb[44].mxu1 %v5686_v29 }
 0x4ed   : > { %4189 = vmatpush3.bf16.msra.mxu1 %v5774_v31 }
 0x4ee   : > { %4190 = vmatprep.subr.bf16.mxu1 %v5778_v34 }
 0x4f1   : > { %4191 = vmatpush3.bf16.msra.mxu1 %v5778_v34 }
 0x5a7   : > { %v4130_v18 = vpop.f32.mrb[32].mxu1 }
 0x5a8   : > { %v1767_v20 = vpop.f32.mrb[33].mxu1 }
 0x5a9   : > { %v4131_v23 = vpop.f32.mrb[34].mxu1 }
 0x5aa   : > { %v1831_v25 = vpack.c.bf16 %v4131_v23, %v4130_v18  ;;  %v1770_v40 = vpop.f32.mrb[35].mxu1 }
 0x5ab   : > { %v1830_v41 = vpack.c.bf16 %v1770_v40, %v1767_v20 }
 0x5ad   : > { %4160 = vmatprep.mubr.bf16.mxu0 %v1830_v41 }
 0x5ae   : > { %4161 = vmatmul.mubr.bf16.vlgmr.msra.gmra.mrb[48].mxu0 %v1831_v25 }
 0x5af   : > { %v4134_v42 = vpop.f32.mrb[36].mxu1  ;;  %4209 = vmatpush3.bf16.msra.mxu0 %v5782_v35 }
 0x5b0   : > { %v1783_v43 = vpop.f32.mrb[37].mxu1  ;;  %4210 = vmatprep.subr.bf16.mxu0 %v5784_v38 }
 0x5b1   : > { %v4135_v29 = vpop.f32.mrb[38].mxu1 }
 0x5b2   : > { %v1833_v44 = vpack.c.bf16 %v4135_v29, %v4134_v42  ;;  %v1786_v45 = vpop.f32.mrb[39].mxu1 }
 0x5b3   : > { %v1832_v31 = vpack.c.bf16 %v1786_v45, %v1783_v43  ;;  %4211 = vmatpush3.bf16.msra.mxu0 %v5784_v38 }
 0x5b4   : > { %4212 = vmatprep.subr.bf16.mxu0 %v5789_v46 }
 0x5b5   : > { %4164 = vmatprep.mubr.bf16.mxu0 %v1832_v31 }
 0x5b6   : > { %4165 = vmatmul.mubr.bf16.gmra.mrb[52].mxu0 %v1833_v44 }
 0x5b7   : > { %v4138_v34 = vpop.f32.mrb[40].mxu1  ;;  %4213 = vmatpush3.bf16.msra.mxu0 %v5789_v46 }
 0x5b8   : > { %v1799_v16 = vpop.f32.mrb[41].mxu1  ;;  %4214 = vmatprep.subr.bf16.mxu0 %v5793_v47 }
 0x5b9   : > { %v4139_v35 = vpop.f32.mrb[42].mxu1 }
 0x5ba   : > { %v1835_v36 = vpack.c.bf16 %v4139_v35, %v4138_v34  ;;  %v1802_v61 = vpop.f32.mrb[43].mxu1 }
 0x5bb   : > { %v1834_v17 = vpack.c.bf16 %v1802_v61, %v1799_v16  ;;  %4215 = vmatpush3.bf16.msra.mxu0 %v5793_v47  ;;  %v6024_v47 = vld [vmem:[#allocation10] sm:$0xff]  }
 0x5bc   : > { %4216 = vmatprep.subr.bf16.mxu0 %v5797_v48 }
 0x5bd   : > { %4168 = vmatprep.mubr.bf16.mxu0 %v1834_v17 }
 0x5be   : > { %4169 = vmatmul.mubr.bf16.gmra.mrb[56].mxu0 %v1835_v36 }
 0x5bf   : > { %v4142_v38 = vpop.f32.mrb[44].mxu1  ;;  %4217 = vmatpush3.bf16.msra.mxu0 %v5797_v48 }
 0x5c0   : > { %v1815_v3 = vpop.f32.mrb[45].mxu1  ;;  %4218 = vmatprep.subr.bf16.mxu0 %v5801_v49 }
 0x5c1   : > { %v4143_v46 = vpop.f32.mrb[46].mxu1 }
 0x5c2   : > { %v1837_v10 = vpack.c.bf16 %v4143_v46, %v4142_v38  ;;  %v1818_v9 = vpop.f32.mrb[47].mxu1 }
 0x5c3   : > { %v1836_v19 = vpack.c.bf16 %v1818_v9, %v1815_v3  ;;  %4219 = vmatpush3.bf16.msra.mxu0 %v5801_v49 }
 0x5c4   : > { %4220 = vmatprep.subr.bf16.mxu0 %v5828_v51 }
 0x5c5   : > { %4172 = vmatprep.mubr.bf16.mxu0 %v1836_v19 }
 0x5c6   : > { %4173 = vmatmul.mubr.bf16.gmra.mrb[60].mxu0 %v1837_v10 }
 0x5c7   : > { %4221 = vmatpush3.bf16.msra.mxu0 %v5828_v51 }
 0x5c8   : > { %4222 = vmatprep.subr.bf16.mxu0 %v5832_v12 }
 0x5cb   : > { %4223 = vmatpush3.bf16.msra.mxu0 %v5832_v12 }
 0x5cc   : > { %4272 = vmatprep.subr.bf16.mxu0 %v6024_v47 }
 0x681   : > { %v4162_v48 = vpop.f32.mrb[48].mxu0 }
 0x682   : > { %v1881_v13 = vadd.f32 %v4162_v48, %v6585_v4  ;;  %v1872_v27 = vpop.f32.mrb[49].mxu0 }
 0x683   : > { %v1873_v49 = vadd.f32 %v6585_v4, %v1872_v27  ;;  %v4163_v2 = vpop.f32.mrb[50].mxu0 }
 0x684   : > { %v1884_v52 = vadd.f32 %v4163_v2, %v6585_v4  ;;  %v1875_v55 = vpop.f32.mrb[51].mxu0  ;;  %v1937_v57 = vmax.f32 %v1881_v13, 0.0 }
 0x685   : > { %v1876_v51 = vadd.f32 %v6585_v4, %v1875_v55  ;;  %v1935_v26 = vmax.f32 %v1873_v49, 0.0 }
 0x686   : > { %v1938_v24 = vmax.f32 %v1884_v52, 0.0 }
 0x687   : > { %v1936_v12 = vmax.f32 %v1876_v51, 0.0 }
 0x688   : > { %v1952_v60 = vpack.c.bf16 %v1938_v24, %v1937_v57 }
 0x689   : > { %v1951_v50 = vpack.c.bf16 %v1936_v12, %v1935_v26  ;;  %v4166_v6 = vpop.f32.mrb[52].mxu0 }
 0x68a   : > { %v1897_v15 = vadd.f32 %v4166_v6, %v6585_v4  ;;  %v1888_v14 = vpop.f32.mrb[53].mxu0  ;;  %v6044_v6 = vld [vmem:[%s5624_s16] sm:$0xff]  }
 0x68b   : > { %v1889_v30 = vadd.f32 %v6585_v4, %v1888_v14  ;;  %v4167_v18 = vpop.f32.mrb[54].mxu0  ;;  %4192 = vmatprep.mubr.bf16.mxu1 %v1951_v50 }
 0x68c   : > { %v1900_v20 = vadd.f32 %v4167_v18, %v6585_v4  ;;  %v1891_v23 = vpop.f32.mrb[55].mxu0  ;;  %4193 = vmatmul.mubr.bf16.vlgmr.msra.gmra.mrb[48].mxu1 %v1952_v60  ;;  %v1941_v40 = vmax.f32 %v1897_v15, 0.0 }
 0x68d   : > { %v1892_v25 = vadd.f32 %v6585_v4, %v1891_v23  ;;  %v1939_v42 = vmax.f32 %v1889_v30, 0.0 }
 0x68e   : > { %v1942_v41 = vmax.f32 %v1900_v20, 0.0 }
 0x68f   : > { %v1940_v43 = vmax.f32 %v1892_v25, 0.0 }
 0x690   : > { %v1954_v29 = vpack.c.bf16 %v1942_v41, %v1941_v40 }
 0x691   : > { %v1953_v44 = vpack.c.bf16 %v1940_v43, %v1939_v42  ;;  %v4170_v45 = vpop.f32.mrb[56].mxu0 }
 0x692   : > { %v1913_v31 = vadd.f32 %v4170_v45, %v6585_v4  ;;  %v1904_v34 = vpop.f32.mrb[57].mxu0 }
 0x693   : > { %v1905_v16 = vadd.f32 %v6585_v4, %v1904_v34  ;;  %v4171_v35 = vpop.f32.mrb[58].mxu0  ;;  %4196 = vmatprep.mubr.bf16.mxu1 %v1953_v44 }
 0x694   : > { %v1916_v36 = vadd.f32 %v4171_v35, %v6585_v4  ;;  %v1907_v61 = vpop.f32.mrb[59].mxu0  ;;  %4197 = vmatmul.mubr.bf16.gmra.mrb[52].mxu1 %v1954_v29  ;;  %v1945_v38 = vmax.f32 %v1913_v31, 0.0 }
 0x695   : > { %v1908_v17 = vadd.f32 %v6585_v4, %v1907_v61  ;;  %v1943_v46 = vmax.f32 %v1905_v16, 0.0 }
 0x696   : > { %v1946_v3 = vmax.f32 %v1916_v36, 0.0 }
 0x697   : > { %v1944_v10 = vmax.f32 %v1908_v17, 0.0 }
 0x698   : > { %v1956_v9 = vpack.c.bf16 %v1946_v3, %v1945_v38 }
 0x699   : > { %v1955_v19 = vpack.c.bf16 %v1944_v10, %v1943_v46  ;;  %v4174_v48 = vpop.f32.mrb[60].mxu0  ;;  %v6056_v46 = vld [vmem:[#allocation10 + $0x8] sm:$0xff]  }
 0x69a   : > { %v1929_v13 = vadd.f32 %v4174_v48, %v6585_v4  ;;  %v1920_v27 = vpop.f32.mrb[61].mxu0 }
 0x69b   : > { %v1921_v49 = vadd.f32 %v6585_v4, %v1920_v27  ;;  %v4175_v2 = vpop.f32.mrb[62].mxu0  ;;  %4200 = vmatprep.mubr.bf16.mxu1 %v1955_v19 }
 0x69c   : > { %v1932_v52 = vadd.f32 %v4175_v2, %v6585_v4  ;;  %v1923_v55 = vpop.f32.mrb[63].mxu0  ;;  %4201 = vmatmul.mubr.bf16.gmra.mrb[56].mxu1 %v1956_v9  ;;  %v1949_v57 = vmax.f32 %v1929_v13, 0.0  ;;  %v6061_v2 = vld [vmem:[#allocation10 + $0x10] sm:$0xff]  }
 0x69d   : > { %v1924_v51 = vadd.f32 %v6585_v4, %v1923_v55  ;;  %v1947_v26 = vmax.f32 %v1921_v49, 0.0 }
 0x69e   : > { %v1950_v24 = vmax.f32 %v1932_v52, 0.0 }
 0x69f   : > { %v1948_v12 = vmax.f32 %v1924_v51, 0.0 }
 0x6a0   : > { %v1958_v60 = vpack.c.bf16 %v1950_v24, %v1949_v57 }
 0x6a1   : > { %v1957_v50 = vpack.c.bf16 %v1948_v12, %v1947_v26 }
 0x6a3   : > { %4204 = vmatprep.mubr.bf16.mxu1 %v1957_v50 }
 0x6a4   : > { %4205 = vmatmul.mubr.bf16.gmra.mrb[60].mxu1 %v1958_v60  ;;  %v6068_v60 = vld [vmem:[#allocation10 + $0x18] sm:$0xff]  }
 0x6a5   : > { %4256 = vmatprep.mubr.bf16.mxu1 %v6044_v6 }
 0x75f   : > { %v4194_v15 = vpop.f32.mrb[48].mxu1 }
 0x760   : > { %v2002_v14 = vadd.f32 %v4194_v15, %v5840_v53  ;;  %v1993_v30 = vpop.f32.mrb[49].mxu1 }
 0x761   : > { %v1994_v18 = vadd.f32 %v5840_v53, %v1993_v30  ;;  %v4195_v20 = vpop.f32.mrb[50].mxu1 }
 0x762   : > { %v2005_v4 = vadd.f32 %v4195_v20, %v5840_v53  ;;  %v1996_v23 = vpop.f32.mrb[51].mxu1  ;;  %v2058_v40 = vmax.f32 %v2002_v14, 0.0 }
 0x763   : > { %v1997_v25 = vadd.f32 %v5840_v53, %v1996_v23  ;;  %v2056_v42 = vmax.f32 %v1994_v18, 0.0  ;;  %v6073_v23 = vld [vmem:[#allocation10 + $0x20] sm:$0xff]  }
 0x764   : > { %v2059_v41 = vmax.f32 %v2005_v4, 0.0 }
 0x765   : > { %v2057_v43 = vmax.f32 %v1997_v25, 0.0 }
 0x766   : > { %v2073_v29 = vpack.c.bf16 %v2059_v41, %v2058_v40 }
 0x767   : > { %v2072_v44 = vpack.c.bf16 %v2057_v43, %v2056_v42  ;;  %v4198_v45 = vpop.f32.mrb[52].mxu1 }
 0x768   : > { %v2018_v31 = vadd.f32 %v4198_v45, %v5840_v53  ;;  %v2009_v34 = vpop.f32.mrb[53].mxu1  ;;  %v6080_v45 = vld [vmem:[#allocation10 + $0x28] sm:$0xff]  }
 0x769   : > { %v2010_v16 = vadd.f32 %v5840_v53, %v2009_v34  ;;  %v4199_v35 = vpop.f32.mrb[54].mxu1  ;;  %4224 = vmatprep.mubr.bf16.mxu0 %v2072_v44 }
 0x76a   : > { %v2021_v36 = vadd.f32 %v4199_v35, %v5840_v53  ;;  %v2012_v61 = vpop.f32.mrb[55].mxu1  ;;  %4225 = vmatmul.mubr.bf16.vlgmr.msra.gmra.mrb[64].mxu0 %v2073_v29  ;;  %v2062_v38 = vmax.f32 %v2018_v31, 0.0 }
 0x76b   : > { %v2013_v17 = vadd.f32 %v5840_v53, %v2012_v61  ;;  %4273 = vmatpush3.bf16.msra.mxu0 %v6024_v47  ;;  %v2060_v10 = vmax.f32 %v2010_v16, 0.0  ;;  %v6092_v61 = vld [vmem:[#allocation13] sm:$0xff]  }
 0x76c   : > { %v2063_v3 = vmax.f32 %v2021_v36, 0.0  ;;  %4274 = vmatprep.subr.bf16.mxu0 %v6056_v46  ;;  %v6084_v36 = vld [vmem:[#allocation10 + $0x30] sm:$0xff]  }
 0x76d   : > { %v2061_v9 = vmax.f32 %v2013_v17, 0.0 }
 0x76e   : > { %v2075_v19 = vpack.c.bf16 %v2063_v3, %v2062_v38 }
 0x76f   : > { %v2074_v48 = vpack.c.bf16 %v2061_v9, %v2060_v10  ;;  %v4202_v13 = vpop.f32.mrb[56].mxu1  ;;  %4275 = vmatpush3.bf16.msra.mxu0 %v6056_v46 }
 0x770   : > { %v2034_v27 = vadd.f32 %v4202_v13, %v5840_v53  ;;  %v2025_v49 = vpop.f32.mrb[57].mxu1  ;;  %4276 = vmatprep.subr.bf16.mxu0 %v6061_v2 }
 0x771   : > { %v2026_v52 = vadd.f32 %v5840_v53, %v2025_v49  ;;  %v4203_v55 = vpop.f32.mrb[58].mxu1  ;;  %4228 = vmatprep.mubr.bf16.mxu0 %v2074_v48 }
 0x772   : > { %v2037_v51 = vadd.f32 %v4203_v55, %v5840_v53  ;;  %v2028_v57 = vpop.f32.mrb[59].mxu1  ;;  %4229 = vmatmul.mubr.bf16.gmra.mrb[68].mxu0 %v2075_v19  ;;  %v2066_v26 = vmax.f32 %v2034_v27, 0.0 }
 0x773   : > { %v2029_v24 = vadd.f32 %v5840_v53, %v2028_v57  ;;  %4277 = vmatpush3.bf16.msra.mxu0 %v6061_v2  ;;  %v2064_v50 = vmax.f32 %v2026_v52, 0.0 }
 0x774   : > { %v2067_v12 = vmax.f32 %v2037_v51, 0.0  ;;  %4278 = vmatprep.subr.bf16.mxu0 %v6068_v60 }
 0x775   : > { %v2065_v15 = vmax.f32 %v2029_v24, 0.0 }
 0x776   : > { %v2077_v14 = vpack.c.bf16 %v2067_v12, %v2066_v26 }
 0x777   : > { %v2076_v30 = vpack.c.bf16 %v2065_v15, %v2064_v50  ;;  %v4206_v18 = vpop.f32.mrb[60].mxu1  ;;  %4279 = vmatpush3.bf16.msra.mxu0 %v6068_v60 }
 0x778   : > { %v2050_v20 = vadd.f32 %v4206_v18, %v5840_v53  ;;  %v2041_v4 = vpop.f32.mrb[61].mxu1  ;;  %4280 = vmatprep.subr.bf16.mxu0 %v6073_v23 }
 0x779   : > { %v2042_v25 = vadd.f32 %v5840_v53, %v2041_v4  ;;  %v4207_v40 = vpop.f32.mrb[62].mxu1  ;;  %4232 = vmatprep.mubr.bf16.mxu0 %v2076_v30 }
 0x77a   : > { %v2053_v41 = vadd.f32 %v4207_v40, %v5840_v53  ;;  %v2044_v42 = vpop.f32.mrb[63].mxu1  ;;  %4233 = vmatmul.mubr.bf16.gmra.mrb[72].mxu0 %v2077_v14  ;;  %v2070_v29 = vmax.f32 %v2050_v20, 0.0 }
 0x77b   : > { %v2045_v43 = vadd.f32 %v5840_v53, %v2044_v42  ;;  %4281 = vmatpush3.bf16.msra.mxu0 %v6073_v23  ;;  %v2068_v31 = vmax.f32 %v2042_v25, 0.0  ;;  %v6088_v53 = vld [vmem:[#allocation10 + $0x38] sm:$0xff]  }
 0x77c   : > { %v2071_v44 = vmax.f32 %v2053_v41, 0.0  ;;  %4282 = vmatprep.subr.bf16.mxu0 %v6080_v45 }
 0x77d   : > { %v2069_v34 = vmax.f32 %v2045_v43, 0.0 }
 0x77e   : > { %v2079_v16 = vpack.c.bf16 %v2071_v44, %v2070_v29 }
 0x77f   : > { %v2078_v35 = vpack.c.bf16 %v2069_v34, %v2068_v31  ;;  %4283 = vmatpush3.bf16.msra.mxu0 %v6080_v45 }
 0x780   : > { %4284 = vmatprep.subr.bf16.mxu0 %v6084_v36 }
 0x781   : > { %4236 = vmatprep.mubr.bf16.mxu0 %v2078_v35 }
 0x782   : > { %4237 = vmatmul.mubr.bf16.gmra.mrb[76].mxu0 %v2079_v16 }
 0x783   : > { %4285 = vmatpush3.bf16.msra.mxu0 %v6084_v36 }
 0x784   : > { %4286 = vmatprep.subr.bf16.mxu0 %v6088_v53 }
 0x787   : > { %4287 = vmatpush3.bf16.msra.mxu0 %v6088_v53 }
 0x788   : > { %4336 = vmatprep.subr.bf16.mxu0 %v6092_v61 }
 0x83d   : > { %v4226_v17 = vpop.f32.mrb[64].mxu0 }
 0x83e   : > { %v2123_v38 = vadd.f32 %v4226_v17, %v5877_v33  ;;  %v2114_v3 = vpop.f32.mrb[65].mxu0 }
 0x83f   : > { %v2115_v10 = vadd.f32 %v5877_v33, %v2114_v3  ;;  %v4227_v9 = vpop.f32.mrb[66].mxu0 }
 0x840   : > { %4746 = vtanh.f32 %v2123_v38  ;;  %v2126_v19 = vadd.f32 %v4227_v9, %v5877_v33  ;;  %v2117_v48 = vpop.f32.mrb[67].mxu0 }
 0x841   : > { %4748 = vtanh.f32 %v2115_v10  ;;  %v2118_v13 = vadd.f32 %v5877_v33, %v2117_v48 }
 0x842   : > { %4750 = vtanh.f32 %v2126_v19 }
 0x843   : > { %4752 = vtanh.f32 %v2118_v13 }
 0x845   : > { %v4230_v27 = vpop.f32.mrb[68].mxu0 }
 0x846   : > { %v2139_v49 = vadd.f32 %v4230_v27, %v5877_v33  ;;  %v2130_v52 = vpop.f32.mrb[69].mxu0 }
 0x847   : > { %v2131_v55 = vadd.f32 %v5877_v33, %v2130_v52  ;;  %v4231_v51 = vpop.f32.mrb[70].mxu0 }
 0x848   : > { %4754 = vtanh.f32 %v2139_v49  ;;  %v2142_v57 = vadd.f32 %v4231_v51, %v5877_v33  ;;  %v2133_v24 = vpop.f32.mrb[71].mxu0 }
 0x849   : > { %4756 = vtanh.f32 %v2131_v55  ;;  %v2134_v26 = vadd.f32 %v5877_v33, %v2133_v24 }
 0x84a   : > { %v4747_v12 = vpop.eup %4746  ;;  %4758 = vtanh.f32 %v2142_v57 }
 0x84b   : > { %v4749_v50 = vpop.eup %4748  ;;  %4760 = vtanh.f32 %v2134_v26  ;;  %v2195_v15 = vadd.f32 %v4747_v12, %v5893_v28 }
 0x84c   : > { %v4751_v14 = vpop.eup %4750  ;;  %v2193_v30 = vadd.f32 %v4749_v50, %v5898_v0 }
 0x84d   : > { %v4753_v18 = vpop.eup %4752  ;;  %v4234_v20 = vpop.f32.mrb[72].mxu0  ;;  %v2196_v4 = vadd.f32 %v4751_v14, %v5902_v32  ;;  %v2211_v29 = vmax.f32 %v2195_v15, 0.0 }
 0x84e   : > { %v2155_v25 = vadd.f32 %v4234_v20, %v5877_v33  ;;  %v2146_v40 = vpop.f32.mrb[73].mxu0  ;;  %v2194_v41 = vadd.f32 %v4753_v18, %v5907_v59  ;;  %v2209_v16 = vmax.f32 %v2193_v30, 0.0 }
 0x84f   : > { %v2147_v42 = vadd.f32 %v5877_v33, %v2146_v40  ;;  %v4235_v43 = vpop.f32.mrb[74].mxu0  ;;  %v2212_v44 = vmax.f32 %v2196_v4, 0.0 }
 0x850   : > { %4762 = vtanh.f32 %v2155_v25  ;;  %v2158_v31 = vadd.f32 %v4235_v43, %v5877_v33  ;;  %v2149_v34 = vpop.f32.mrb[75].mxu0  ;;  %v2210_v35 = vmax.f32 %v2194_v41, 0.0 }
 0x851   : > { %4764 = vtanh.f32 %v2147_v42  ;;  %v2150_v17 = vadd.f32 %v5877_v33, %v2149_v34  ;;  %v2226_v38 = vpack.c.bf16 %v2212_v44, %v2211_v29 }
 0x852   : > { %v4755_v3 = vpop.eup %4754  ;;  %4766 = vtanh.f32 %v2158_v31  ;;  %v2225_v10 = vpack.c.bf16 %v2210_v35, %v2209_v16 }
 0x853   : > { %v4757_v9 = vpop.eup %4756  ;;  %4768 = vtanh.f32 %v2150_v17  ;;  %v2199_v19 = vadd.f32 %v4755_v3, %v5917_v56 }
 0x854   : > { %v4759_v48 = vpop.eup %4758  ;;  %4240 = vmatprep.subr.bf16.mxu1 %v2225_v10  ;;  %v2197_v13 = vadd.f32 %v4757_v9, %v5922_v11 }
 0x855   : > { %v4761_v27 = vpop.eup %4760  ;;  %v4238_v49 = vpop.f32.mrb[76].mxu0  ;;  %4241 = vmatpush3.bf16.msra.mxu1 %v2225_v10  ;;  %v2200_v52 = vadd.f32 %v4759_v48, %v5926_v5  ;;  %v2215_v12 = vmax.f32 %v2199_v19, 0.0 }
 0x856   : > { %v2171_v55 = vadd.f32 %v4238_v49, %v5877_v33  ;;  %v2162_v51 = vpop.f32.mrb[77].mxu0  ;;  %4242 = vmatprep.subr.bf16.mxu1 %v2226_v38  ;;  %v2198_v57 = vadd.f32 %v4761_v27, %v5931_v22  ;;  %v2213_v30 = vmax.f32 %v2197_v13, 0.0 }
 0x857   : > { %v2163_v24 = vadd.f32 %v5877_v33, %v2162_v51  ;;  %v4239_v26 = vpop.f32.mrb[78].mxu0  ;;  %v2216_v50 = vmax.f32 %v2200_v52, 0.0 }
 0x858   : > { %4770 = vtanh.f32 %v2171_v55  ;;  %v2174_v15 = vadd.f32 %v4239_v26, %v5877_v33  ;;  %v2165_v14 = vpop.f32.mrb[79].mxu0  ;;  %v2214_v18 = vmax.f32 %v2198_v57, 0.0 }
 0x859   : > { %4772 = vtanh.f32 %v2163_v24  ;;  %v2166_v20 = vadd.f32 %v5877_v33, %v2165_v14  ;;  %4243 = vmatpush3.bf16.msra.mxu1 %v2226_v38  ;;  %v2228_v4 = vpack.c.bf16 %v2216_v50, %v2215_v12  ;;  %v6127_v50 = vld [vmem:[#allocation11] sm:$0xff]   ;;  %v6137_v14 = vld [vmem:[#allocation11 + $0x10] sm:$0xff]  }
 0x85a   : > { %v4763_v25 = vpop.eup %4762  ;;  %4774 = vtanh.f32 %v2174_v15  ;;  %v2227_v40 = vpack.c.bf16 %v2214_v18, %v2213_v30  ;;  %v6133_v15 = vld [vmem:[#allocation11 + $0x8] sm:$0xff]   ;;  %v6141_v30 = vld [vmem:[%s5624_s16 + $0x18] sm:$0xff]   ;;  %v6153_v18 = vld [vmem:[#allocation11 + $0x20] sm:$0xff]  }
 0x85b   : > { %v4765_v41 = vpop.eup %4764  ;;  %4776 = vtanh.f32 %v2166_v20  ;;  %v2203_v42 = vadd.f32 %v4763_v25, %v5941_v62  ;;  %v6157_v20 = vld [vmem:[%s5624_s16 + $0x28] sm:$0xff]  }
 0x85c   : > { %v4767_v43 = vpop.eup %4766  ;;  %4244 = vmatprep.subr.bf16.mxu1 %v2227_v40  ;;  %v2201_v29 = vadd.f32 %v4765_v41, %v5946_v58  ;;  %v6165_v25 = vld [vmem:[#allocation11 + $0x28] sm:$0xff]   ;;  %v6173_v41 = vld [vmem:[%s5624_s16 + $0x38] sm:$0xff]  }
 0x85d   : > { %v4769_v44 = vpop.eup %4768  ;;  %4245 = vmatpush3.bf16.msra.mxu1 %v2227_v40  ;;  %v2204_v31 = vadd.f32 %v4767_v43, %v5950_v7  ;;  %v2219_v34 = vmax.f32 %v2203_v42, 0.0  ;;  %v6169_v40 = vld [vmem:[#allocation11 + $0x30] sm:$0xff]   ;;  %v6177_v42 = vld [vmem:[#allocation11 + $0x38] sm:$0xff]  }
 0x85e   : > { %4246 = vmatprep.subr.bf16.mxu1 %v2228_v4  ;;  %v2202_v33 = vadd.f32 %v4769_v44, %v5955_v1  ;;  %v2217_v35 = vmax.f32 %v2201_v29, 0.0 }
 0x85f   : > { %v2220_v16 = vmax.f32 %v2204_v31, 0.0 }
 0x860   : > { %v2218_v17 = vmax.f32 %v2202_v33, 0.0 }
 0x861   : > { %4247 = vmatpush3.bf16.msra.mxu1 %v2228_v4  ;;  %v2230_v38 = vpack.c.bf16 %v2220_v16, %v2219_v34  ;;  %v6161_v4 = vld [vmem:[%s5624_s16 + $0x30] sm:$0xff]  }
 0x862   : > { %v4771_v3 = vpop.eup %4770  ;;  %v2229_v10 = vpack.c.bf16 %v2218_v17, %v2217_v35  ;;  %v6182_v17 = vld [vmem:[#allocation13 + $0x8] sm:$0xff]  }
 0x863   : > { %v4773_v9 = vpop.eup %4772  ;;  %v2207_v19 = vadd.f32 %v4771_v3, %v5962_v63 }
 0x864   : > { %v4775_v48 = vpop.eup %4774  ;;  %4248 = vmatprep.subr.bf16.mxu1 %v2229_v10  ;;  %v2205_v13 = vadd.f32 %v4773_v9, %v5966_v37 }
 0x865   : > { %v4777_v27 = vpop.eup %4776  ;;  %4249 = vmatpush3.bf16.msra.mxu1 %v2229_v10  ;;  %v2208_v49 = vadd.f32 %v4775_v48, %v5970_v39  ;;  %v2223_v55 = vmax.f32 %v2207_v19, 0.0  ;;  %v6186_v19 = vld [vmem:[#allocation13 + $0x10] sm:$0xff]  }
 0x866   : > { %4250 = vmatprep.subr.bf16.mxu1 %v2230_v38  ;;  %v2206_v52 = vadd.f32 %v4777_v27, %v5975_v21  ;;  %v2221_v57 = vmax.f32 %v2205_v13, 0.0  ;;  %v6190_v27 = vld [vmem:[#allocation13 + $0x18] sm:$0xff]  }
 0x867   : > { %v2224_v51 = vmax.f32 %v2208_v49, 0.0 }
 0x868   : > { %v2222_v24 = vmax.f32 %v2206_v52, 0.0 }
 0x869   : > { %4251 = vmatpush3.bf16.msra.mxu1 %v2230_v38  ;;  %v2232_v26 = vpack.c.bf16 %v2224_v51, %v2223_v55 }
 0x86a   : > { %v2231_v12 = vpack.c.bf16 %v2222_v24, %v2221_v57  ;;  %v6194_v57 = vld [vmem:[#allocation13 + $0x20] sm:$0xff]  }
 0x86c   : > { %4252 = vmatprep.subr.bf16.mxu1 %v2231_v12 }
 0x86d   : > { %4253 = vmatpush3.bf16.msra.mxu1 %v2231_v12  ;;  %v6198_v12 = vld [vmem:[#allocation13 + $0x28] sm:$0xff]  }
 0x86e   : > { %4254 = vmatprep.subr.bf16.mxu1 %v2232_v26 }
 0x871   : > { %4255 = vmatpush3.bf16.msra.mxu1 %v2232_v26 }
 0x872   : > { %4304 = vmatprep.subr.bf16.mxu1 %v6127_v50 }
 0x874   : > { %4257 = vmatmul.mubr.bf16.vlgmr.msra.gmra.mrb[64].mxu1 %v5982_v54  ;;  %v6145_v54 = vld [vmem:[%s5624_s16 + $0x20] sm:$0xff]  }
 0x875   : > { %4260 = vmatprep.mubr.bf16.mxu1 %v5986_v8  ;;  %4305 = vmatpush3.bf16.msra.mxu1 %v6127_v50  ;;  %v6149_v8 = vld [vmem:[#allocation11 + $0x18] sm:$0xff]  }
 0x876   : > { %4306 = vmatprep.subr.bf16.mxu1 %v6133_v15 }
 0x879   : > { %4307 = vmatpush3.bf16.msra.mxu1 %v6133_v15 }
 0x87a   : > { %4308 = vmatprep.subr.bf16.mxu1 %v6137_v14 }
 0x87c   : > { %4261 = vmatmul.mubr.bf16.gmra.mrb[68].mxu1 %v6141_v30 }
 0x87d   : > { %4264 = vmatprep.mubr.bf16.mxu1 %v6145_v54  ;;  %4309 = vmatpush3.bf16.msra.mxu1 %v6137_v14 }
 0x87e   : > { %4310 = vmatprep.subr.bf16.mxu1 %v6149_v8 }
 0x881   : > { %4311 = vmatpush3.bf16.msra.mxu1 %v6149_v8 }
 0x882   : > { %4312 = vmatprep.subr.bf16.mxu1 %v6153_v18 }
 0x884   : > { %4265 = vmatmul.mubr.bf16.gmra.mrb[72].mxu1 %v6157_v20 }
 0x885   : > { %4268 = vmatprep.mubr.bf16.mxu1 %v6161_v4  ;;  %4313 = vmatpush3.bf16.msra.mxu1 %v6153_v18 }
 0x886   : > { %4314 = vmatprep.subr.bf16.mxu1 %v6165_v25 }
 0x889   : > { %4315 = vmatpush3.bf16.msra.mxu1 %v6165_v25 }
 0x88a   : > { %4316 = vmatprep.subr.bf16.mxu1 %v6169_v40 }
 0x88c   : > { %4269 = vmatmul.mubr.bf16.gmra.mrb[76].mxu1 %v6173_v41 }
 0x88d   : > { %4317 = vmatpush3.bf16.msra.mxu1 %v6169_v40 }
 0x88e   : > { %4318 = vmatprep.subr.bf16.mxu1 %v6177_v42 }
 0x891   : > { %4319 = vmatpush3.bf16.msra.mxu1 %v6177_v42 }
 0x947   : > { %v4258_v43 = vpop.f32.mrb[64].mxu1 }
 0x948   : > { %v2267_v29 = vpop.f32.mrb[65].mxu1 }
 0x949   : > { %v4259_v44 = vpop.f32.mrb[66].mxu1 }
 0x94a   : > { %v2331_v31 = vpack.c.bf16 %v4259_v44, %v4258_v43  ;;  %v2270_v33 = vpop.f32.mrb[67].mxu1 }
 0x94b   : > { %v2330_v34 = vpack.c.bf16 %v2270_v33, %v2267_v29  ;;  %v6202_v33 = vld [vmem:[#allocation13 + $0x30] sm:$0xff]  }
 0x94c   : > { %6586 = vst [vmem:[#allocation30_spill] sm:$0xff] %v6202_v33 }
 0x94d   : > { %4288 = vmatprep.mubr.bf16.mxu0 %v2330_v34  ;;  %v6206_v34 = vld [vmem:[#allocation13 + $0x38] sm:$0xff]  }
 0x94e   : > { %4289 = vmatmul.mubr.bf16.vlgmr.msra.gmra.mrb[80].mxu0 %v2331_v31  ;;  %6587 = vst [vmem:[#allocation31_spill] sm:$0xff] %v6206_v34 }
 0x94f   : > { %v4262_v16 = vpop.f32.mrb[68].mxu1  ;;  %4337 = vmatpush3.bf16.msra.mxu0 %v6092_v61 }
 0x950   : > { %v2283_v35 = vpop.f32.mrb[69].mxu1  ;;  %4338 = vmatprep.subr.bf16.mxu0 %v6182_v17 }
 0x951   : > { %v4263_v38 = vpop.f32.mrb[70].mxu1 }
 0x952   : > { %v2333_v3 = vpack.c.bf16 %v4263_v38, %v4262_v16  ;;  %v2286_v10 = vpop.f32.mrb[71].mxu1 }
 0x953   : > { %v2332_v9 = vpack.c.bf16 %v2286_v10, %v2283_v35  ;;  %4339 = vmatpush3.bf16.msra.mxu0 %v6182_v17  ;;  %v6214_v35 = vld [vmem:[%s6580_s14] ss:$0 sm:$0xff] }
 0x954   : > { %4340 = vmatprep.subr.bf16.mxu0 %v6186_v19 }
 0x955   : > { %4292 = vmatprep.mubr.bf16.mxu0 %v2332_v9 }
 0x956   : > { %4293 = vmatmul.mubr.bf16.gmra.mrb[84].mxu0 %v2333_v3 }
 0x957   : > { %v4266_v48 = vpop.f32.mrb[72].mxu1  ;;  %4341 = vmatpush3.bf16.msra.mxu0 %v6186_v19 }
 0x958   : > { %v2299_v13 = vpop.f32.mrb[73].mxu1  ;;  %4342 = vmatprep.subr.bf16.mxu0 %v6190_v27 }
 0x959   : > { %v4267_v49 = vpop.f32.mrb[74].mxu1 }
 0x95a   : > { %v2335_v52 = vpack.c.bf16 %v4267_v49, %v4266_v48  ;;  %v2302_v55 = vpop.f32.mrb[75].mxu1 }
 0x95b   : > { %v2334_v51 = vpack.c.bf16 %v2302_v55, %v2299_v13  ;;  %4343 = vmatpush3.bf16.msra.mxu0 %v6190_v27 }
 0x95c   : > { %4344 = vmatprep.subr.bf16.mxu0 %v6194_v57 }
 0x95d   : > { %4296 = vmatprep.mubr.bf16.mxu0 %v2334_v51 }
 0x95e   : > { %4297 = vmatmul.mubr.bf16.gmra.mrb[88].mxu0 %v2335_v52 }
 0x95f   : > { %v4270_v24 = vpop.f32.mrb[76].mxu1  ;;  %4345 = vmatpush3.bf16.msra.mxu0 %v6194_v57 }
 0x960   : > { %v2315_v26 = vpop.f32.mrb[77].mxu1  ;;  %4346 = vmatprep.subr.bf16.mxu0 %v6198_v12 }
 0x961   : > { %v4271_v43 = vpop.f32.mrb[78].mxu1 }
 0x962   : > { %v2337_v29 = vpack.c.bf16 %v4271_v43, %v4270_v24  ;;  %v2318_v44 = vpop.f32.mrb[79].mxu1 }
 0x963   : > { %v2336_v31 = vpack.c.bf16 %v2318_v44, %v2315_v26  ;;  %4347 = vmatpush3.bf16.msra.mxu0 %v6198_v12 }
 0x964   : > { %4348 = vmatprep.subr.bf16.mxu0 %v6202_v33 }
 0x965   : > { %4300 = vmatprep.mubr.bf16.mxu0 %v2336_v31 }
 0x966   : > { %4301 = vmatmul.mubr.bf16.gmra.mrb[92].mxu0 %v2337_v29 }
 0x967   : > { %4349 = vmatpush3.bf16.msra.mxu0 %v6202_v33 }
 0x968   : > { %4350 = vmatprep.subr.bf16.mxu0 %v6206_v34 }
 0x96b   : > { %4351 = vmatpush3.bf16.msra.mxu0 %v6206_v34 }
 0x96c   : > { %4400 = vmatprep.subr.bf16.mxu0 %v6024_v47 }
 0xa21   : > { %v4290_v16 = vpop.f32.mrb[80].mxu0 }
 0xa22   : > { %v2381_v38 = vadd.f32 %v6214_v35, %v4290_v16  ;;  %v2372_v3 = vpop.f32.mrb[81].mxu0 }
 0xa23   : > { %v2373_v10 = vadd.f32 %v6214_v35, %v2372_v3  ;;  %v4291_v9 = vpop.f32.mrb[82].mxu0 }
 0xa24   : > { %v2384_v48 = vadd.f32 %v6214_v35, %v4291_v9  ;;  %v2375_v13 = vpop.f32.mrb[83].mxu0  ;;  %v2437_v52 = vmax.f32 %v2381_v38, 0.0 }
 0xa25   : > { %v2376_v49 = vadd.f32 %v6214_v35, %v2375_v13  ;;  %v2435_v51 = vmax.f32 %v2373_v10, 0.0 }
 0xa26   : > { %v2438_v55 = vmax.f32 %v2384_v48, 0.0 }
 0xa27   : > { %v2436_v24 = vmax.f32 %v2376_v49, 0.0 }
 0xa28   : > { %v2452_v26 = vpack.c.bf16 %v2438_v55, %v2437_v52 }
 0xa29   : > { %v2451_v43 = vpack.c.bf16 %v2436_v24, %v2435_v51  ;;  %v4294_v29 = vpop.f32.mrb[84].mxu0 }
 0xa2a   : > { %v2397_v44 = vadd.f32 %v6214_v35, %v4294_v29  ;;  %v2388_v31 = vpop.f32.mrb[85].mxu0 }
 0xa2b   : > { %v2389_v16 = vadd.f32 %v6214_v35, %v2388_v31  ;;  %v4295_v34 = vpop.f32.mrb[86].mxu0  ;;  %4320 = vmatprep.mubr.bf16.mxu1 %v2451_v43 }
 0xa2c   : > { %v2400_v3 = vadd.f32 %v6214_v35, %v4295_v34  ;;  %v2391_v9 = vpop.f32.mrb[87].mxu0  ;;  %4321 = vmatmul.mubr.bf16.vlgmr.msra.gmra.mrb[80].mxu1 %v2452_v26  ;;  %v2441_v38 = vmax.f32 %v2397_v44, 0.0 }
 0xa2d   : > { %v2392_v13 = vadd.f32 %v6214_v35, %v2391_v9  ;;  %v2439_v10 = vmax.f32 %v2389_v16, 0.0 }
 0xa2e   : > { %v2442_v48 = vmax.f32 %v2400_v3, 0.0 }
 0xa2f   : > { %v2440_v49 = vmax.f32 %v2392_v13, 0.0 }
 0xa30   : > { %v2454_v52 = vpack.c.bf16 %v2442_v48, %v2441_v38 }
 0xa31   : > { %v2453_v55 = vpack.c.bf16 %v2440_v49, %v2439_v10  ;;  %v4298_v51 = vpop.f32.mrb[88].mxu0 }
 0xa32   : > { %v2413_v24 = vadd.f32 %v6214_v35, %v4298_v51  ;;  %v2404_v29 = vpop.f32.mrb[89].mxu0 }
 0xa33   : > { %v2405_v31 = vadd.f32 %v6214_v35, %v2404_v29  ;;  %v4299_v33 = vpop.f32.mrb[90].mxu0  ;;  %4324 = vmatprep.mubr.bf16.mxu1 %v2453_v55 }
 0xa34   : > { %v2416_v34 = vadd.f32 %v6214_v35, %v4299_v33  ;;  %v2407_v43 = vpop.f32.mrb[91].mxu0  ;;  %4325 = vmatmul.mubr.bf16.gmra.mrb[84].mxu1 %v2454_v52  ;;  %v2445_v44 = vmax.f32 %v2413_v24, 0.0 }
 0xa35   : > { %v2408_v26 = vadd.f32 %v6214_v35, %v2407_v43  ;;  %v2443_v16 = vmax.f32 %v2405_v31, 0.0 }
 0xa36   : > { %v2446_v3 = vmax.f32 %v2416_v34, 0.0 }
 0xa37   : > { %v2444_v9 = vmax.f32 %v2408_v26, 0.0 }
 0xa38   : > { %v2456_v13 = vpack.c.bf16 %v2446_v3, %v2445_v44 }
 0xa39   : > { %v2455_v38 = vpack.c.bf16 %v2444_v9, %v2443_v16  ;;  %v4302_v48 = vpop.f32.mrb[92].mxu0  ;;  %v6236_v16 = vld [vmem:[%s6582_s27] ss:$0 sm:$0xff] }
 0xa3a   : > { %v2429_v10 = vadd.f32 %v6214_v35, %v4302_v48  ;;  %v2420_v49 = vpop.f32.mrb[93].mxu0 }
 0xa3b   : > { %v2421_v51 = vadd.f32 %v6214_v35, %v2420_v49  ;;  %v4303_v29 = vpop.f32.mrb[94].mxu0  ;;  %4328 = vmatprep.mubr.bf16.mxu1 %v2455_v38 }
 0xa3c   : > { %v2432_v33 = vadd.f32 %v6214_v35, %v4303_v29  ;;  %v2423_v55 = vpop.f32.mrb[95].mxu0  ;;  %4329 = vmatmul.mubr.bf16.gmra.mrb[88].mxu1 %v2456_v13  ;;  %v2449_v24 = vmax.f32 %v2429_v10, 0.0 }
 0xa3d   : > { %v2424_v52 = vadd.f32 %v6214_v35, %v2423_v55  ;;  %v2447_v31 = vmax.f32 %v2421_v51, 0.0 }
 0xa3e   : > { %v2450_v34 = vmax.f32 %v2432_v33, 0.0 }
 0xa3f   : > { %v2448_v43 = vmax.f32 %v2424_v52, 0.0 }
 0xa40   : > { %v2458_v26 = vpack.c.bf16 %v2450_v34, %v2449_v24 }
 0xa41   : > { %v2457_v44 = vpack.c.bf16 %v2448_v43, %v2447_v31 }
 0xa43   : > { %4332 = vmatprep.mubr.bf16.mxu1 %v2457_v44 }
 0xa44   : > { %4333 = vmatmul.mubr.bf16.gmra.mrb[92].mxu1 %v2458_v26 }
 0xa45   : > { %4384 = vmatprep.mubr.bf16.mxu1 %v6044_v6 }
 0xaff   : > { %v4322_v3 = vpop.f32.mrb[80].mxu1 }
 0xb00   : > { %v2502_v9 = vadd.f32 %v6236_v16, %v4322_v3  ;;  %v2493_v13 = vpop.f32.mrb[81].mxu1 }
 0xb01   : > { %v2494_v38 = vadd.f32 %v6236_v16, %v2493_v13  ;;  %v4323_v48 = vpop.f32.mrb[82].mxu1 }
 0xb02   : > { %v2505_v10 = vadd.f32 %v6236_v16, %v4323_v48  ;;  %v2496_v49 = vpop.f32.mrb[83].mxu1  ;;  %v2558_v29 = vmax.f32 %v2502_v9, 0.0 }
 0xb03   : > { %v2497_v51 = vadd.f32 %v6236_v16, %v2496_v49  ;;  %v2556_v6 = vmax.f32 %v2494_v38, 0.0 }
 0xb04   : > { %v2559_v33 = vmax.f32 %v2505_v10, 0.0 }
 0xb05   : > { %v2557_v55 = vmax.f32 %v2497_v51, 0.0 }
 0xb06   : > { %v2573_v52 = vpack.c.bf16 %v2559_v33, %v2558_v29 }
 0xb07   : > { %v2572_v24 = vpack.c.bf16 %v2557_v55, %v2556_v6  ;;  %v4326_v34 = vpop.f32.mrb[84].mxu1 }
 0xb08   : > { %v2518_v31 = vadd.f32 %v6236_v16, %v4326_v34  ;;  %v2509_v43 = vpop.f32.mrb[85].mxu1 }
 0xb09   : > { %v2510_v26 = vadd.f32 %v6236_v16, %v2509_v43  ;;  %v4327_v44 = vpop.f32.mrb[86].mxu1  ;;  %4352 = vmatprep.mubr.bf16.mxu0 %v2572_v24 }
 0xb0a   : > { %v2521_v3 = vadd.f32 %v6236_v16, %v4327_v44  ;;  %v2512_v13 = vpop.f32.mrb[87].mxu1  ;;  %4353 = vmatmul.mubr.bf16.vlgmr.msra.gmra.mrb[96].mxu0 %v2573_v52  ;;  %v2562_v9 = vmax.f32 %v2518_v31, 0.0 }
 0xb0b   : > { %v2513_v48 = vadd.f32 %v6236_v16, %v2512_v13  ;;  %4401 = vmatpush3.bf16.msra.mxu0 %v6024_v47  ;;  %v2560_v10 = vmax.f32 %v2510_v26, 0.0 }
 0xb0c   : > { %v2563_v38 = vmax.f32 %v2521_v3, 0.0  ;;  %4402 = vmatprep.subr.bf16.mxu0 %v6056_v46 }
 0xb0d   : > { %v2561_v49 = vmax.f32 %v2513_v48, 0.0 }
 0xb0e   : > { %v2575_v51 = vpack.c.bf16 %v2563_v38, %v2562_v9 }
 0xb0f   : > { %v2574_v29 = vpack.c.bf16 %v2561_v49, %v2560_v10  ;;  %v4330_v33 = vpop.f32.mrb[88].mxu1  ;;  %4403 = vmatpush3.bf16.msra.mxu0 %v6056_v46 }
 0xb10   : > { %v2534_v6 = vadd.f32 %v6236_v16, %v4330_v33  ;;  %v2525_v55 = vpop.f32.mrb[89].mxu1  ;;  %4404 = vmatprep.subr.bf16.mxu0 %v6061_v2 }
 0xb11   : > { %v2526_v52 = vadd.f32 %v6236_v16, %v2525_v55  ;;  %v4331_v24 = vpop.f32.mrb[90].mxu1  ;;  %4356 = vmatprep.mubr.bf16.mxu0 %v2574_v29 }
 0xb12   : > { %v2537_v47 = vadd.f32 %v6236_v16, %v4331_v24  ;;  %v2528_v34 = vpop.f32.mrb[91].mxu1  ;;  %4357 = vmatmul.mubr.bf16.gmra.mrb[100].mxu0 %v2575_v51  ;;  %v2566_v43 = vmax.f32 %v2534_v6, 0.0 }
 0xb13   : > { %v2529_v31 = vadd.f32 %v6236_v16, %v2528_v34  ;;  %4405 = vmatpush3.bf16.msra.mxu0 %v6061_v2  ;;  %v2564_v46 = vmax.f32 %v2526_v52, 0.0 }
 0xb14   : > { %v2567_v26 = vmax.f32 %v2537_v47, 0.0  ;;  %4406 = vmatprep.subr.bf16.mxu0 %v6068_v60  ;;  %v6273_v47 = vld [vmem:[%s6583_s28] ss:$0 sm:$0xff] }
 0xb15   : > { %v2565_v44 = vmax.f32 %v2529_v31, 0.0 }
 0xb16   : > { %v2577_v3 = vpack.c.bf16 %v2567_v26, %v2566_v43 }
 0xb17   : > { %v2576_v13 = vpack.c.bf16 %v2565_v44, %v2564_v46  ;;  %v4334_v48 = vpop.f32.mrb[92].mxu1  ;;  %4407 = vmatpush3.bf16.msra.mxu0 %v6068_v60 }
 0xb18   : > { %v2550_v9 = vadd.f32 %v6236_v16, %v4334_v48  ;;  %v2541_v38 = vpop.f32.mrb[93].mxu1  ;;  %4408 = vmatprep.subr.bf16.mxu0 %v6073_v23 }
 0xb19   : > { %v2542_v10 = vadd.f32 %v6236_v16, %v2541_v38  ;;  %v4335_v49 = vpop.f32.mrb[94].mxu1  ;;  %4360 = vmatprep.mubr.bf16.mxu0 %v2576_v13 }
 0xb1a   : > { %v2553_v2 = vadd.f32 %v6236_v16, %v4335_v49  ;;  %v2544_v51 = vpop.f32.mrb[95].mxu1  ;;  %4361 = vmatmul.mubr.bf16.gmra.mrb[104].mxu0 %v2577_v3  ;;  %v2570_v33 = vmax.f32 %v2550_v9, 0.0 }
 0xb1b   : > { %v2545_v29 = vadd.f32 %v6236_v16, %v2544_v51  ;;  %4409 = vmatpush3.bf16.msra.mxu0 %v6073_v23  ;;  %v2568_v60 = vmax.f32 %v2542_v10, 0.0 }
 0xb1c   : > { %v2571_v6 = vmax.f32 %v2553_v2, 0.0  ;;  %4410 = vmatprep.subr.bf16.mxu0 %v6080_v45 }
 0xb1d   : > { %v2569_v55 = vmax.f32 %v2545_v29, 0.0 }
 0xb1e   : > { %v2579_v52 = vpack.c.bf16 %v2571_v6, %v2570_v33 }
 0xb1f   : > { %v2578_v24 = vpack.c.bf16 %v2569_v55, %v2568_v60  ;;  %4411 = vmatpush3.bf16.msra.mxu0 %v6080_v45 }
 0xb20   : > { %4412 = vmatprep.subr.bf16.mxu0 %v6084_v36 }
 0xb21   : > { %4364 = vmatprep.mubr.bf16.mxu0 %v2578_v24 }
 0xb22   : > { %4365 = vmatmul.mubr.bf16.gmra.mrb[108].mxu0 %v2579_v52 }
 0xb23   : > { %4413 = vmatpush3.bf16.msra.mxu0 %v6084_v36 }
 0xb24   : > { %4414 = vmatprep.subr.bf16.mxu0 %v6088_v53 }
 0xb27   : > { %4415 = vmatpush3.bf16.msra.mxu0 %v6088_v53 }
 0xb28   : > { %4464 = vmatprep.subr.bf16.mxu0 %v6092_v61 }
 0xbdd   : > { %v4354_v23 = vpop.f32.mrb[96].mxu0 }
 0xbde   : > { %v2623_v45 = vadd.f32 %v6273_v47, %v4354_v23  ;;  %v2614_v34 = vpop.f32.mrb[97].mxu0 }
 0xbdf   : > { %v2615_v31 = vadd.f32 %v6273_v47, %v2614_v34  ;;  %v4355_v43 = vpop.f32.mrb[98].mxu0 }
 0xbe0   : > { %4778 = vtanh.f32 %v2623_v45  ;;  %v2626_v36 = vadd.f32 %v6273_v47, %v4355_v43  ;;  %v2617_v26 = vpop.f32.mrb[99].mxu0 }
 0xbe1   : > { %4780 = vtanh.f32 %v2615_v31  ;;  %v2618_v53 = vadd.f32 %v6273_v47, %v2617_v26 }
 0xbe2   : > { %4782 = vtanh.f32 %v2626_v36 }
 0xbe3   : > { %4784 = vtanh.f32 %v2618_v53 }
 0xbe5   : > { %v4358_v46 = vpop.f32.mrb[100].mxu0 }
 0xbe6   : > { %v2639_v44 = vadd.f32 %v6273_v47, %v4358_v46  ;;  %v2630_v3 = vpop.f32.mrb[101].mxu0 }
 0xbe7   : > { %v2631_v13 = vadd.f32 %v6273_v47, %v2630_v3  ;;  %v4359_v48 = vpop.f32.mrb[102].mxu0 }
 0xbe8   : > { %4786 = vtanh.f32 %v2639_v44  ;;  %v2642_v9 = vadd.f32 %v6273_v47, %v4359_v48  ;;  %v2633_v38 = vpop.f32.mrb[103].mxu0 }
 0xbe9   : > { %4788 = vtanh.f32 %v2631_v13  ;;  %v2634_v10 = vadd.f32 %v6273_v47, %v2633_v38 }
 0xbea   : > { %v4779_v49 = vpop.eup %4778  ;;  %4790 = vtanh.f32 %v2642_v9 }
 0xbeb   : > { %v4781_v2 = vpop.eup %4780  ;;  %4792 = vtanh.f32 %v2634_v10  ;;  %v2695_v51 = vadd.f32 %v4779_v49, %v5893_v28 }
 0xbec   : > { %v4783_v29 = vpop.eup %4782  ;;  %v2693_v33 = vadd.f32 %v4781_v2, %v5898_v0 }
 0xbed   : > { %v4785_v6 = vpop.eup %4784  ;;  %v4362_v60 = vpop.f32.mrb[104].mxu0  ;;  %v2696_v55 = vadd.f32 %v4783_v29, %v5902_v32  ;;  %v2711_v31 = vmax.f32 %v2695_v51, 0.0 }
 0xbee   : > { %v2655_v52 = vadd.f32 %v6273_v47, %v4362_v60  ;;  %v2646_v24 = vpop.f32.mrb[105].mxu0  ;;  %v2694_v23 = vadd.f32 %v4785_v6, %v5907_v59  ;;  %v2709_v53 = vmax.f32 %v2693_v33, 0.0 }
 0xbef   : > { %v2647_v45 = vadd.f32 %v6273_v47, %v2646_v24  ;;  %v4363_v34 = vpop.f32.mrb[106].mxu0  ;;  %v2712_v43 = vmax.f32 %v2696_v55, 0.0 }
 0xbf0   : > { %4794 = vtanh.f32 %v2655_v52  ;;  %v2658_v36 = vadd.f32 %v6273_v47, %v4363_v34  ;;  %v2649_v26 = vpop.f32.mrb[107].mxu0  ;;  %v2710_v46 = vmax.f32 %v2694_v23, 0.0 }
 0xbf1   : > { %4796 = vtanh.f32 %v2647_v45  ;;  %v2650_v44 = vadd.f32 %v6273_v47, %v2649_v26  ;;  %v2726_v3 = vpack.c.bf16 %v2712_v43, %v2711_v31 }
 0xbf2   : > { %v4787_v13 = vpop.eup %4786  ;;  %4798 = vtanh.f32 %v2658_v36  ;;  %v2725_v48 = vpack.c.bf16 %v2710_v46, %v2709_v53 }
 0xbf3   : > { %v4789_v9 = vpop.eup %4788  ;;  %4800 = vtanh.f32 %v2650_v44  ;;  %v2699_v38 = vadd.f32 %v4787_v13, %v5917_v56 }
 0xbf4   : > { %v4791_v10 = vpop.eup %4790  ;;  %4368 = vmatprep.subr.bf16.mxu1 %v2725_v48  ;;  %v2697_v49 = vadd.f32 %v4789_v9, %v5922_v11 }
 0xbf5   : > { %v4793_v2 = vpop.eup %4792  ;;  %v4366_v51 = vpop.f32.mrb[108].mxu0  ;;  %4369 = vmatpush3.bf16.msra.mxu1 %v2725_v48  ;;  %v2700_v29 = vadd.f32 %v4791_v10, %v5926_v5  ;;  %v2715_v24 = vmax.f32 %v2699_v38, 0.0 }
 0xbf6   : > { %v2671_v33 = vadd.f32 %v6273_v47, %v4366_v51  ;;  %v2662_v6 = vpop.f32.mrb[109].mxu0  ;;  %4370 = vmatprep.subr.bf16.mxu1 %v2726_v3  ;;  %v2698_v60 = vadd.f32 %v4793_v2, %v5931_v22  ;;  %v2713_v31 = vmax.f32 %v2697_v49, 0.0 }
 0xbf7   : > { %v2663_v55 = vadd.f32 %v6273_v47, %v2662_v6  ;;  %v4367_v52 = vpop.f32.mrb[110].mxu0  ;;  %v2716_v23 = vmax.f32 %v2700_v29, 0.0 }
 0xbf8   : > { %4802 = vtanh.f32 %v2671_v33  ;;  %v2674_v45 = vadd.f32 %v6273_v47, %v4367_v52  ;;  %v2665_v34 = vpop.f32.mrb[111].mxu0  ;;  %v2714_v43 = vmax.f32 %v2698_v60, 0.0 }
 0xbf9   : > { %4804 = vtanh.f32 %v2663_v55  ;;  %v2666_v36 = vadd.f32 %v6273_v47, %v2665_v34  ;;  %4371 = vmatpush3.bf16.msra.mxu1 %v2726_v3  ;;  %v2728_v26 = vpack.c.bf16 %v2716_v23, %v2715_v24 }
 0xbfa   : > { %v4795_v53 = vpop.eup %4794  ;;  %4806 = vtanh.f32 %v2674_v45  ;;  %v2727_v46 = vpack.c.bf16 %v2714_v43, %v2713_v31 }
 0xbfb   : > { %v4797_v44 = vpop.eup %4796  ;;  %4808 = vtanh.f32 %v2666_v36  ;;  %v2703_v13 = vadd.f32 %v4795_v53, %v5941_v62 }
 0xbfc   : > { %v4799_v48 = vpop.eup %4798  ;;  %4372 = vmatprep.subr.bf16.mxu1 %v2727_v46  ;;  %v2701_v9 = vadd.f32 %v4797_v44, %v5946_v58 }
 0xbfd   : > { %v4801_v38 = vpop.eup %4800  ;;  %4373 = vmatpush3.bf16.msra.mxu1 %v2727_v46  ;;  %v2704_v10 = vadd.f32 %v4799_v48, %v5950_v7  ;;  %v2719_v3 = vmax.f32 %v2703_v13, 0.0  ;;  %v4877_v13 = vld [vmem:[%s5624_s16 + $0x8] sm:$0xff]   ;;  %v4878_v48 = vld [vmem:[%s5624_s16 + $0x10] sm:$0xff]   ;;  %s6590_s16 = sld [smem:[#allocation33_spill]] }
 0xbfe   : > { %4374 = vmatprep.subr.bf16.mxu1 %v2728_v26  ;;  %v2702_v49 = vadd.f32 %v4801_v38, %v5955_v1  ;;  %v2717_v51 = vmax.f32 %v2701_v9, 0.0 }
 0xbff   : > { %v2720_v2 = vmax.f32 %v2704_v10, 0.0 }
 0xc00   : > { %v2718_v29 = vmax.f32 %v2702_v49, 0.0 }
 0xc01   : > { %4375 = vmatpush3.bf16.msra.mxu1 %v2728_v26  ;;  %v2730_v33 = vpack.c.bf16 %v2720_v2, %v2719_v3 }
 0xc02   : > { %v4803_v6 = vpop.eup %4802  ;;  %v2729_v60 = vpack.c.bf16 %v2718_v29, %v2717_v51 }
 0xc03   : > { %v4805_v55 = vpop.eup %4804  ;;  %v2707_v52 = vadd.f32 %v4803_v6, %v5962_v63 }
 0xc04   : > { %v4807_v24 = vpop.eup %4806  ;;  %4376 = vmatprep.subr.bf16.mxu1 %v2729_v60  ;;  %v2705_v23 = vadd.f32 %v4805_v55, %v5966_v37 }
 0xc05   : > { %v4809_v45 = vpop.eup %4808  ;;  %4377 = vmatpush3.bf16.msra.mxu1 %v2729_v60  ;;  %v2708_v34 = vadd.f32 %v4807_v24, %v5970_v39  ;;  %v2723_v43 = vmax.f32 %v2707_v52, 0.0 }
 0xc06   : > { %4378 = vmatprep.subr.bf16.mxu1 %v2730_v33  ;;  %v2706_v31 = vadd.f32 %v4809_v45, %v5975_v21  ;;  %v2721_v26 = vmax.f32 %v2705_v23, 0.0 }
 0xc07   : > { %v2724_v36 = vmax.f32 %v2708_v34, 0.0 }
 0xc08   : > { %v2722_v53 = vmax.f32 %v2706_v31, 0.0 }
 0xc09   : > { %4379 = vmatpush3.bf16.msra.mxu1 %v2730_v33  ;;  %v2732_v46 = vpack.c.bf16 %v2724_v36, %v2723_v43  ;;  %v6588_v33 = vld [vmem:[#allocation30_spill] sm:$0xff] }
 0xc0a   : > { %v2731_v44 = vpack.c.bf16 %v2722_v53, %v2721_v26 }
 0xc0c   : > { %4380 = vmatprep.subr.bf16.mxu1 %v2731_v44 }
 0xc0d   : > { %4381 = vmatpush3.bf16.msra.mxu1 %v2731_v44 }
 0xc0e   : > { %4382 = vmatprep.subr.bf16.mxu1 %v2732_v46 }
 0xc11   : > { %4383 = vmatpush3.bf16.msra.mxu1 %v2732_v46 }
 0xc12   : > { %4432 = vmatprep.subr.bf16.mxu1 %v6127_v50 }
 0xc14   : > { %4385 = vmatmul.mubr.bf16.vlgmr.msra.gmra.mrb[96].mxu1 %v4877_v13 }
 0xc15   : > { %4388 = vmatprep.mubr.bf16.mxu1 %v4878_v48  ;;  %4433 = vmatpush3.bf16.msra.mxu1 %v6127_v50 }
 0xc16   : > { %4434 = vmatprep.subr.bf16.mxu1 %v6133_v15 }
 0xc19   : > { %4435 = vmatpush3.bf16.msra.mxu1 %v6133_v15 }
 0xc1a   : > { %4436 = vmatprep.subr.bf16.mxu1 %v6137_v14 }
 0xc1c   : > { %4389 = vmatmul.mubr.bf16.gmra.mrb[100].mxu1 %v6141_v30 }
 0xc1d   : > { %4392 = vmatprep.mubr.bf16.mxu1 %v6145_v54  ;;  %4437 = vmatpush3.bf16.msra.mxu1 %v6137_v14 }
 0xc1e   : > { %4438 = vmatprep.subr.bf16.mxu1 %v6149_v8 }
 0xc21   : > { %4439 = vmatpush3.bf16.msra.mxu1 %v6149_v8 }
 0xc22   : > { %4440 = vmatprep.subr.bf16.mxu1 %v6153_v18 }
 0xc24   : > { %4393 = vmatmul.mubr.bf16.gmra.mrb[104].mxu1 %v6157_v20 }
 0xc25   : > { %4396 = vmatprep.mubr.bf16.mxu1 %v6161_v4  ;;  %4441 = vmatpush3.bf16.msra.mxu1 %v6153_v18 }
 0xc26   : > { %4442 = vmatprep.subr.bf16.mxu1 %v6165_v25 }
 0xc29   : > { %4443 = vmatpush3.bf16.msra.mxu1 %v6165_v25 }
 0xc2a   : > { %4444 = vmatprep.subr.bf16.mxu1 %v6169_v40 }
 0xc2c   : > { %4397 = vmatmul.mubr.bf16.gmra.mrb[108].mxu1 %v6173_v41 }
 0xc2d   : > { %4445 = vmatpush3.bf16.msra.mxu1 %v6169_v40 }
 0xc2e   : > { %4446 = vmatprep.subr.bf16.mxu1 %v6177_v42 }
 0xc31   : > { %4447 = vmatpush3.bf16.msra.mxu1 %v6177_v42 }
 0xce7   : > { %v4386_v50 = vpop.f32.mrb[96].mxu1 }
 0xce8   : > { %v2767_v15 = vpop.f32.mrb[97].mxu1 }
 0xce9   : > { %v4387_v14 = vpop.f32.mrb[98].mxu1 }
 0xcea   : > { %v2831_v30 = vpack.c.bf16 %v4387_v14, %v4386_v50  ;;  %v2770_v54 = vpop.f32.mrb[99].mxu1 }
 0xceb   : > { %v2830_v8 = vpack.c.bf16 %v2770_v54, %v2767_v15 }
 0xced   : > { %4416 = vmatprep.mubr.bf16.mxu0 %v2830_v8 }
 0xcee   : > { %4417 = vmatmul.mubr.bf16.vlgmr.msra.gmra.mrb[112].mxu0 %v2831_v30 }
 0xcef   : > { %v4390_v18 = vpop.f32.mrb[100].mxu1  ;;  %4465 = vmatpush3.bf16.msra.mxu0 %v6092_v61 }
 0xcf0   : > { %v2783_v20 = vpop.f32.mrb[101].mxu1  ;;  %4466 = vmatprep.subr.bf16.mxu0 %v6182_v17 }
 0xcf1   : > { %v4391_v4 = vpop.f32.mrb[102].mxu1 }
 0xcf2   : > { %v2833_v25 = vpack.c.bf16 %v4391_v4, %v4390_v18  ;;  %v2786_v40 = vpop.f32.mrb[103].mxu1 }
 0xcf3   : > { %v2832_v41 = vpack.c.bf16 %v2786_v40, %v2783_v20  ;;  %4467 = vmatpush3.bf16.msra.mxu0 %v6182_v17 }
 0xcf4   : > { %4468 = vmatprep.subr.bf16.mxu0 %v6186_v19 }
 0xcf5   : > { %4420 = vmatprep.mubr.bf16.mxu0 %v2832_v41 }
 0xcf6   : > { %4421 = vmatmul.mubr.bf16.gmra.mrb[116].mxu0 %v2833_v25 }
 0xcf7   : > { %v4394_v42 = vpop.f32.mrb[104].mxu1  ;;  %4469 = vmatpush3.bf16.msra.mxu0 %v6186_v19 }
 0xcf8   : > { %v2799_v9 = vpop.f32.mrb[105].mxu1  ;;  %4470 = vmatprep.subr.bf16.mxu0 %v6190_v27 }
 0xcf9   : > { %v4395_v61 = vpop.f32.mrb[106].mxu1 }
 0xcfa   : > { %v2835_v38 = vpack.c.bf16 %v4395_v61, %v4394_v42  ;;  %v2802_v10 = vpop.f32.mrb[107].mxu1 }
 0xcfb   : > { %v2834_v49 = vpack.c.bf16 %v2802_v10, %v2799_v9  ;;  %4471 = vmatpush3.bf16.msra.mxu0 %v6190_v27  ;;  %v6589_v27 = vld [vmem:[#allocation31_spill] sm:$0xff] }
 0xcfc   : > { %4472 = vmatprep.subr.bf16.mxu0 %v6194_v57 }
 0xcfd   : > { %4424 = vmatprep.mubr.bf16.mxu0 %v2834_v49 }
 0xcfe   : > { %4425 = vmatmul.mubr.bf16.gmra.mrb[120].mxu0 %v2835_v38 }
 0xcff   : > { %v4398_v17 = vpop.f32.mrb[108].mxu1  ;;  %4473 = vmatpush3.bf16.msra.mxu0 %v6194_v57 }
 0xd00   : > { %v2815_v3 = vpop.f32.mrb[109].mxu1  ;;  %4474 = vmatprep.subr.bf16.mxu0 %v6198_v12 }
 0xd01   : > { %v4399_v19 = vpop.f32.mrb[110].mxu1 }
 0xd02   : > { %v2837_v2 = vpack.c.bf16 %v4399_v19, %v4398_v17  ;;  %v2818_v51 = vpop.f32.mrb[111].mxu1 }
 0xd03   : > { %v2836_v29 = vpack.c.bf16 %v2818_v51, %v2815_v3  ;;  %4475 = vmatpush3.bf16.msra.mxu0 %v6198_v12 }
 0xd04   : > { %4476 = vmatprep.subr.bf16.mxu0 %v6588_v33 }
 0xd05   : > { %4428 = vmatprep.mubr.bf16.mxu0 %v2836_v29 }
 0xd06   : > { %4429 = vmatmul.mubr.bf16.gmra.mrb[124].mxu0 %v2837_v2 }
 0xd07   : > { %4477 = vmatpush3.bf16.msra.mxu0 %v6588_v33 }
 0xd08   : > { %4478 = vmatprep.subr.bf16.mxu0 %v6589_v27 }
 0xd0b   : > { %4479 = vmatpush3.bf16.msra.mxu0 %v6589_v27 }
 0xdc1   : > { %v4418_v57 = vpop.f32.mrb[112].mxu0 }
 0xdc2   : > { %v2881_v6 = vadd.f32 %v6214_v35, %v4418_v57  ;;  %v2872_v60 = vpop.f32.mrb[113].mxu0 }
 0xdc3   : > { %v2873_v55 = vadd.f32 %v6214_v35, %v2872_v60  ;;  %v4419_v52 = vpop.f32.mrb[114].mxu0 }
 0xdc4   : > { %v2884_v24 = vadd.f32 %v6214_v35, %v4419_v52  ;;  %v2875_v12 = vpop.f32.mrb[115].mxu0  ;;  %v2937_v45 = vmax.f32 %v2881_v6, 0.0 }
 0xdc5   : > { %v2876_v23 = vadd.f32 %v6214_v35, %v2875_v12  ;;  %v2935_v31 = vmax.f32 %v2873_v55, 0.0 }
 0xdc6   : > { %v2938_v34 = vmax.f32 %v2884_v24, 0.0 }
 0xdc7   : > { %v2936_v43 = vmax.f32 %v2876_v23, 0.0 }
 0xdc8   : > { %v2952_v36 = vpack.c.bf16 %v2938_v34, %v2937_v45 }
 0xdc9   : > { %v2951_v26 = vpack.c.bf16 %v2936_v43, %v2935_v31  ;;  %v4422_v53 = vpop.f32.mrb[116].mxu0 }
 0xdca   : > { %v2897_v46 = vadd.f32 %v6214_v35, %v4422_v53  ;;  %v2888_v44 = vpop.f32.mrb[117].mxu0 }
 0xdcb   : > { %v2889_v13 = vadd.f32 %v6214_v35, %v2888_v44  ;;  %v4423_v48 = vpop.f32.mrb[118].mxu0  ;;  %4448 = vmatprep.mubr.bf16.mxu1 %v2951_v26 }
 0xdcc   : > { %v2900_v50 = vadd.f32 %v6214_v35, %v4423_v48  ;;  %v2891_v15 = vpop.f32.mrb[119].mxu0  ;;  %4449 = vmatmul.mubr.bf16.vlgmr.msra.gmra.mrb[112].mxu1 %v2952_v36  ;;  %v2941_v30 = vmax.f32 %v2897_v46, 0.0 }
 0xdcd   : > { %v2892_v14 = vadd.f32 %v6214_v35, %v2891_v15  ;;  %v2939_v8 = vmax.f32 %v2889_v13, 0.0 }
 0xdce   : > { %v2942_v54 = vmax.f32 %v2900_v50, 0.0 }
 0xdcf   : > { %v2940_v18 = vmax.f32 %v2892_v14, 0.0 }
 0xdd0   : > { %v2954_v20 = vpack.c.bf16 %v2942_v54, %v2941_v30 }
 0xdd1   : > { %v2953_v4 = vpack.c.bf16 %v2940_v18, %v2939_v8  ;;  %v4426_v25 = vpop.f32.mrb[120].mxu0 }
 0xdd2   : > { %v2913_v40 = vadd.f32 %v6214_v35, %v4426_v25  ;;  %v2904_v41 = vpop.f32.mrb[121].mxu0 }
 0xdd3   : > { %v2905_v42 = vadd.f32 %v6214_v35, %v2904_v41  ;;  %v4427_v9 = vpop.f32.mrb[122].mxu0  ;;  %4452 = vmatprep.mubr.bf16.mxu1 %v2953_v4 }
 0xdd4   : > { %v2916_v61 = vadd.f32 %v6214_v35, %v4427_v9  ;;  %v2907_v38 = vpop.f32.mrb[123].mxu0  ;;  %4453 = vmatmul.mubr.bf16.gmra.mrb[116].mxu1 %v2954_v20  ;;  %v2945_v49 = vmax.f32 %v2913_v40, 0.0 }
 0xdd5   : > { %v2908_v10 = vadd.f32 %v6214_v35, %v2907_v38  ;;  %v2943_v3 = vmax.f32 %v2905_v42, 0.0 }
 0xdd6   : > { %v2946_v17 = vmax.f32 %v2916_v61, 0.0 }
 0xdd7   : > { %v2944_v19 = vmax.f32 %v2908_v10, 0.0 }
 0xdd8   : > { %v2956_v2 = vpack.c.bf16 %v2946_v17, %v2945_v49 }
 0xdd9   : > { %v2955_v51 = vpack.c.bf16 %v2944_v19, %v2943_v3  ;;  %v4430_v29 = vpop.f32.mrb[124].mxu0 }
 0xdda   : > { %v2929_v33 = vadd.f32 %v6214_v35, %v4430_v29  ;;  %v2920_v27 = vpop.f32.mrb[125].mxu0 }
 0xddb   : > { %v2921_v57 = vadd.f32 %v6214_v35, %v2920_v27  ;;  %v4431_v6 = vpop.f32.mrb[126].mxu0  ;;  %4456 = vmatprep.mubr.bf16.mxu1 %v2955_v51 }
 0xddc   : > { %v2932_v60 = vadd.f32 %v6214_v35, %v4431_v6  ;;  %v2923_v55 = vpop.f32.mrb[127].mxu0  ;;  %4457 = vmatmul.mubr.bf16.gmra.mrb[120].mxu1 %v2956_v2  ;;  %v2949_v24 = vmax.f32 %v2929_v33, 0.0 }
 0xddd   : > { %v2924_v52 = vadd.f32 %v6214_v35, %v2923_v55  ;;  %v2947_v23 = vmax.f32 %v2921_v57, 0.0 }
 0xdde   : > { %v2950_v12 = vmax.f32 %v2932_v60, 0.0 }
 0xddf   : > { %v2948_v45 = vmax.f32 %v2924_v52, 0.0 }
 0xde0   : > { %v2958_v34 = vpack.c.bf16 %v2950_v12, %v2949_v24 }
 0xde1   : > { %v2957_v31 = vpack.c.bf16 %v2948_v45, %v2947_v23 }
 0xde3   : > { %4460 = vmatprep.mubr.bf16.mxu1 %v2957_v31 }
 0xde4   : > { %4461 = vmatmul.mubr.bf16.gmra.mrb[124].mxu1 %v2958_v34 }
 0xe9f   : > { %v4450_v43 = vpop.f32.mrb[112].mxu1 }
 0xea0   : > { %v3002_v36 = vadd.f32 %v6236_v16, %v4450_v43  ;;  %v2993_v26 = vpop.f32.mrb[113].mxu1 }
 0xea1   : > { %v2994_v53 = vadd.f32 %v6236_v16, %v2993_v26  ;;  %v4451_v46 = vpop.f32.mrb[114].mxu1 }
 0xea2   : > { %v3005_v44 = vadd.f32 %v6236_v16, %v4451_v46  ;;  %v2996_v13 = vpop.f32.mrb[115].mxu1  ;;  %v3058_v48 = vmax.f32 %v3002_v36, 0.0 }
 0xea3   : > { %v2997_v35 = vadd.f32 %v6236_v16, %v2996_v13  ;;  %v3056_v15 = vmax.f32 %v2994_v53, 0.0 }
 0xea4   : > { %v3059_v50 = vmax.f32 %v3005_v44, 0.0 }
 0xea5   : > { %v3057_v14 = vmax.f32 %v2997_v35, 0.0 }
 0xea6   : > { %v3073_v30 = vpack.c.bf16 %v3059_v50, %v3058_v48 }
 0xea7   : > { %v3072_v54 = vpack.c.bf16 %v3057_v14, %v3056_v15  ;;  %v4454_v8 = vpop.f32.mrb[116].mxu1  ;;  %v5203_v15 = vmov 0.0   ;;  %v4706_v14 = vld [vmem:[#allocation14] sm:$0xff]  }
 0xea8   : > { %v3018_v18 = vadd.f32 %v6236_v16, %v4454_v8  ;;  %v3009_v20 = vpop.f32.mrb[117].mxu1  ;;  %4496 = vmatprep.subr.bf16.mxu1 %v5203_v15  ;;  %4516 = vmatprep.subr.bf16.mxu0 %v5203_v15  ;;  %v4710_v8 = vld [vmem:[#allocation14 + $0x20] sm:$0xff]  }
 0xea9   : > { %v3010_v4 = vadd.f32 %v6236_v16, %v3009_v20  ;;  %v4455_v25 = vpop.f32.mrb[118].mxu1  ;;  %4480 = vmatprep.mubr.bf16.mxu0 %v3072_v54  ;;  %4512 = vmatprep.mubr.msk.bf16.mxu1 %vm5204_vm0, %v5203_v15  ;;  %v4709_v54 = vld [vmem:[#allocation14 + $0x18] sm:$0xff]   ;;  %v4712_v20 = vld [vmem:[#allocation14 + $0x30] sm:$0xff]  }
 0xeaa   : > { %v3021_v40 = vadd.f32 %v6236_v16, %v4455_v25  ;;  %v3012_v41 = vpop.f32.mrb[119].mxu1  ;;  %4481 = vmatmul.mubr.bf16.vlgmr.msra.gmra.mrb[128].mxu0 %v3073_v30  ;;  %v3062_v9 = vmax.f32 %v3018_v18, 0.0  ;;  %v4708_v30 = vld [vmem:[#allocation14 + $0x10] sm:$0xff]   ;;  %v4711_v18 = vld [vmem:[#allocation14 + $0x28] sm:$0xff]  }
 0xeab   : > { %v3013_v42 = vadd.f32 %v6236_v16, %v3012_v41  ;;  %v3060_v38 = vmax.f32 %v3010_v4, 0.0  ;;  %4517 = vmatpush3.bf16.msra.mxu0 %v4706_v14 }
 0xeac   : > { %v3063_v61 = vmax.f32 %v3021_v40, 0.0  ;;  %4518 = vmatprep.subr.bf16.mxu0 %v5203_v15 }
 0xead   : > { %v3061_v10 = vmax.f32 %v3013_v42, 0.0 }
 0xeae   : > { %v3075_v49 = vpack.c.bf16 %v3063_v61, %v3062_v9 }
 0xeaf   : > { %v3074_v17 = vpack.c.bf16 %v3061_v10, %v3060_v38  ;;  %v4458_v3 = vpop.f32.mrb[120].mxu1 }
 0xeb0   : > { %v3034_v19 = vadd.f32 %v6236_v16, %v4458_v3  ;;  %v3025_v2 = vpop.f32.mrb[121].mxu1 }
 0xeb1   : > { %v3026_v51 = vadd.f32 %v6236_v16, %v3025_v2  ;;  %v4459_v29 = vpop.f32.mrb[122].mxu1  ;;  %4484 = vmatprep.mubr.bf16.mxu0 %v3074_v17 }
 0xeb2   : > { %v3037_v33 = vadd.f32 %v6236_v16, %v4459_v29  ;;  %v3028_v27 = vpop.f32.mrb[123].mxu1  ;;  %4485 = vmatmul.mubr.bf16.gmra.mrb[132].mxu0 %v3075_v49  ;;  %v3066_v6 = vmax.f32 %v3034_v19, 0.0 }
 0xeb3   : > { %v3029_v57 = vadd.f32 %v6236_v16, %v3028_v27  ;;  %v3064_v55 = vmax.f32 %v3026_v51, 0.0 }
 0xeb4   : > { %v3067_v60 = vmax.f32 %v3037_v33, 0.0 }
 0xeb5   : > { %v3065_v52 = vmax.f32 %v3029_v57, 0.0 }
 0xeb6   : > { %v3077_v24 = vpack.c.bf16 %v3067_v60, %v3066_v6 }
 0xeb7   : > { %v3076_v12 = vpack.c.bf16 %v3065_v52, %v3064_v55  ;;  %v4462_v23 = vpop.f32.mrb[124].mxu1 }
 0xeb8   : > { %v3050_v45 = vadd.f32 %v6236_v16, %v4462_v23  ;;  %v3041_v34 = vpop.f32.mrb[125].mxu1 }
 0xeb9   : > { %v3042_v31 = vadd.f32 %v6236_v16, %v3041_v34  ;;  %v4463_v43 = vpop.f32.mrb[126].mxu1  ;;  %4488 = vmatprep.mubr.bf16.mxu0 %v3076_v12 }
 0xeba   : > { %v3053_v36 = vadd.f32 %v6236_v16, %v4463_v43  ;;  %v3044_v26 = vpop.f32.mrb[127].mxu1  ;;  %4489 = vmatmul.mubr.bf16.gmra.mrb[136].mxu0 %v3077_v24  ;;  %v3070_v46 = vmax.f32 %v3050_v45, 0.0 }
 0xebb   : > { %v3045_v53 = vadd.f32 %v6236_v16, %v3044_v26  ;;  %v3068_v13 = vmax.f32 %v3042_v31, 0.0  ;;  %v4707_v16 = vld [vmem:[#allocation14 + $0x8] sm:$0xff]  }
 0xebc   : > { %v3071_v44 = vmax.f32 %v3053_v36, 0.0  ;;  %4519 = vmatpush3.bf16.msra.mxu0 %v4707_v16 }
 0xebd   : > { %v3069_v35 = vmax.f32 %v3045_v53, 0.0  ;;  %4520 = vmatprep.subr.bf16.mxu0 %v5203_v15 }
 0xebe   : > { %v3079_v48 = vpack.c.bf16 %v3071_v44, %v3070_v46 }
 0xebf   : > { %v3078_v50 = vpack.c.bf16 %v3069_v35, %v3068_v13 }
 0xec0   : > { %4521 = vmatpush3.bf16.msra.mxu0 %v4708_v30 }
 0xec1   : > { %4492 = vmatprep.mubr.bf16.mxu0 %v3078_v50  ;;  %4522 = vmatprep.subr.bf16.mxu0 %v5203_v15 }
 0xec2   : > { %4493 = vmatmul.mubr.bf16.gmra.mrb[140].mxu0 %v3079_v48 }
 0xec3   : > { %4532 = vmatprep.mubr.msk.bf16.mxu0 %vm5204_vm0, %v5203_v15 }
 0xec4   : > { %4523 = vmatpush3.bf16.msra.mxu0 %v4709_v54 }
 0xec5   : > { %4524 = vmatprep.subr.bf16.mxu0 %v5203_v15 }
 0xec8   : > { %4525 = vmatpush3.bf16.msra.mxu0 %v4710_v8 }
 0xec9   : > { %4526 = vmatprep.subr.bf16.mxu0 %v5203_v15 }
 0xecc   : > { %4527 = vmatpush3.bf16.msra.mxu0 %v4711_v18 }
 0xecd   : > { %4528 = vmatprep.subr.bf16.mxu0 %v5203_v15 }
 0xed0   : > { %4529 = vmatpush3.bf16.msra.mxu0 %v4712_v20 }
 0xed1   : > { %4530 = vmatprep.subr.bf16.mxu0 %v5203_v15 }
 0xf7d   : > { %v4482_v4 = vpop.f32.mrb[128].mxu0 }
 0xf7e   : > { %v3123_v25 = vadd.f32 %v6273_v47, %v4482_v4  ;;  %v3114_v40 = vpop.f32.mrb[129].mxu0 }
 0xf7f   : > { %v3115_v41 = vadd.f32 %v6273_v47, %v3114_v40  ;;  %v4483_v42 = vpop.f32.mrb[130].mxu0 }
 0xf80   : > { %4810 = vtanh.f32 %v3123_v25  ;;  %v3126_v9 = vadd.f32 %v6273_v47, %v4483_v42  ;;  %v3117_v61 = vpop.f32.mrb[131].mxu0 }
 0xf81   : > { %4812 = vtanh.f32 %v3115_v41  ;;  %v3118_v38 = vadd.f32 %v6273_v47, %v3117_v61 }
 0xf82   : > { %4814 = vtanh.f32 %v3126_v9 }
 0xf83   : > { %4816 = vtanh.f32 %v3118_v38 }
 0xf85   : > { %v4486_v10 = vpop.f32.mrb[132].mxu0 }
 0xf86   : > { %v3139_v49 = vadd.f32 %v6273_v47, %v4486_v10  ;;  %v3130_v17 = vpop.f32.mrb[133].mxu0 }
 0xf87   : > { %v3131_v3 = vadd.f32 %v6273_v47, %v3130_v17  ;;  %v4487_v19 = vpop.f32.mrb[134].mxu0 }
 0xf88   : > { %4818 = vtanh.f32 %v3139_v49  ;;  %v3142_v2 = vadd.f32 %v6273_v47, %v4487_v19  ;;  %v3133_v51 = vpop.f32.mrb[135].mxu0 }
 0xf89   : > { %4820 = vtanh.f32 %v3131_v3  ;;  %v3134_v29 = vadd.f32 %v6273_v47, %v3133_v51 }
 0xf8a   : > { %v4811_v33 = vpop.eup %4810  ;;  %4822 = vtanh.f32 %v3142_v2 }
 0xf8b   : > { %v4813_v27 = vpop.eup %4812  ;;  %4824 = vtanh.f32 %v3134_v29  ;;  %v3195_v57 = vadd.f32 %v4811_v33, %v5893_v28 }
 0xf8c   : > { %v4815_v6 = vpop.eup %4814  ;;  %v3193_v60 = vadd.f32 %v4813_v27, %v5898_v0 }
 0xf8d   : > { %v4817_v55 = vpop.eup %4816  ;;  %v4490_v52 = vpop.f32.mrb[136].mxu0  ;;  %v3196_v24 = vadd.f32 %v4815_v6, %v5902_v32  ;;  %v3211_v43 = vmax.f32 %v3195_v57, 0.0 }
 0xf8e   : > { %v3155_v12 = vadd.f32 %v6273_v47, %v4490_v52  ;;  %v3146_v23 = vpop.f32.mrb[137].mxu0  ;;  %v3194_v45 = vadd.f32 %v4817_v55, %v5907_v59  ;;  %v3209_v53 = vmax.f32 %v3193_v60, 0.0 }
 0xf8f   : > { %v3147_v34 = vadd.f32 %v6273_v47, %v3146_v23  ;;  %v4491_v31 = vpop.f32.mrb[138].mxu0  ;;  %v3212_v36 = vmax.f32 %v3196_v24, 0.0 }
 0xf90   : > { %4826 = vtanh.f32 %v3155_v12  ;;  %v3158_v28 = vadd.f32 %v6273_v47, %v4491_v31  ;;  %v3149_v26 = vpop.f32.mrb[139].mxu0  ;;  %v3210_v0 = vmax.f32 %v3194_v45, 0.0 }
 0xf91   : > { %4828 = vtanh.f32 %v3147_v34  ;;  %v3150_v46 = vadd.f32 %v6273_v47, %v3149_v26  ;;  %v3226_v32 = vpack.c.bf16 %v3212_v36, %v3211_v43 }
 0xf92   : > { %v4819_v44 = vpop.eup %4818  ;;  %4830 = vtanh.f32 %v3158_v28  ;;  %v3225_v13 = vpack.c.bf16 %v3210_v0, %v3209_v53 }
 0xf93   : > { %v4821_v35 = vpop.eup %4820  ;;  %4832 = vtanh.f32 %v3150_v46  ;;  %v3199_v59 = vadd.f32 %v4819_v44, %v5917_v56 }
 0xf94   : > { %v4823_v48 = vpop.eup %4822  ;;  %4497 = vmatpush3.bf16.msra.mxu1 %v3225_v13  ;;  %v3197_v50 = vadd.f32 %v4821_v35, %v5922_v11 }
 0xf95   : > { %v4825_v14 = vpop.eup %4824  ;;  %v4494_v16 = vpop.f32.mrb[140].mxu0  ;;  %4498 = vmatprep.subr.bf16.mxu1 %v5203_v15  ;;  %v3200_v30 = vadd.f32 %v4823_v48, %v5926_v5  ;;  %v3215_v25 = vmax.f32 %v3199_v59, 0.0 }
 0xf96   : > { %v3171_v54 = vadd.f32 %v6273_v47, %v4494_v16  ;;  %v3162_v8 = vpop.f32.mrb[141].mxu0  ;;  %v3198_v18 = vadd.f32 %v4825_v14, %v5931_v22  ;;  %v3213_v41 = vmax.f32 %v3197_v50, 0.0 }
 0xf97   : > { %v3163_v20 = vadd.f32 %v6273_v47, %v3162_v8  ;;  %v4495_v4 = vpop.f32.mrb[142].mxu0  ;;  %v3216_v56 = vmax.f32 %v3200_v30, 0.0 }
 0xf98   : > { %4834 = vtanh.f32 %v3171_v54  ;;  %v3174_v40 = vadd.f32 %v6273_v47, %v4495_v4  ;;  %v3165_v11 = vpop.f32.mrb[143].mxu0  ;;  %4499 = vmatpush3.bf16.msra.mxu1 %v3226_v32  ;;  %v3214_v42 = vmax.f32 %v3198_v18, 0.0 }
 0xf99   : > { %4836 = vtanh.f32 %v3163_v20  ;;  %v3166_v5 = vadd.f32 %v6273_v47, %v3165_v11  ;;  %4500 = vmatprep.subr.bf16.mxu1 %v5203_v15  ;;  %v3228_v9 = vpack.c.bf16 %v3216_v56, %v3215_v25 }
 0xf9a   : > { %v4827_v61 = vpop.eup %4826  ;;  %4838 = vtanh.f32 %v3174_v40  ;;  %v3227_v22 = vpack.c.bf16 %v3214_v42, %v3213_v41 }
 0xf9b   : > { %v4829_v38 = vpop.eup %4828  ;;  %4840 = vtanh.f32 %v3166_v5  ;;  %v3203_v10 = vadd.f32 %v4827_v61, %v5941_v62 }
 0xf9c   : > { %v4831_v49 = vpop.eup %4830  ;;  %4501 = vmatpush3.bf16.msra.mxu1 %v3227_v22  ;;  %v3201_v17 = vadd.f32 %v4829_v38, %v5946_v58 }
 0xf9d   : > { %v4833_v3 = vpop.eup %4832  ;;  %4502 = vmatprep.subr.bf16.mxu1 %v5203_v15  ;;  %v3204_v19 = vadd.f32 %v4831_v49, %v5950_v7  ;;  %v3219_v2 = vmax.f32 %v3203_v10, 0.0 }
 0xf9e   : > { %v3202_v47 = vadd.f32 %v4833_v3, %v5955_v1  ;;  %v3217_v29 = vmax.f32 %v3201_v17, 0.0 }
 0xf9f   : > { %v3220_v51 = vmax.f32 %v3204_v19, 0.0 }
 0xfa0   : > { %4503 = vmatpush3.bf16.msra.mxu1 %v3228_v9  ;;  %v3218_v33 = vmax.f32 %v3202_v47, 0.0 }
 0xfa1   : > { %4504 = vmatprep.subr.bf16.mxu1 %v5203_v15  ;;  %v3230_v27 = vpack.c.bf16 %v3220_v51, %v3219_v2 }
 0xfa2   : > { %v4835_v62 = vpop.eup %4834  ;;  %v3229_v57 = vpack.c.bf16 %v3218_v33, %v3217_v29 }
 0xfa3   : > { %v4837_v6 = vpop.eup %4836  ;;  %v3207_v58 = vadd.f32 %v4835_v62, %v5962_v63 }
 0xfa4   : > { %v4839_v60 = vpop.eup %4838  ;;  %4505 = vmatpush3.bf16.msra.mxu1 %v3229_v57  ;;  %v3205_v55 = vadd.f32 %v4837_v6, %v5966_v37  ;;  %v4705_v37 = vld [vmem:[%s6590_s16] sm:$0xff]  }
 0xfa5   : > { %v4841_v7 = vpop.eup %4840  ;;  %4506 = vmatprep.subr.bf16.mxu1 %v5203_v15  ;;  %v3208_v1 = vadd.f32 %v4839_v60, %v5970_v39  ;;  %v3223_v24 = vmax.f32 %v3207_v58, 0.0  ;;  %v4713_v39 = vld [vmem:[#allocation14 + $0x38] sm:$0xff]  }
 0xfa6   : > { %v3206_v52 = vadd.f32 %v4841_v7, %v5975_v21  ;;  %v3221_v23 = vmax.f32 %v3205_v55, 0.0  ;;  %4531 = vmatpush3.bf16.msra.mxu0 %v4713_v39 }
 0xfa7   : > { %v3224_v12 = vmax.f32 %v3208_v1, 0.0 }
 0xfa8   : > { %4507 = vmatpush3.bf16.msra.mxu1 %v3230_v27  ;;  %v3222_v45 = vmax.f32 %v3206_v52, 0.0 }
 0xfa9   : > { %4508 = vmatprep.subr.bf16.mxu1 %v5203_v15  ;;  %v3232_v63 = vpack.c.bf16 %v3224_v12, %v3223_v24 }
 0xfaa   : > { %v3231_v34 = vpack.c.bf16 %v3222_v45, %v3221_v23 }
 0xfac   : > { %4509 = vmatpush3.bf16.msra.mxu1 %v3231_v34 }
 0xfad   : > { %4510 = vmatprep.subr.bf16.mxu1 %v5203_v15  ;;  %v3644_v15 = vld [vmem:[%s6591_s24] ss:$0 sm:$0xff] }
 0xfb0   : > { %4511 = vmatpush3.bf16.msra.mxu1 %v3232_v63 }
 0xfb3   : > { %4513 = vmatmul.mubr.bf16.vlgmr.msra.gmra.mrb[128].mxu1 %v4705_v37 }
0x1086   : > { %v3273_v21 = vpop.f32.mrb[128].mxu1 }
0x1087   : > { %v4514_v31 = vpop.f32.mrb[129].mxu1 }
0x1088   : > { %v3276_v43 = vpop.f32.mrb[130].mxu1 }
0x1089   : > { %v3280_v36 = vpack.c.bf16 %v3276_v43, %v3273_v21  ;;  %v4515_v28 = vpop.f32.mrb[131].mxu1 }
0x108b   : > { %4533 = vmatmul.mubr.bf16.vlgmr.msra.gmra.mrb[144].mxu0 %v3280_v36 }
0x115e   : > { %v3369_v26 = vpop.f32.mrb[144].mxu0 }
0x115f   : > { %v3370_v53 = vadd.f32 %v3644_v15, %v3369_v26  ;;  %v4534_v0 = vpop.f32.mrb[145].mxu0 }
0x1160   : > { %v3372_v46 = vpop.f32.mrb[146].mxu0 }
0x1161   : > { %3376 = vst [vmem:[%s635_s9] sm:$0xff] %v3370_v53  ;;  %v3373_v32 = vadd.f32 %v3644_v15, %v3372_v46  ;;  %v4535_v44 = vpop.f32.mrb[147].mxu0 }
0x1163   : > { %3377 = vst [vmem:[%s635_s9 + $0x8] sm:$0xff] %v3373_v32 }
0x1164   : > { %5122 = shalt.err (!%p5119_p0)
}
0x1165   : > { %s5123_s13 = scalar_lea.hbm %s6440_s8, 256  ;;  %s5127_s3 = scalar_lea.hbm %s6593_s19, 512 }
0x1166   : > { %p5124_p12 = scmp.ne.s32.totalorder %s6440_s8, %s5123_s13  ;;  %p5128_p6 = scmp.lt.u32.totalorder %s6440_s8, %s6593_s19 }
0x1167   : > { %p5129_p8 = scmp.lt.u32.totalorder %s5127_s3, %s5123_s13  ;;  %p5131_p2 = scmp.lt.u32.totalorder %s5123_s13, %s6440_s8 }
0x1168   : > { %p5125_p11 = pnand %p5124_p12, %p6594_p9 }
0x1169   : > { %p5130_p7 = por %p5129_p8, %p5128_p6 }
0x116a   : > { %p5126_p13 = pneg %p5125_p11 }
0x116b   : > { %p5132_p3 = por %p5131_p2, %p5130_p7 }
0x116d   : > { %p5133_p10 = pnand %p5132_p3, %p5126_p13 }
0x116f   : > { %5136 = shalt.err (!%p5133_p10)
}
0x1170   : > { %s5206_s24 = smov 128   ;;  %s5207_s9 = smov 8  }
0x1171   : > { %4562 = dma.vmem_to_hbm [thread:$0]  (%p6594_p9), %s6435_s1, 256, %s6440_s8, %s3379_s11, %s5206_s24, %s5206_s24, %s5207_s9  }
0x1172 PF: > { %s6595_s21 = sld [smem:[#allocation23_spill]]  ;;  %s6596_s17 = sld [smem:[#allocation29_spill]] }
0x1173   : > { %s6597_s5 = sld [smem:[#allocation24_spill]] }
0x1178   : > { %s3407_s26 = sand.u32 1, %s6595_s21   ;;  %p6598_p1 = scmp.ne.s32.totalorder %s6596_s17, 0 }
0x1179   : > { %p6599_p5 = scmp.ge.s32.totalorder %s6597_s5, 2  ;;  %s3408_s18 = scalar_lea.sflag [#allocation4], %s3407_s26 }
0x117b   : > { %p4591_p4 = pnand %p6599_p5, %p6598_p1 }
0x117d   : > { %5174 = dma.done.wait (!%p4591_p4), %s3408_s18, 256  }
0x117e   : > { %5176 = vsyncadd (!%p4591_p4), %s3408_s18, 4294967040  ;;  %s6600_s16 = sld [smem:[#allocation26_spill]]  ;;  %s6601_s7 = sld [smem:[#allocation28_spill]] }
0x117f   : > { %s6602_s29 = smov %s5183_s30  ;;  %s6603_s30 = smov %s5187_s15 }
0x1184   : > { %p33_p0 = scmp.ge.s32.totalorder %s6600_s16, 4   ;;  %s6604_s15 = smov %s6601_s7 }
0x1186   :  { %35 = sbr.rel (!%p33_p0) target bundleno = 21 (0x15), region = 165 }
0x118d   :  { %3413 = vsyncpa [#allocation3], 1 }
0x118e   :  { %3415 = vsyncpa [#allocation3 + $0x1], 1 }
0x118f   :  { %3416 = vsyncpa [#allocation6], 1 }
0x1190   :  { %3418 = vsyncpa [#allocation6 + $0x1], 1 }
0x1191   :  { %3419 = vsyncpa [#allocation9], 1 }
0x1192   :  { %3420 = vsyncpa [#allocation12], 1 }
0x1193   :  { %3421 = vsyncpa [#allocation15], 1 }
0x1194   :  { %3422 = vsyncpa [#allocation4], 1 }
0x1195   :  { %3424 = vsyncpa [#allocation4 + $0x1], 1 }

</bundles_post_ra>
